<compile_context>
chip_gen: v7x
topology: tpu7x:2x2x1
jax: 0.10.0
libtpu: 0.0.40
codegen_flags: <defaults>
</compile_context>

<pallas_src>
import numpy as np

import jax
import jax.numpy as jnp
from jax.experimental import pallas as pl
from jax.experimental.pallas import tpu as pltpu


def _round_up(x, m):
    return ((x + m - 1) // m) * m


def _default_tile_n():
    """Per-generation row-tile preference (128 MiB VMEM on v5e/v6e, 64 MiB on v7x)."""
    try:
        kind = jax.devices()[0].device_kind.lower()
    except Exception:
        return 256
    if "v5" in kind or "v6" in kind:
        return 512
    return 256


def _pick_tile_n(n, pref):
    """Row tile: multiple of 8, and >= 2 grid tiles whenever possible (v7x megacore)."""
    if n <= 8:
        return 8
    return max(8, min(pref, _round_up(pl.cdiv(n, 2), 8)))


# ----------------------------------------------------------------------------
# Pallas kernel: dense model (2 matmuls + GELU) fused with kmeans quantizer.
# ----------------------------------------------------------------------------
def _speech_encoder_kernel(frames_ref, w1_ref, b1_ref, w2_ref, b2_ref,
                           cbt_ref, csqh_ref, dense_ref, units_ref):
    # frames_ref : (TN, HOP)   f32 tile of frames (cast to bf16 here; no wrapper pre-pass)
    # w1_ref     : (HOP, Dp)   bf16 conv/proj weight (Conv1d kernel flattened)
    # b1_ref     : (1, Dp)     f32
    # w2_ref     : (Dp, Dp)    bf16 second projection
    # b2_ref     : (1, Dp)     f32
    # cbt_ref    : (Dp, Kp)    bf16 codebook, pre-transposed (no in-kernel XLU transpose)
    # csqh_ref   : (1, Kp)     f32  0.5*||c_k||^2, padded entries = +1e30
    # dense_ref  : (TN, Dp)    output dense features
    # units_ref  : (1, 1, TN)  int32 output unit ids (lane-dense)
    x = frames_ref[...].astype(jnp.bfloat16)

    # ---- dense model: Conv1d(kernel=stride=HOP) -> GELU -> Linear ----
    h = jnp.dot(x, w1_ref[...], preferred_element_type=jnp.float32) + b1_ref[...]
    # tanh-approx GELU (torch nn.GELU defaults to exact erf; erf has no clean Mosaic lowering)
    h = jax.nn.gelu(h, approximate=True)
    dense = jnp.dot(h.astype(jnp.bfloat16), w2_ref[...],
                    preferred_element_type=jnp.float32) + b2_ref[...]
    dense_ref[...] = dense.astype(dense_ref.dtype)

    # ---- quantizer: argmin_k ||x - c_k||^2 == argmin_k (0.5*||c_k||^2 - <x, c_k>) ----
    # (per-row ||x||^2 dropped and factor 2 folded into csqh: both argmin-invariant)
    dense_b = dense.astype(jnp.bfloat16)
    tn = dense.shape[0]
    kp = cbt_ref.shape[1]
    ck = 512 if kp % 512 == 0 else (256 if kp % 256 == 0 else 128)

    best_val = jnp.full((tn, 1), jnp.inf, jnp.float32)
    best_idx = jnp.zeros((tn, 1), jnp.int32)
    # K chunked so the (TN, ck) scores/dist intermediates stay small (no vreg spills);
    # static unroll with static 128-aligned lane offsets.
    for c in range(kp // ck):
        off = c * ck
        scores = jnp.dot(dense_b, cbt_ref[:, off:off + ck],
                         preferred_element_type=jnp.float32)            # (TN, ck)
        dist = csqh_ref[:, off:off + ck] - scores                       # (TN, ck)
        cmin = jnp.min(dist, axis=1, keepdims=True)                     # (TN, 1)
        col = jax.lax.broadcasted_iota(jnp.int32, (1, ck), 1) + off
        cidx = jnp.min(jnp.where(dist <= cmin, col, kp),
                       axis=1, keepdims=True)                           # first min in chunk
        take = cmin < best_val                                          # ties keep earlier k
        best_val = jnp.where(take, cmin, best_val)
        best_idx = jnp.where(take, cidx, best_idx)

    units_ref[...] = best_idx[:, 0][None, None, :]


# ----------------------------------------------------------------------------
# pallas_call wrapper.
# ----------------------------------------------------------------------------
def _run_speech_encoder_kernel(frames, prep, *, tile_n, dense_dtype,
                               single_buffer_weights):
    w1_p, b1_p, w2_p, b2_p, cbt_p, csqh = prep
    n, hop = frames.shape
    d_p = w1_p.shape[1]
    n_tiles = pl.cdiv(n, tile_n)  # ragged last block handled by Pallas (masked writes)

    def w_spec(a):
        kwargs = {"pipeline_mode": pl.Buffered(1)} if single_buffer_weights else {}
        return pl.BlockSpec(a.shape, lambda i: (0, 0), **kwargs)

    # VMEM limit sized from the actual footprint (v7x has only 64 MiB per TC).
    dense_itemsize = np.dtype(dense_dtype).itemsize
    weight_bytes = sum(a.size * a.dtype.itemsize for a in prep)
    weight_bytes *= 1 if single_buffer_weights else 2
    tile_bytes = 2 * (tile_n * hop * 4 + tile_n * d_p * dense_itemsize + tile_n * 4)
    vmem_limit = max(int(weight_bytes + tile_bytes) + 4 * 2 ** 20, 16 * 2 ** 20)

    dense_p, units_p = pl.pallas_call(
        _speech_encoder_kernel,
        out_shape=(
            jax.ShapeDtypeStruct((n, d_p), dense_dtype),
            jax.ShapeDtypeStruct((n_tiles, 1, tile_n), jnp.int32),  # lane-dense units
        ),
        grid_spec=pltpu.PrefetchScalarGridSpec(
            num_scalar_prefetch=0,
            grid=(n_tiles,),
            in_specs=[
                pl.BlockSpec((tile_n, hop), lambda i: (i, 0)),   # frames: tiled over N, raw f32
                w_spec(w1_p),                                    # grid-invariant weights
                w_spec(b1_p),
                w_spec(w2_p),
                w_spec(b2_p),
                w_spec(cbt_p),
                w_spec(csqh),
            ],
            out_specs=[
                pl.BlockSpec((tile_n, d_p), lambda i: (i, 0)),     # dense
                pl.BlockSpec((1, 1, tile_n), lambda i: (i, 0, 0)), # units (lane-dense)
            ],
        ),
        compiler_params=pltpu.CompilerParams(
            dimension_semantics=("parallel",),   # shards grid across TCs on v7x
            vmem_limit_bytes=vmem_limit,
        ),
    )(frames, w1_p, b1_p, w2_p, b2_p, cbt_p, csqh)
    return dense_p, units_p


# Cache whether pipeline_mode=pl.Buffered(1) is accepted by this Pallas build.
_SINGLE_BUFFER_OK = {"ok": None}


def _run_with_fallback(frames, prep, *, tile_n, dense_dtype):
    if _SINGLE_BUFFER_OK["ok"] is not False:
        try:
            out = _run_speech_encoder_kernel(frames, prep, tile_n=tile_n,
                                             dense_dtype=dense_dtype,
                                             single_buffer_weights=True)
            _SINGLE_BUFFER_OK["ok"] = True
            return out
        except Exception:
            _SINGLE_BUFFER_OK["ok"] = False
    return _run_speech_encoder_kernel(frames, prep, tile_n=tile_n,
                                      dense_dtype=dense_dtype,
                                      single_buffer_weights=False)


# ----------------------------------------------------------------------------
# SpeechEncoder wrapper (glue: framing, durations, output dict).
# ----------------------------------------------------------------------------
class SpeechEncoderPallas:
    """JAX/Pallas counterpart of tokan's SpeechEncoder with synthetic sub-models.

    deduplicate=False, need_f0=False, add_bos_eos=False:
      - torch.unique_consecutive produces data-dependent output shapes,
      - get_f0 runs a CPU numpy pitch tracker,
      both have no static-shape TPU kernel equivalent.
    """

    def __init__(self, hop, hidden_dim, vocab_size, key, *,
                 dense_dtype=jnp.float32, tile_n=None):
        self.code_hop_size = hop
        self.expected_sample_rate = 16000
        self.unit_vocab_size = vocab_size
        self.hidden_dim = hidden_dim
        self.bos = jnp.array([vocab_size], dtype=jnp.int32)
        self.eos = jnp.array([vocab_size + 1], dtype=jnp.int32)
        # f32 default preserves the original module's dense output dtype;
        # bf16 halves the dominant HBM writeback if downstream tolerates it.
        self._dense_dtype = dense_dtype
        self._tile_n_pref = tile_n if tile_n is not None else _default_tile_n()

        k1, k2, k3, k4, k5 = jax.random.split(key, 5)
        scale1 = 1.0 / jnp.sqrt(hop)
        scale2 = 1.0 / jnp.sqrt(hidden_dim)
        # dense model params (Conv1d(1, D, kernel=hop, stride=hop) flattened -> (hop, D))
        self.w1 = jax.random.normal(k1, (hop, hidden_dim), jnp.float32) * scale1
        self.b1 = jax.random.normal(k2, (1, hidden_dim), jnp.float32) * 0.01
        self.w2 = jax.random.normal(k3, (hidden_dim, hidden_dim), jnp.float32) * scale2
        self.b2 = jax.random.normal(k4, (1, hidden_dim), jnp.float32) * 0.01
        # quantizer codebook (K, D)
        self.codebook = jax.random.normal(k5, (vocab_size, hidden_dim), jnp.float32)

        # ---- hoisted, input-independent kernel operands (computed ONCE, kept on device) ----
        d_p = _round_up(hidden_dim, 128)
        k_p = _round_up(vocab_size, 128)
        self._d_p = d_p
        w1_p = jnp.zeros((hop, d_p), jnp.bfloat16).at[:, :hidden_dim].set(
            self.w1.astype(jnp.bfloat16))
        b1_p = jnp.zeros((1, d_p), jnp.float32).at[:, :hidden_dim].set(self.b1)
        w2_p = jnp.zeros((d_p, d_p), jnp.bfloat16).at[:hidden_dim, :hidden_dim].set(
            self.w2.astype(jnp.bfloat16))
        b2_p = jnp.zeros((1, d_p), jnp.float32).at[:, :hidden_dim].set(self.b2)
        # pre-transposed codebook (D, K): no in-kernel XLU transpose
        cbt_p = jnp.zeros((d_p, k_p), jnp.bfloat16).at[:hidden_dim, :vocab_size].set(
            self.codebook.T.astype(jnp.bfloat16))
        # loop-invariant 0.5*||c_k||^2 row (factor 2 folded in); padded slots never win argmin
        csqh = jnp.full((1, k_p), 1e30, jnp.float32).at[:, :vocab_size].set(
            0.5 * jnp.sum(self.codebook.astype(jnp.float32) ** 2, axis=1)[None, :])
        self._prep = (w1_p, b1_p, w2_p, b2_p, cbt_p, csqh)

    def __call__(self, waveform, speaker=None):
        # get_streams: multi-channel -> mono (mean over channel axis 0)
        if waveform.ndim > 1:
            waveform = jnp.mean(waveform, axis=0)

        # Frame the waveform: Conv1d with kernel=stride=hop  -> [N_frames, hop]
        hop = self.code_hop_size
        n_frames = waveform.shape[0] // hop
        frames = waveform[: n_frames * hop].reshape(n_frames, hop).astype(jnp.float32)

        tile_n = _pick_tile_n(n_frames, self._tile_n_pref)
        dense_p, units_p = _run_with_fallback(
            frames, self._prep, tile_n=tile_n, dense_dtype=self._dense_dtype)

        # trim only what padding exists: rows were never padded (ragged grid), feature dim
        # only if D is not already a 128 multiple.
        dense = dense_p if self._d_p == self.hidden_dim else dense_p[:, : self.hidden_dim]
        units = units_p.reshape(-1)[:n_frames]

        # deduplicate=False branch of get_streams
        durations = jnp.ones_like(units)
        # TODO(synk): deduplicate=True (torch.unique_consecutive) needs data-dependent
        #             output shapes; not expressible as a static-shape TPU kernel.
        # TODO(synk): need_f0=True path (get_f0 / align_f0_to_durations / f0_quantizer)
        #             is a CPU numpy pitch tracker; no Pallas equivalent.
        # TODO(synk): maybe_resample (torchaudio resampling) not implemented.

        item = {
            "units": units,          # int32 [N_frames]
            "durations": durations,  # int32 [N_frames]
            "dense": dense,          # dense_dtype [N_frames, D]
        }
        return item


# ----------------------------------------------------------------------------
# Pure-JAX reference for correctness checking (mirrors the bf16/f32 mixed path).
# ----------------------------------------------------------------------------
def _reference(enc, waveform):
    if waveform.ndim > 1:
        waveform = jnp.mean(waveform, axis=0)
    hop = enc.code_hop_size
    n = waveform.shape[0] // hop
    frames = waveform[: n * hop].reshape(n, hop)

    fb = frames.astype(jnp.bfloat16)
    w1b = enc.w1.astype(jnp.bfloat16)
    w2b = enc.w2.astype(jnp.bfloat16)
    cbb = enc.codebook.astype(jnp.bfloat16)

    h = jnp.dot(fb, w1b, preferred_element_type=jnp.float32) + enc.b1
    h = jax.nn.gelu(h, approximate=True)
    dense = jnp.dot(h.astype(jnp.bfloat16), w2b,
                    preferred_element_type=jnp.float32) + enc.b2

    scores = jnp.dot(dense.astype(jnp.bfloat16), cbb.T,
                     preferred_element_type=jnp.float32)
    c_sq = jnp.sum(enc.codebook.astype(jnp.float32) ** 2, axis=1)[None, :]
    dist = c_sq - 2.0 * scores
    units = jnp.argmin(dist, axis=1).astype(jnp.int32)
    return dense, units


if __name__ == "__main__":
    key = jax.random.PRNGKey(0)
    k_param, k_wave = jax.random.split(key)

    HOP = 64          # code_hop_size of the synthetic dense model
    D = 32            # dense feature dim
    K = 16            # quantizer vocab size
    N_FRAMES = 300    # not a tile_n multiple -> exercises the ragged last grid block
    C = 2             # stereo input, mean-ed to mono like get_streams

    enc = SpeechEncoderPallas(hop=HOP, hidden_dim=D, vocab_size=K, key=k_param)

    waveform = jax.random.normal(k_wave, (C, N_FRAMES * HOP), jnp.float32)

    out = enc(waveform)
    jax.block_until_ready(out)

    # sanity check against pure-JAX reference
    ref_dense, ref_units = _reference(enc, waveform)
    assert out["dense"].shape == (N_FRAMES, D)
    assert out["units"].shape == (N_FRAMES,)
    assert out["durations"].shape == (N_FRAMES,)
    assert out["units"].dtype == jnp.int32
    assert int(out["units"].max()) < K and int(out["units"].min()) >= 0
    # mixed bf16/f32 matmul accumulation order differs between XLA and the MXU kernel,
    # so allow small dense deviations and rare near-tie argmin flips.
    assert jnp.allclose(out["dense"], ref_dense, atol=2e-2, rtol=2e-2)
    assert float(jnp.mean(out["units"] == ref_units)) >= 0.99
    assert jnp.array_equal(out["durations"], jnp.ones((N_FRAMES,), jnp.int32))

    print("KERNEL_OK")
</pallas_src>

<mosaic_0001>
module attributes {stable_mosaic.version = 11 : i64} {
  func.func @_speech_encoder_kernel(%arg0: i32, %arg1: memref<152x64xf32, #tpu.memory_space<vmem>>, %arg2: memref<64x128xbf16, #tpu.memory_space<vmem>>, %arg3: memref<1x128xf32, #tpu.memory_space<vmem>>, %arg4: memref<128x128xbf16, #tpu.memory_space<vmem>>, %arg5: memref<1x128xf32, #tpu.memory_space<vmem>>, %arg6: memref<128x128xbf16, #tpu.memory_space<vmem>>, %arg7: memref<1x128xf32, #tpu.memory_space<vmem>>, %arg8: memref<152x128xf32, #tpu.memory_space<vmem>>, %arg9: memref<1x1x152xi32, #tpu.memory_space<vmem>>) attributes {dimension_semantics = [#tpu.dimension_semantics<parallel>], iteration_bounds = array<i64: 2>, scalar_prefetch = 0 : i64, scratch_operands = 0 : i64, tpu.core_type = #tpu.core_type<tc>, window_params = [{transform_indices = @transform_0, window_bounds = array<i64: 152, 64>}, {pipeline_mode = #tpu.pipeline_mode<synchronous>, transform_indices = @transform_1, window_bounds = array<i64: 64, 128>}, {pipeline_mode = #tpu.pipeline_mode<synchronous>, transform_indices = @transform_2, window_bounds = array<i64: 1, 128>}, {pipeline_mode = #tpu.pipeline_mode<synchronous>, transform_indices = @transform_3, window_bounds = array<i64: 128, 128>}, {pipeline_mode = #tpu.pipeline_mode<synchronous>, transform_indices = @transform_4, window_bounds = array<i64: 1, 128>}, {pipeline_mode = #tpu.pipeline_mode<synchronous>, transform_indices = @transform_5, window_bounds = array<i64: 128, 128>}, {pipeline_mode = #tpu.pipeline_mode<synchronous>, transform_indices = @transform_6, window_bounds = array<i64: 1, 128>}, {transform_indices = @transform_7, window_bounds = array<i64: 152, 128>}, {transform_indices = @transform_8, window_bounds = array<i64: 1, 1, 152>}]} {
    %c0 = arith.constant 0 : index
    %c0_0 = arith.constant 0 : index
    %0 = vector.load %arg1[%c0, %c0_0] : memref<152x64xf32, #tpu.memory_space<vmem>>, vector<152x64xf32>
    %1 = arith.truncf %0 : vector<152x64xf32> to vector<152x64xbf16>
    %c0_1 = arith.constant 0 : index
    %c0_2 = arith.constant 0 : index
    %2 = vector.load %arg2[%c0_1, %c0_2] : memref<64x128xbf16, #tpu.memory_space<vmem>>, vector<64x128xbf16>
    %cst = arith.constant dense<0.000000e+00> : vector<152x128xf32>
    %3 = tpu.matmul %1, %2, %cst {dimension_numbers = #tpu.dot_dimension_numbers<[1], [0], [0], [1], [0, 0, 1, 1], [], []>} : vector<152x64xbf16>, vector<64x128xbf16>, vector<152x128xf32> -> vector<152x128xf32>
    %c0_3 = arith.constant 0 : index
    %c0_4 = arith.constant 0 : index
    %4 = vector.load %arg3[%c0_3, %c0_4] : memref<1x128xf32, #tpu.memory_space<vmem>>, vector<1x128xf32>
    %5 = vector.broadcast %4 : vector<1x128xf32> to vector<152x128xf32>
    %6 = arith.addf %3, %5 : vector<152x128xf32>
    %7 = arith.mulf %6, %6 : vector<152x128xf32>
    %8 = arith.mulf %6, %7 : vector<152x128xf32>
    %cst_5 = arith.constant 4.471500e-02 : f32
    %9 = vector.broadcast %cst_5 : f32 to vector<152x128xf32>
    %10 = arith.mulf %9, %8 : vector<152x128xf32>
    %11 = arith.addf %6, %10 : vector<152x128xf32>
    %cst_6 = arith.constant 0.797884583 : f32
    %12 = vector.broadcast %cst_6 : f32 to vector<152x128xf32>
    %13 = arith.mulf %12, %11 : vector<152x128xf32>
    %14 = math.tanh %13 : vector<152x128xf32>
    %cst_7 = arith.constant 1.000000e+00 : f32
    %15 = vector.broadcast %cst_7 : f32 to vector<152x128xf32>
    %16 = arith.addf %15, %14 : vector<152x128xf32>
    %cst_8 = arith.constant 5.000000e-01 : f32
    %17 = vector.broadcast %cst_8 : f32 to vector<152x128xf32>
    %18 = arith.mulf %17, %16 : vector<152x128xf32>
    %19 = arith.mulf %6, %18 : vector<152x128xf32>
    %20 = arith.truncf %19 : vector<152x128xf32> to vector<152x128xbf16>
    %c0_9 = arith.constant 0 : index
    %c0_10 = arith.constant 0 : index
    %21 = vector.load %arg4[%c0_9, %c0_10] : memref<128x128xbf16, #tpu.memory_space<vmem>>, vector<128x128xbf16>
    %cst_11 = arith.constant dense<0.000000e+00> : vector<152x128xf32>
    %22 = tpu.matmul %20, %21, %cst_11 {dimension_numbers = #tpu.dot_dimension_numbers<[1], [0], [0], [1], [0, 0, 1, 1], [], []>} : vector<152x128xbf16>, vector<128x128xbf16>, vector<152x128xf32> -> vector<152x128xf32>
    %c0_12 = arith.constant 0 : index
    %c0_13 = arith.constant 0 : index
    %23 = vector.load %arg5[%c0_12, %c0_13] : memref<1x128xf32, #tpu.memory_space<vmem>>, vector<1x128xf32>
    %24 = vector.broadcast %23 : vector<1x128xf32> to vector<152x128xf32>
    %25 = arith.addf %22, %24 : vector<152x128xf32>
    %c0_14 = arith.constant 0 : index
    %c0_15 = arith.constant 0 : index
    %26 = vector.load %arg8[%c0_14, %c0_15] : memref<152x128xf32, #tpu.memory_space<vmem>>, vector<152x128xf32>
    tpu.vector_store %arg8[%c0_14, %c0_15], %25 {strides = array<i32>} : memref<152x128xf32, #tpu.memory_space<vmem>>, vector<152x128xf32>,
    %27 = arith.truncf %25 : vector<152x128xf32> to vector<152x128xbf16>
    %cst_16 = arith.constant 0x7F800000 : f32
    %28 = vector.broadcast %cst_16 : f32 to vector<152x1xf32>
    %c0_i32 = arith.constant 0 : i32
    %29 = vector.broadcast %c0_i32 : i32 to vector<152x1xi32>
    %c0_17 = arith.constant 0 : index
    %c0_18 = arith.constant 0 : index
    %30 = vector.load %arg6[%c0_17, %c0_18] : memref<128x128xbf16, #tpu.memory_space<vmem>>, vector<128x128xbf16>
    %cst_19 = arith.constant dense<0.000000e+00> : vector<152x128xf32>
    %31 = tpu.matmul %27, %30, %cst_19 {dimension_numbers = #tpu.dot_dimension_numbers<[1], [0], [0], [1], [0, 0, 1, 1], [], []>} : vector<152x128xbf16>, vector<128x128xbf16>, vector<152x128xf32> -> vector<152x128xf32>
    %c0_20 = arith.constant 0 : index
    %c0_21 = arith.constant 0 : index
    %32 = vector.load %arg7[%c0_20, %c0_21] : memref<1x128xf32, #tpu.memory_space<vmem>>, vector<1x128xf32>
    %33 = vector.broadcast %32 : vector<1x128xf32> to vector<152x128xf32>
    %34 = arith.subf %33, %31 : vector<152x128xf32>
    %cst_22 = arith.constant dense<0x7F800000> : vector<152xf32>
    %35 = vector.multi_reduction <minimumf>, %34, %cst_22 [1] : vector<152x128xf32> to vector<152xf32>
    %36 = vector.shape_cast %35 : vector<152xf32> to vector<152x1xf32>
    %37 = tpu.iota {dimensions = array<i32: 1>} : vector<1x128xi32>
    %c0_i32_23 = arith.constant 0 : i32
    %38 = vector.broadcast %c0_i32_23 : i32 to vector<1x128xi32>
    %39 = arith.addi %37, %38 : vector<1x128xi32>
    %40 = vector.broadcast %36 : vector<152x1xf32> to vector<152x128xf32>
    %41 = arith.cmpf ole, %34, %40 : vector<152x128xf32>
    %c128_i32 = arith.constant 128 : i32
    %42 = vector.shape_cast %39 : vector<1x128xi32> to vector<1x128xi32>
    %43 = vector.broadcast %42 : vector<1x128xi32> to vector<152x128xi32>
    %44 = vector.broadcast %c128_i32 : i32 to vector<152x128xi32>
    %45 = arith.select %41, %43, %44 : vector<152x128xi1>, vector<152x128xi32>
    %cst_24 = arith.constant dense<2147483647> : vector<152xi32>
    %46 = vector.multi_reduction <minsi>, %45, %cst_24 [1] : vector<152x128xi32> to vector<152xi32>
    %47 = vector.shape_cast %46 : vector<152xi32> to vector<152x1xi32>
    %48 = arith.cmpf olt, %36, %28 : vector<152x1xf32>
    %49 = arith.select %48, %47, %29 : vector<152x1xi1>, vector<152x1xi32>
    %50 = vector.shape_cast %49 : vector<152x1xi32> to vector<152xi32>
    %51 = vector.shape_cast %50 : vector<152xi32> to vector<1x1x152xi32>
    %c0_25 = arith.constant 0 : index
    %c0_26 = arith.constant 0 : index
    %c0_27 = arith.constant 0 : index
    %52 = vector.load %arg9[%c0_25, %c0_26, %c0_27] : memref<1x1x152xi32, #tpu.memory_space<vmem>>, vector<1x1x152xi32>
    tpu.vector_store %arg9[%c0_25, %c0_26, %c0_27], %51 {strides = array<i32>} : memref<1x1x152xi32, #tpu.memory_space<vmem>>, vector<1x1x152xi32>,
    return
  }
  func.func @transform_0(%arg0: i32) -> (i32, i32) {
    %c0_i32 = arith.constant 0 : i32
    %c0_i32_0 = arith.constant 0 : i32
    return %arg0, %c0_i32 : i32, i32
  }
  func.func @transform_1(%arg0: i32) -> (i32, i32) {
    %c0_i32 = arith.constant 0 : i32
    %c0_i32_0 = arith.constant 0 : i32
    %c0_i32_1 = arith.constant 0 : i32
    return %c0_i32, %c0_i32_0 : i32, i32
  }
  func.func @transform_2(%arg0: i32) -> (i32, i32) {
    %c0_i32 = arith.constant 0 : i32
    %c0_i32_0 = arith.constant 0 : i32
    %c0_i32_1 = arith.constant 0 : i32
    return %c0_i32, %c0_i32_0 : i32, i32
  }
  func.func @transform_3(%arg0: i32) -> (i32, i32) {
    %c0_i32 = arith.constant 0 : i32
    %c0_i32_0 = arith.constant 0 : i32
    %c0_i32_1 = arith.constant 0 : i32
    return %c0_i32, %c0_i32_0 : i32, i32
  }
  func.func @transform_4(%arg0: i32) -> (i32, i32) {
    %c0_i32 = arith.constant 0 : i32
    %c0_i32_0 = arith.constant 0 : i32
    %c0_i32_1 = arith.constant 0 : i32
    return %c0_i32, %c0_i32_0 : i32, i32
  }
  func.func @transform_5(%arg0: i32) -> (i32, i32) {
    %c0_i32 = arith.constant 0 : i32
    %c0_i32_0 = arith.constant 0 : i32
    %c0_i32_1 = arith.constant 0 : i32
    return %c0_i32, %c0_i32_0 : i32, i32
  }
  func.func @transform_6(%arg0: i32) -> (i32, i32) {
    %c0_i32 = arith.constant 0 : i32
    %c0_i32_0 = arith.constant 0 : i32
    %c0_i32_1 = arith.constant 0 : i32
    return %c0_i32, %c0_i32_0 : i32, i32
  }
  func.func @transform_7(%arg0: i32) -> (i32, i32) {
    %c0_i32 = arith.constant 0 : i32
    %c0_i32_0 = arith.constant 0 : i32
    return %arg0, %c0_i32 : i32, i32
  }
  func.func @transform_8(%arg0: i32) -> (i32, i32, i32) {
    %c0_i32 = arith.constant 0 : i32
    %c0_i32_0 = arith.constant 0 : i32
    %c0_i32_1 = arith.constant 0 : i32
    return %arg0, %c0_i32, %c0_i32_0 : i32, i32, i32
  }
}

module attributes {stable_mosaic.version = 11 : i64} {
  func.func @_speech_encoder_kernel(%arg0: i32, %arg1: memref<152x64xf32, #tpu.memory_space<vmem>>, %arg2: memref<64x128xbf16, #tpu.memory_space<vmem>>, %arg3: memref<1x128xf32, #tpu.memory_space<vmem>>, %arg4: memref<128x128xbf16, #tpu.memory_space<vmem>>, %arg5: memref<1x128xf32, #tpu.memory_space<vmem>>, %arg6: memref<128x128xbf16, #tpu.memory_space<vmem>>, %arg7: memref<1x128xf32, #tpu.memory_space<vmem>>, %arg8: memref<152x128xf32, #tpu.memory_space<vmem>>, %arg9: memref<1x1x152xi32, #tpu.memory_space<vmem>>) attributes {dimension_semantics = [#tpu.dimension_semantics<parallel>], iteration_bounds = array<i64: 2>, scalar_prefetch = 0 : i64, scratch_operands = 0 : i64, tpu.core_type = #tpu.core_type<tc>, window_params = [{transform_indices = @transform_0, window_bounds = array<i64: 152, 64>}, {pipeline_mode = #tpu.pipeline_mode<synchronous>, transform_indices = @transform_1, window_bounds = array<i64: 64, 128>}, {pipeline_mode = #tpu.pipeline_mode<synchronous>, transform_indices = @transform_2, window_bounds = array<i64: 1, 128>}, {pipeline_mode = #tpu.pipeline_mode<synchronous>, transform_indices = @transform_3, window_bounds = array<i64: 128, 128>}, {pipeline_mode = #tpu.pipeline_mode<synchronous>, transform_indices = @transform_4, window_bounds = array<i64: 1, 128>}, {pipeline_mode = #tpu.pipeline_mode<synchronous>, transform_indices = @transform_5, window_bounds = array<i64: 128, 128>}, {pipeline_mode = #tpu.pipeline_mode<synchronous>, transform_indices = @transform_6, window_bounds = array<i64: 1, 128>}, {transform_indices = @transform_7, window_bounds = array<i64: 152, 128>}, {transform_indices = @transform_8, window_bounds = array<i64: 1, 1, 152>}]} {
    %c0 = arith.constant 0 : index
    %c0_0 = arith.constant 0 : index
    %0 = vector.load %arg1[%c0, %c0_0] : memref<152x64xf32, #tpu.memory_space<vmem>>, vector<152x64xf32>
    %1 = arith.truncf %0 : vector<152x64xf32> to vector<152x64xbf16>
    %c0_1 = arith.constant 0 : index
    %c0_2 = arith.constant 0 : index
    %2 = vector.load %arg2[%c0_1, %c0_2] : memref<64x128xbf16, #tpu.memory_space<vmem>>, vector<64x128xbf16>
    %cst = arith.constant dense<0.000000e+00> : vector<152x128xf32>
    %3 = tpu.matmul %1, %2, %cst {dimension_numbers = #tpu.dot_dimension_numbers<[1], [0], [0], [1], [0, 0, 1, 1], [], []>} : vector<152x64xbf16>, vector<64x128xbf16>, vector<152x128xf32> -> vector<152x128xf32>
    %c0_3 = arith.constant 0 : index
    %c0_4 = arith.constant 0 : index
    %4 = vector.load %arg3[%c0_3, %c0_4] : memref<1x128xf32, #tpu.memory_space<vmem>>, vector<1x128xf32>
    %5 = vector.broadcast %4 : vector<1x128xf32> to vector<152x128xf32>
    %6 = arith.addf %3, %5 : vector<152x128xf32>
    %7 = arith.mulf %6, %6 : vector<152x128xf32>
    %8 = arith.mulf %6, %7 : vector<152x128xf32>
    %cst_5 = arith.constant 4.471500e-02 : f32
    %9 = vector.broadcast %cst_5 : f32 to vector<152x128xf32>
    %10 = arith.mulf %9, %8 : vector<152x128xf32>
    %11 = arith.addf %6, %10 : vector<152x128xf32>
    %cst_6 = arith.constant 0.797884583 : f32
    %12 = vector.broadcast %cst_6 : f32 to vector<152x128xf32>
    %13 = arith.mulf %12, %11 : vector<152x128xf32>
    %14 = math.tanh %13 : vector<152x128xf32>
    %cst_7 = arith.constant 1.000000e+00 : f32
    %15 = vector.broadcast %cst_7 : f32 to vector<152x128xf32>
    %16 = arith.addf %15, %14 : vector<152x128xf32>
    %cst_8 = arith.constant 5.000000e-01 : f32
    %17 = vector.broadcast %cst_8 : f32 to vector<152x128xf32>
    %18 = arith.mulf %17, %16 : vector<152x128xf32>
    %19 = arith.mulf %6, %18 : vector<152x128xf32>
    %20 = arith.truncf %19 : vector<152x128xf32> to vector<152x128xbf16>
    %c0_9 = arith.constant 0 : index
    %c0_10 = arith.constant 0 : index
    %21 = vector.load %arg4[%c0_9, %c0_10] : memref<128x128xbf16, #tpu.memory_space<vmem>>, vector<128x128xbf16>
    %cst_11 = arith.constant dense<0.000000e+00> : vector<152x128xf32>
    %22 = tpu.matmul %20, %21, %cst_11 {dimension_numbers = #tpu.dot_dimension_numbers<[1], [0], [0], [1], [0, 0, 1, 1], [], []>} : vector<152x128xbf16>, vector<128x128xbf16>, vector<152x128xf32> -> vector<152x128xf32>
    %c0_12 = arith.constant 0 : index
    %c0_13 = arith.constant 0 : index
    %23 = vector.load %arg5[%c0_12, %c0_13] : memref<1x128xf32, #tpu.memory_space<vmem>>, vector<1x128xf32>
    %24 = vector.broadcast %23 : vector<1x128xf32> to vector<152x128xf32>
    %25 = arith.addf %22, %24 : vector<152x128xf32>
    %c0_14 = arith.constant 0 : index
    %c0_15 = arith.constant 0 : index
    %26 = vector.load %arg8[%c0_14, %c0_15] : memref<152x128xf32, #tpu.memory_space<vmem>>, vector<152x128xf32>
    tpu.vector_store %arg8[%c0_14, %c0_15], %25 {strides = array<i32>} : memref<152x128xf32, #tpu.memory_space<vmem>>, vector<152x128xf32>,
    %27 = arith.truncf %25 : vector<152x128xf32> to vector<152x128xbf16>
    %cst_16 = arith.constant 0x7F800000 : f32
    %28 = vector.broadcast %cst_16 : f32 to vector<152x1xf32>
    %c0_i32 = arith.constant 0 : i32
    %29 = vector.broadcast %c0_i32 : i32 to vector<152x1xi32>
    %c0_17 = arith.constant 0 : index
    %c0_18 = arith.constant 0 : index
    %30 = vector.load %arg6[%c0_17, %c0_18] : memref<128x128xbf16, #tpu.memory_space<vmem>>, vector<128x128xbf16>
    %cst_19 = arith.constant dense<0.000000e+00> : vector<152x128xf32>
    %31 = tpu.matmul %27, %30, %cst_19 {dimension_numbers = #tpu.dot_dimension_numbers<[1], [0], [0], [1], [0, 0, 1, 1], [], []>} : vector<152x128xbf16>, vector<128x128xbf16>, vector<152x128xf32> -> vector<152x128xf32>
    %c0_20 = arith.constant 0 : index
    %c0_21 = arith.constant 0 : index
    %32 = vector.load %arg7[%c0_20, %c0_21] : memref<1x128xf32, #tpu.memory_space<vmem>>, vector<1x128xf32>
    %33 = vector.broadcast %32 : vector<1x128xf32> to vector<152x128xf32>
    %34 = arith.subf %33, %31 : vector<152x128xf32>
    %cst_22 = arith.constant dense<0x7F800000> : vector<152xf32>
    %35 = vector.multi_reduction <minimumf>, %34, %cst_22 [1] : vector<152x128xf32> to vector<152xf32>
    %36 = vector.shape_cast %35 : vector<152xf32> to vector<152x1xf32>
    %37 = tpu.iota {dimensions = array<i32: 1>} : vector<1x128xi32>
    %c0_i32_23 = arith.constant 0 : i32
    %38 = vector.broadcast %c0_i32_23 : i32 to vector<1x128xi32>
    %39 = arith.addi %37, %38 : vector<1x128xi32>
    %40 = vector.broadcast %36 : vector<152x1xf32> to vector<152x128xf32>
    %41 = arith.cmpf ole, %34, %40 : vector<152x128xf32>
    %c128_i32 = arith.constant 128 : i32
    %42 = vector.shape_cast %39 : vector<1x128xi32> to vector<1x128xi32>
    %43 = vector.broadcast %42 : vector<1x128xi32> to vector<152x128xi32>
    %44 = vector.broadcast %c128_i32 : i32 to vector<152x128xi32>
    %45 = arith.select %41, %43, %44 : vector<152x128xi1>, vector<152x128xi32>
    %cst_24 = arith.constant dense<2147483647> : vector<152xi32>
    %46 = vector.multi_reduction <minsi>, %45, %cst_24 [1] : vector<152x128xi32> to vector<152xi32>
    %47 = vector.shape_cast %46 : vector<152xi32> to vector<152x1xi32>
    %48 = arith.cmpf olt, %36, %28 : vector<152x1xf32>
    %49 = arith.select %48, %47, %29 : vector<152x1xi1>, vector<152x1xi32>
    %50 = vector.shape_cast %49 : vector<152x1xi32> to vector<152xi32>
    %51 = vector.shape_cast %50 : vector<152xi32> to vector<1x1x152xi32>
    %c0_25 = arith.constant 0 : index
    %c0_26 = arith.constant 0 : index
    %c0_27 = arith.constant 0 : index
    %52 = vector.load %arg9[%c0_25, %c0_26, %c0_27] : memref<1x1x152xi32, #tpu.memory_space<vmem>>, vector<1x1x152xi32>
    tpu.vector_store %arg9[%c0_25, %c0_26, %c0_27], %51 {strides = array<i32>} : memref<1x1x152xi32, #tpu.memory_space<vmem>>, vector<1x1x152xi32>,
    return
  }
  func.func @transform_0(%arg0: i32) -> (i32, i32) {
    %c0_i32 = arith.constant 0 : i32
    %c0_i32_0 = arith.constant 0 : i32
    return %arg0, %c0_i32 : i32, i32
  }
  func.func @transform_1(%arg0: i32) -> (i32, i32) {
    %c0_i32 = arith.constant 0 : i32
    %c0_i32_0 = arith.constant 0 : i32
    %c0_i32_1 = arith.constant 0 : i32
    return %c0_i32, %c0_i32_0 : i32, i32
  }
  func.func @transform_2(%arg0: i32) -> (i32, i32) {
    %c0_i32 = arith.constant 0 : i32
    %c0_i32_0 = arith.constant 0 : i32
    %c0_i32_1 = arith.constant 0 : i32
    return %c0_i32, %c0_i32_0 : i32, i32
  }
  func.func @transform_3(%arg0: i32) -> (i32, i32) {
    %c0_i32 = arith.constant 0 : i32
    %c0_i32_0 = arith.constant 0 : i32
    %c0_i32_1 = arith.constant 0 : i32
    return %c0_i32, %c0_i32_0 : i32, i32
  }
  func.func @transform_4(%arg0: i32) -> (i32, i32) {
    %c0_i32 = arith.constant 0 : i32
    %c0_i32_0 = arith.constant 0 : i32
    %c0_i32_1 = arith.constant 0 : i32
    return %c0_i32, %c0_i32_0 : i32, i32
  }
  func.func @transform_5(%arg0: i32) -> (i32, i32) {
    %c0_i32 = arith.constant 0 : i32
    %c0_i32_0 = arith.constant 0 : i32
    %c0_i32_1 = arith.constant 0 : i32
    return %c0_i32, %c0_i32_0 : i32, i32
  }
  func.func @transform_6(%arg0: i32) -> (i32, i32) {
    %c0_i32 = arith.constant 0 : i32
    %c0_i32_0 = arith.constant 0 : i32
    %c0_i32_1 = arith.constant 0 : i32
    return %c0_i32, %c0_i32_0 : i32, i32
  }
  func.func @transform_7(%arg0: i32) -> (i32, i32) {
    %c0_i32 = arith.constant 0 : i32
    %c0_i32_0 = arith.constant 0 : i32
    return %arg0, %c0_i32 : i32, i32
  }
  func.func @transform_8(%arg0: i32) -> (i32, i32, i32) {
    %c0_i32 = arith.constant 0 : i32
    %c0_i32_0 = arith.constant 0 : i32
    %c0_i32_1 = arith.constant 0 : i32
    return %arg0, %c0_i32, %c0_i32_0 : i32, i32, i32
  }
}

</mosaic_0001>

<bundles_post_ra>
// kernel: tpu_custom_call.1
= control target key start
LH: loop header
LB: loop body
LE: loop exit
PB: predicated region body
PF: predicated region fallthrough
CT: control target
= control target key end

     0   :  { %14 = vsyncpa [#allocation3], 0  ;;  %s5281_s0 = inlined_call_operand.vmem [shape: f32[300,64], index: 0, kind: input, shape index: {}]   ;;  %s5282_s1 = inlined_call_operand.vmem [shape: bf16[64,128], index: 1, kind: input, shape index: {}]   ;;  %s5283_s2 = inlined_call_operand.vmem [shape: f32[1,128], index: 2, kind: input, shape index: {}]   ;;  %s5284_s3 = inlined_call_operand.vmem [shape: bf16[128,128], index: 3, kind: input, shape index: {}]   ;;  %s5285_s4 = inlined_call_operand.vmem [shape: f32[1,128], index: 4, kind: input, shape index: {}]   ;;  %s5286_s5 = inlined_call_operand.vmem [shape: bf16[128,128], index: 5, kind: input, shape index: {}]   ;;  %s5287_s6 = inlined_call_operand.vmem [shape: f32[1,128], index: 6, kind: input, shape index: {}]   ;;  %s5288_s7 = inlined_call_operand.hbm [shape: f32[300,128], index: 7, kind: output, shape index: {0}]   ;;  %s5289_s8 = inlined_call_operand.hbm [shape: s32[2,1,152], index: 8, kind: output, shape index: {1}]  }
   0x1   :  { %16 = vsyncpa [#allocation3 + $0x1], 0 }
   0x2   :  { %17 = vsyncpa [#allocation5], 0 }
   0x3   :  { %19 = vsyncpa [#allocation5 + $0x1], 0  ;;  %s3834_s27 = smov 0   ;;  %s3836_s28 = smov 0  }
   0x4   :  { %s3838_s29 = smov 0   ;;  %s3840_s30 = smov 0  }
   0x5 LB: > { %s3855_s9 = sadd.s32 4294967295, %s3781_s30   ;;  %s3373_s10 = sadd.s32 4294967294, %s3781_s30   ;;  %s3781_s30 = sphi %s3840_s30, %s5314_s30   ;;  %s3777_s29 = sphi %s3838_s29, %s5313_s29   ;;  %s3773_s28 = sphi %s3836_s28, %s5312_s28   ;;  %s3769_s27 = sphi %s3834_s27, %s5311_s27  }
   0x6   : > { %s3859_s11 = sadd.s32 1, %s3781_s30   ;;  %s184_s12 = sadd.s32 1, %s3777_s29 }
   0x7   : > { %s181_s13 = ssub.s32 %s3781_s30, %s3859_s11  ;;  %p194_p0 = scmp.ne.s32.totalorder %s3777_s29, %s3773_s28 }
   0x8   : > { %p182_p1 = scmp.eq.s32.totalorder %s181_s13, 0  ;;  %p195_p2 = scmp.eq.s32.totalorder %s3855_s9, 1 }
   0x9   : > { %p200_p3 = scmp.ne.s32.totalorder %s3773_s28, %s3769_s27  ;;  %p201_p4 = scmp.eq.s32.totalorder %s3373_s10, 1 }
   0xa   : > { %s3870_s14 = scalar_select %p182_p1, %s3777_s29, %s184_s12  }
   0xb   : > { %p3872_p5 = por %p195_p2, %p194_p0  ;;  %p3876_p6 = por %p201_p4, %p200_p3 }
   0xc   : > { %p3376_p7 = scmp.ge.s32.totalorder %s3781_s30, 1  ;;  %p272_p8 = scmp.lt.s32.totalorder %s3781_s30, 3 }
   0xe   : > { %p273_p9 = pnand %p3376_p7, %p272_p8 }
  0x10   : > { %276 = sbr.rel (%p273_p9) target bundleno = 1437 (0x59d), region = 48 }
  0x17   : > { %v3629_v0 = vld [vmem:[%s5282_s1] sm:$0xff]   ;;  %s311_s19 = smul.u32 19, %s3855_s9  ;;  %v3630_v1 = vld [vmem:[%s5282_s1 + $0x8] sm:$0xff]   ;;  %v3631_v2 = vld [vmem:[%s5282_s1 + $0x10] sm:$0xff]   ;;  %vm387_vm0 = vcmask 523264   ;;  %s4144_s25 = sand.u32 1, %s3773_s28  }
  0x18   : > { %3470 = vmatprep.subr.bf16.mxu0 %v3629_v0  ;;  %3570 = vmatprep.subr.bf16.mxu1 %v3629_v0  ;;  %v3632_v3 = vld [vmem:[%s5282_s1 + $0x18] sm:$0xff]   ;;  %v3633_v33 = vld [vmem:[%s5284_s3] sm:$0xff]   ;;  %v3634_v34 = vld [vmem:[%s5284_s3 + $0x8] sm:$0xff]   ;;  %s3578_s26 = smul.u32 152, %s4144_s25 }
  0x19   : > { %p312_p10 = scmp.lt.s32.totalorder %s311_s19, 37  ;;  %3471 = vmatpush3.bf16.msra.mxu0 %v3629_v0  ;;  %3574 = vmatpush3.bf16.msra.mxu1 %v3629_v0  ;;  %v3635_v35 = vld [vmem:[%s5284_s3 + $0x10] sm:$0xff]   ;;  %v3636_v36 = vld [vmem:[%s5284_s3 + $0x18] sm:$0xff]   ;;  %v3637_v37 = vld [vmem:[%s5284_s3 + $0x20] sm:$0xff]  }
  0x1a   : > { %3472 = vmatprep.subr.bf16.mxu0 %v3630_v1  ;;  %3571 = vmatprep.subr.bf16.mxu1 %v3630_v1  ;;  %v3638_v38 = vld [vmem:[%s5284_s3 + $0x28] sm:$0xff]   ;;  %v3639_v39 = vld [vmem:[%s5284_s3 + $0x30] sm:$0xff]   ;;  %v3640_v40 = vld [vmem:[%s5284_s3 + $0x38] sm:$0xff]   ;;  %s4154_s13 = scalar_lea.vmem [#allocation2], %s3578_s26 }
  0x1b   : > { %s5316_s19 = smov (!%p312_p10, %s311_s19), 37  ;;  %v3641_v41 = vld [vmem:[%s5286_s5] sm:$0xff]   ;;  %v3642_v42 = vld [vmem:[%s5286_s5 + $0x8] sm:$0xff]   ;;  %v3643_v43 = vld [vmem:[%s5286_s5 + $0x10] sm:$0xff]   ;;  %s3265_s20 = sshll.u32 %s4154_s13, 4  ;;  %s5151_s20 = int_to_ptr.vmem [resolvable:$true] %s3265_s20 }
  0x1c   : > { %s3378_s24 = sshll.u32 %s5316_s19, 3  ;;  %v3644_v44 = vld [vmem:[%s5286_s5 + $0x18] sm:$0xff]   ;;  %v3645_v45 = vld [vmem:[%s5286_s5 + $0x20] sm:$0xff]   ;;  %v3646_v46 = vld [vmem:[%s5286_s5 + $0x28] sm:$0xff]   ;;  %s3418_s19 = smul.u32 2432, %s3855_s9 }
  0x1d   : > { %3473 = vmatpush3.bf16.msra.mxu0 %v3630_v1  ;;  %s3895_s10 = scalar_lea.vmem %s5281_s0, %s3378_s24  ;;  %3575 = vmatpush3.bf16.msra.mxu1 %v3630_v1  ;;  %v3974_v47 = vld [vmem:[%s5283_s2] ss:$0 sm:$0xff]  ;;  %s3247_s24 = scalar_lea.sflag [#allocation3], %s4144_s25 }
  0x1e   : > { %3474 = vmatprep.subr.bf16.mxu0 %v3631_v2  ;;  %v319_v4 = vld [vmem:[%s3895_s10] sm:$0xff]  ;;  %v320_v5 = vld [vmem:[%s3895_s10 + $0x8] sm:$0xff]  ;;  %3572 = vmatprep.subr.bf16.mxu1 %v3631_v2  ;;  %v321_v8 = vld [vmem:[%s3895_s10 + $0x10] sm:$0xff]  ;;  %s5156_s23 = scalar_lea.hbm %s5288_s7, %s3418_s19  ;;  %s3687_s26 = scalar_lea.vmem %s5151_s20, 2432 }
  0x1f   : > { %v338_v6 = vpack.c.bf16 %v320_v5, %v319_v4  ;;  %v335_v7 = vld [vmem:[%s3895_s10 + $0x80] sm:$0xff]  ;;  %v322_v9 = vld [vmem:[%s3895_s10 + $0x18] sm:$0xff]  ;;  %v336_v10 = vld [vmem:[%s3895_s10 + $0x88] sm:$0xff]  ;;  %p3688_p11 = scmp.ne.s32.totalorder %s5151_s20, %s3687_s26 }
  0x20   : > { %v323_v11 = vld [vmem:[%s3895_s10 + $0x20] sm:$0xff]  ;;  %v324_v12 = vld [vmem:[%s3895_s10 + $0x28] sm:$0xff]  ;;  %v346_v13 = vpack.c.bf16 %v336_v10, %v335_v7  ;;  %v337_v14 = vld [vmem:[%s3895_s10 + $0x90] sm:$0xff]  ;;  %v339_v15 = vpack.c.bf16 %v322_v9, %v321_v8 }
  0x21   : > { %3475 = vmatpush3.bf16.msra.mxu0 %v3631_v2  ;;  %3478 = vmatprep.mubr.msk.bf16.mxu0 %vm387_vm0, %v338_v6  ;;  %v340_v16 = vpack.c.bf16 %v324_v12, %v323_v11  ;;  %v347_v17 = vpack.c.bf16 %v337_v14, %v337_v14  ;;  %v325_v18 = vld [vmem:[%s3895_s10 + $0x30] sm:$0xff]  ;;  %v326_v19 = vld [vmem:[%s3895_s10 + $0x38] sm:$0xff]  ;;  %v327_v20 = vld [vmem:[%s3895_s10 + $0x40] sm:$0xff]  ;;  %p3689_p12 = pnand %p3688_p11, %p3872_p5 }
  0x22   : > { %3476 = vmatprep.subr.bf16.mxu0 %v3632_v3  ;;  %3576 = vmatpush3.bf16.msra.mxu1 %v3631_v2  ;;  %v328_v21 = vld [vmem:[%s3895_s10 + $0x48] sm:$0xff]  ;;  %v341_v22 = vpack.c.bf16 %v326_v19, %v325_v18  ;;  %v329_v24 = vld [vmem:[%s3895_s10 + $0x50] sm:$0xff]  ;;  %v330_v25 = vld [vmem:[%s3895_s10 + $0x58] sm:$0xff] }
  0x23   : > { %3573 = vmatprep.subr.bf16.mxu1 %v3632_v3  ;;  %3494 = vmatprep.mubr.msk.bf16.mxu1 %vm387_vm0, %v346_v13  ;;  %v342_v23 = vpack.c.bf16 %v328_v21, %v327_v20  ;;  %v331_v26 = vld [vmem:[%s3895_s10 + $0x60] sm:$0xff]  ;;  %v332_v27 = vld [vmem:[%s3895_s10 + $0x68] sm:$0xff]  ;;  %v343_v28 = vpack.c.bf16 %v330_v25, %v329_v24  ;;  %v333_v30 = vld [vmem:[%s3895_s10 + $0x70] sm:$0xff]  ;;  %p3690_p13 = pneg %p3689_p12 }
  0x24   : > { %v344_v29 = vpack.c.bf16 %v332_v27, %v331_v26  ;;  %v334_v31 = vld [vmem:[%s3895_s10 + $0x78] sm:$0xff]  ;;  %s3785_s10 = smov [#allocation2]  }
  0x25   : > { %3477 = vmatpush3.bf16.msra.mxu0 %v3632_v3  ;;  %v345_v32 = vpack.c.bf16 %v334_v31, %v333_v30  ;;  %s3691_s12 = sshll.u32 %s3785_s10, 4  ;;  %s3692_s12 = int_to_ptr.vmem [resolvable:$false] %s3691_s12 }
  0x26   : > { %3577 = vmatpush3.bf16.msra.mxu1 %v3632_v3  ;;  %3534 = vmatprep.subr.bf16.mxu0 %v3641_v41  ;;  %p3694_p0 = scmp.lt.s32.totalorder %s5151_s20, %s3692_s12 }
  0x27   : > { %3498 = vmatprep.subr.bf16.mxu1 %v3633_v33 }
  0x28   : > { %3479 = vmatmul.mubr.msk.bf16.vlgmr.msra.gmra.mrb[0].mxu0 %vm387_vm0, %v339_v15 }
  0x29   : > { %3482 = vmatprep.mubr.msk.bf16.mxu0 %vm387_vm0, %v340_v16  ;;  %3495 = vmatmul.mubr.msk.bf16.vlgmr.msra.gmra.mrb[0].mxu1 %vm387_vm0, %v347_v17 }
  0x2a   : > { %3499 = vmatpush3.bf16.msra.mxu1 %v3633_v33  ;;  %3535 = vmatpush3.bf16.msra.mxu0 %v3641_v41 }
  0x2b   : > { %3500 = vmatprep.subr.bf16.mxu1 %v3634_v34  ;;  %3536 = vmatprep.subr.bf16.mxu0 %v3642_v42 }
  0x2e   : > { %3501 = vmatpush3.bf16.msra.mxu1 %v3634_v34  ;;  %3537 = vmatpush3.bf16.msra.mxu0 %v3642_v42 }
  0x2f   : > { %3502 = vmatprep.subr.bf16.mxu1 %v3635_v35  ;;  %3538 = vmatprep.subr.bf16.mxu0 %v3643_v43 }
  0x30   : > { %3483 = vmatmul.mubr.msk.bf16.gmra.mrb[4].mxu0 %vm387_vm0, %v341_v22 }
  0x31   : > { %3486 = vmatprep.mubr.msk.bf16.mxu0 %vm387_vm0, %v342_v23 }
  0x32   : > { %3503 = vmatpush3.bf16.msra.mxu1 %v3635_v35  ;;  %3539 = vmatpush3.bf16.msra.mxu0 %v3643_v43 }
  0x33   : > { %3504 = vmatprep.subr.bf16.mxu1 %v3636_v36  ;;  %3540 = vmatprep.subr.bf16.mxu0 %v3644_v44 }
  0x36   : > { %3505 = vmatpush3.bf16.msra.mxu1 %v3636_v36  ;;  %3541 = vmatpush3.bf16.msra.mxu0 %v3644_v44 }
  0x37   : > { %3506 = vmatprep.subr.bf16.mxu1 %v3637_v37  ;;  %3542 = vmatprep.subr.bf16.mxu0 %v3645_v45 }
  0x38   : > { %3487 = vmatmul.mubr.msk.bf16.gmra.mrb[8].mxu0 %vm387_vm0, %v343_v28 }
  0x39   : > { %3490 = vmatprep.mubr.msk.bf16.mxu0 %vm387_vm0, %v344_v29 }
  0x3a   : > { %3507 = vmatpush3.bf16.msra.mxu1 %v3637_v37  ;;  %3543 = vmatpush3.bf16.msra.mxu0 %v3645_v45 }
  0x3b   : > { %3508 = vmatprep.subr.bf16.mxu1 %v3638_v38  ;;  %3544 = vmatprep.subr.bf16.mxu0 %v3646_v46 }
  0x3e   : > { %3509 = vmatpush3.bf16.msra.mxu1 %v3638_v38  ;;  %3545 = vmatpush3.bf16.msra.mxu0 %v3646_v46 }
  0x3f   : > { %3510 = vmatprep.subr.bf16.mxu1 %v3639_v39 }
  0x40   : > { %3491 = vmatmul.mubr.msk.bf16.gmra.mrb[12].mxu0 %vm387_vm0, %v345_v32 }
  0x42   : > { %3511 = vmatpush3.bf16.msra.mxu1 %v3639_v39 }
  0x43   : > { %3512 = vmatprep.subr.bf16.mxu1 %v3640_v40 }
  0x46   : > { %3513 = vmatpush3.bf16.msra.mxu1 %v3640_v40 }
  0xfb   : > { %v3480_v48 = vpop.f32.mrb[0].mxu0 }
  0xfc   : > { %v3977_v49 = vadd.f32 %v3480_v48, %v3974_v47  ;;  %v452_v50 = vpop.f32.mrb[1].mxu0  ;;  %v3496_v51 = vpop.f32.mrb[0].mxu1 }
  0xfd   : > { %v3980_v52 = vadd.f32 %v3974_v47, %v452_v50  ;;  %v3481_v53 = vpop.f32.mrb[2].mxu0  ;;  %v3983_v54 = vadd.f32 %v3496_v51, %v3974_v47  ;;  %v516_v55 = vpop.f32.mrb[1].mxu1 }
  0xfe   : > { %v532_v56 = vmul.f32 %v3977_v49, %v3977_v49  ;;  %v3988_v57 = vadd.f32 %v3481_v53, %v3974_v47  ;;  %v455_v58 = vpop.f32.mrb[3].mxu0  ;;  %v3991_v59 = vadd.f32 %v3974_v47, %v516_v55  ;;  %v3497_v60 = vpop.f32.mrb[2].mxu1 }
  0xff   : > { %v530_v61 = vmul.f32 %v3980_v52, %v3980_v52  ;;  %v3996_v62 = vadd.f32 %v3974_v47, %v455_v58  ;;  %v548_v63 = vmul.f32 %v3983_v54, %v3983_v54  ;;  %v519_v0 = vpop.f32.mrb[3].mxu1 }
 0x100   : > { %v551_v1 = vmul.f32 %v532_v56, %v3977_v49  ;;  %v533_v2 = vmul.f32 %v3988_v57, %v3988_v57  ;;  %v546_v3 = vmul.f32 %v3991_v59, %v3991_v59  ;;  %v4013_v13 = vadd.f32 %v3974_v47, %v519_v0 }
 0x101   : > { %v549_v4 = vmul.f32 %v530_v61, %v3980_v52  ;;  %v531_v5 = vmul.f32 %v3996_v62, %v3996_v62  ;;  %v567_v6 = vmul.f32 %v548_v63, %v3983_v54 }
 0x102   : > { %v570_v7 = vmul.f32 0.044715, %v551_v1  ;;  %v552_v8 = vmul.f32 %v533_v2, %v3988_v57  ;;  %v565_v9 = vmul.f32 %v546_v3, %v3991_v59  ;;  %v547_v39 = vmul.f32 %v4013_v13, %v4013_v13 }
 0x103   : > { %v568_v10 = vmul.f32 0.044715, %v549_v4  ;;  %v550_v11 = vmul.f32 %v531_v5, %v3996_v62  ;;  %v3484_v12 = vpop.f32.mrb[4].mxu0  ;;  %v586_v18 = vmul.f32 0.044715, %v567_v6 }
 0x104   : > { %v589_v14 = vadd.f32 %v570_v7, %v3977_v49  ;;  %v571_v15 = vmul.f32 0.044715, %v552_v8  ;;  %v4017_v16 = vadd.f32 %v3484_v12, %v3974_v47  ;;  %v468_v17 = vpop.f32.mrb[5].mxu0  ;;  %v584_v23 = vmul.f32 0.044715, %v565_v9 }
 0x105   : > { %v587_v19 = vadd.f32 %v568_v10, %v3980_v52  ;;  %v569_v20 = vmul.f32 0.044715, %v550_v11  ;;  %v4021_v21 = vadd.f32 %v3974_v47, %v468_v17  ;;  %v3485_v22 = vpop.f32.mrb[6].mxu0  ;;  %v4045_v42 = vadd.f32 %v586_v18, %v3983_v54 }
 0x106   : > { %v608_v24 = vmul.f32 0.7978846, %v589_v14  ;;  %v590_v25 = vadd.f32 %v571_v15, %v3988_v57  ;;  %v536_v26 = vmul.f32 %v4017_v16, %v4017_v16  ;;  %v4027_v27 = vadd.f32 %v3485_v22, %v3974_v47  ;;  %v471_v28 = vpop.f32.mrb[7].mxu0 }
 0x107   : > { %v606_v29 = vmul.f32 0.7978846, %v587_v19  ;;  %v588_v30 = vadd.f32 %v569_v20, %v3996_v62  ;;  %v534_v31 = vmul.f32 %v4021_v21, %v4021_v21  ;;  %v4033_v32 = vadd.f32 %v3974_v47, %v471_v28 }
 0x108   : > { %3649 = vtanh.f32 %v608_v24  ;;  %v609_v33 = vmul.f32 0.7978846, %v590_v25  ;;  %v555_v34 = vmul.f32 %v536_v26, %v4017_v16  ;;  %v537_v35 = vmul.f32 %v4027_v27, %v4027_v27 }
 0x109   : > { %v607_v36 = vmul.f32 0.7978846, %v588_v30  ;;  %v553_v37 = vmul.f32 %v534_v31, %v4021_v21  ;;  %v535_v38 = vmul.f32 %v4033_v32, %v4033_v32  ;;  %v603_v45 = vadd.f32 %v584_v23, %v3991_v59 }
 0x10a   : > { %3651 = vtanh.f32 %v609_v33  ;;  %v574_v40 = vmul.f32 0.044715, %v555_v34  ;;  %v556_v41 = vmul.f32 %v537_v35, %v4027_v27  ;;  %v566_v60 = vmul.f32 %v547_v39, %v4013_v13 }
 0x10b   : > { %3653 = vtanh.f32 %v606_v29  ;;  %v572_v43 = vmul.f32 0.044715, %v553_v37  ;;  %v554_v44 = vmul.f32 %v535_v38, %v4033_v32  ;;  %v3488_v46 = vpop.f32.mrb[8].mxu0  ;;  %v622_v58 = vmul.f32 0.7978846, %v603_v45 }
 0x10c   : > { %3655 = vtanh.f32 %v607_v36  ;;  %v593_v48 = vadd.f32 %v574_v40, %v4017_v16  ;;  %v575_v50 = vmul.f32 0.044715, %v556_v41  ;;  %v4051_v51 = vadd.f32 %v3488_v46, %v3974_v47  ;;  %v484_v53 = vpop.f32.mrb[9].mxu0 }
 0x10d   : > { %v591_v55 = vadd.f32 %v572_v43, %v4021_v21  ;;  %v573_v56 = vmul.f32 0.044715, %v554_v44  ;;  %v3489_v61 = vpop.f32.mrb[10].mxu0  ;;  %v4059_v2 = vadd.f32 %v3974_v47, %v484_v53  ;;  %3657 = vtanh.f32 %v622_v58 }
 0x10e   : > { %v612_v63 = vmul.f32 0.7978846, %v593_v48  ;;  %v594_v0 = vadd.f32 %v575_v50, %v4027_v27  ;;  %v540_v1 = vmul.f32 %v4051_v51, %v4051_v51  ;;  %v487_v3 = vpop.f32.mrb[11].mxu0  ;;  %v585_v6 = vmul.f32 0.044715, %v566_v60 }
 0x10f   : > { %v610_v4 = vmul.f32 0.7978846, %v591_v55  ;;  %v592_v5 = vadd.f32 %v573_v56, %v4033_v32  ;;  %v538_v9 = vmul.f32 %v4059_v2, %v4059_v2  ;;  %v4067_v12 = vadd.f32 %v3489_v61, %v3974_v47 }
 0x110   : > { %3659 = vtanh.f32 %v612_v63  ;;  %v613_v7 = vmul.f32 0.7978846, %v594_v0  ;;  %v559_v8 = vmul.f32 %v540_v1, %v4051_v51  ;;  %v604_v11 = vadd.f32 %v585_v6, %v4013_v13 }
 0x111   : > { %3661 = vtanh.f32 %v610_v4  ;;  %v611_v10 = vmul.f32 0.7978846, %v592_v5  ;;  %v557_v17 = vmul.f32 %v538_v9, %v4059_v2  ;;  %v4071_v18 = vadd.f32 %v3974_v47, %v487_v3 }
 0x112   : > { %v3650_v14 = vpop.eup %3649  ;;  %3663 = vtanh.f32 %v613_v7  ;;  %v578_v15 = vmul.f32 0.044715, %v559_v8  ;;  %v623_v20 = vmul.f32 0.7978846, %v604_v11  ;;  %v541_v22 = vmul.f32 %v4067_v12, %v4067_v12 }
 0x113   : > { %v646_v19 = vadd.f32 1.0, %v3650_v14  ;;  %3665 = vtanh.f32 %v611_v10  ;;  %v3492_v23 = vpop.f32.mrb[12].mxu0  ;;  %v576_v26 = vmul.f32 0.044715, %v557_v17  ;;  %v539_v28 = vmul.f32 %v4071_v18, %v4071_v18 }
 0x114   : > { %v3652_v24 = vpop.eup %3651  ;;  %v597_v25 = vadd.f32 %v578_v15, %v4051_v51  ;;  %v4079_v29 = vadd.f32 %v3492_v23, %v3974_v47  ;;  %v500_v30 = vpop.f32.mrb[13].mxu0  ;;  %3667 = vtanh.f32 %v623_v20  ;;  %v560_v35 = vmul.f32 %v541_v22, %v4067_v12 }
 0x115   : > { %v3654_v31 = vpop.eup %3653  ;;  %v665_v33 = vmul.f32 0.5, %v646_v19  ;;  %v647_v34 = vadd.f32 1.0, %v3652_v24  ;;  %v3493_v36 = vpop.f32.mrb[14].mxu0  ;;  %v595_v39 = vadd.f32 %v576_v26, %v4059_v2  ;;  %v558_v40 = vmul.f32 %v539_v28, %v4071_v18 }
 0x116   : > { %v3656_v37 = vpop.eup %3655  ;;  %v616_v38 = vmul.f32 0.7978846, %v597_v25  ;;  %v544_v41 = vmul.f32 %v4079_v29, %v4079_v29  ;;  %v503_v43 = vpop.f32.mrb[15].mxu0  ;;  %v579_v46 = vmul.f32 0.044715, %v560_v35  ;;  %v4090_v48 = vadd.f32 %v3974_v47, %v500_v30 }
 0x117   : > { %v4087_v44 = vmul.f32 %v665_v33, %v3977_v49  ;;  %v666_v45 = vmul.f32 0.5, %v647_v34  ;;  %v614_v50 = vmul.f32 0.7978846, %v595_v39  ;;  %v577_v53 = vmul.f32 0.044715, %v558_v40  ;;  %v4093_v56 = vpop.eup %3657 }
 0x118   : > { %3669 = vtanh.f32 %v616_v38  ;;  %v563_v55 = vmul.f32 %v544_v41, %v4079_v29  ;;  %v598_v60 = vadd.f32 %v579_v46, %v4067_v12  ;;  %v542_v49 = vmul.f32 %v4090_v48, %v4090_v48 }
 0x119   : > { %v685_v58 = vmul.f32 %v666_v45, %v3988_v57  ;;  %v4100_v61 = vadd.f32 %v3493_v36, %v3974_v47  ;;  %3671 = vtanh.f32 %v614_v50  ;;  %v596_v0 = vadd.f32 %v577_v53, %v4071_v18 }
 0x11a   : > { %v3660_v63 = vpop.eup %3659  ;;  %v582_v1 = vmul.f32 0.044715, %v563_v55  ;;  %v4104_v3 = vadd.f32 %v3974_v47, %v503_v43  ;;  %v617_v5 = vmul.f32 0.7978846, %v598_v60  ;;  %v561_v57 = vmul.f32 %v542_v49, %v4090_v48 }
 0x11b   : > { %v3662_v4 = vpop.eup %3661  ;;  %v545_v6 = vmul.f32 %v4100_v61, %v4100_v61  ;;  %v644_v7 = vadd.f32 1.0, %v3654_v31  ;;  %v615_v9 = vmul.f32 0.7978846, %v596_v0  ;;  %v645_v14 = vadd.f32 1.0, %v3656_v37 }
 0x11c   : > { %v3664_v8 = vpop.eup %3663  ;;  %v601_v10 = vadd.f32 %v582_v1, %v4079_v29  ;;  %v543_v11 = vmul.f32 %v4104_v3, %v4104_v3  ;;  %3673 = vtanh.f32 %v617_v5  ;;  %v580_v47 = vmul.f32 0.044715, %v561_v57 }
 0x11d   : > { %v3666_v15 = vpop.eup %3665  ;;  %v564_v17 = vmul.f32 %v545_v6, %v4100_v61  ;;  %v663_v19 = vmul.f32 0.5, %v644_v7  ;;  %3675 = vtanh.f32 %v615_v9  ;;  %v664_v23 = vmul.f32 0.5, %v645_v14 }
 0x11e   : > { %v620_v20 = vmul.f32 0.7978846, %v601_v10  ;;  %v562_v22 = vmul.f32 %v543_v11, %v4104_v3  ;;  %v3668_v24 = vpop.eup %3667  ;;  %v599_v25 = vadd.f32 %v580_v47, %v4090_v48  ;;  %v702_v30 = vpack.c.bf16 %v685_v58, %v4087_v44 }
 0x11f   : > { %v583_v26 = vmul.f32 0.044715, %v564_v17  ;;  %v682_v28 = vmul.f32 %v663_v19, %v3980_v52  ;;  %v683_v33 = vmul.f32 %v664_v23, %v3996_v62  ;;  %v648_v34 = vadd.f32 1.0, %v3662_v4 }
 0x120   : > { %3677 = vtanh.f32 %v620_v20  ;;  %v581_v31 = vmul.f32 0.044715, %v562_v22  ;;  %v618_v35 = vmul.f32 0.7978846, %v599_v25  ;;  %v649_v37 = vadd.f32 1.0, %v3666_v15 }
 0x121   : > { %v602_v36 = vadd.f32 %v583_v26, %v4100_v61  ;;  %v650_v38 = vadd.f32 1.0, %v3660_v63  ;;  %v701_v41 = vpack.c.bf16 %v683_v33, %v682_v28  ;;  %v667_v43 = vmul.f32 0.5, %v648_v34 }
 0x122   : > { %v3670_v39 = vpop.eup %3669  ;;  %v600_v40 = vadd.f32 %v581_v31, %v4104_v3  ;;  %v651_v45 = vadd.f32 1.0, %v3664_v8  ;;  %3679 = vtanh.f32 %v618_v35  ;;  %v668_v46 = vmul.f32 0.5, %v649_v37 }
 0x123   : > { %v621_v52 = vmul.f32 0.7978846, %v602_v36  ;;  %v669_v44 = vmul.f32 0.5, %v650_v38  ;;  %v3672_v50 = vpop.eup %3671  ;;  %v624_v53 = vmul.f32 0.7978846, %v4045_v42  ;;  %3514 = vmatprep.mubr.bf16.mxu1 %v701_v41  ;;  %v654_v58 = vadd.f32 1.0, %v3670_v39 }
 0x124   : > { %v619_v62 = vmul.f32 0.7978846, %v600_v40  ;;  %v670_v55 = vmul.f32 0.5, %v651_v45  ;;  %3515 = vmatmul.mubr.bf16.vlgmr.msra.gmra.mrb[4].mxu1 %v702_v30  ;;  %v686_v60 = vmul.f32 %v667_v43, %v4021_v21  ;;  %v687_v49 = vmul.f32 %v668_v46, %v4033_v32 }
 0x125   : > { %3681 = vtanh.f32 %v621_v52  ;;  %v652_v63 = vadd.f32 1.0, %v3672_v50  ;;  %v688_v0 = vmul.f32 %v669_v44, %v4017_v16  ;;  %v660_v4 = vadd.f32 1.0, %v4093_v56 }
 0x126   : > { %3683 = vtanh.f32 %v619_v62  ;;  %v689_v1 = vmul.f32 %v670_v55, %v4027_v27  ;;  %v3674_v5 = vpop.eup %3673  ;;  %v703_v42 = vpack.c.bf16 %v687_v49, %v686_v60  ;;  %v661_v57 = vadd.f32 1.0, %v3668_v24 }
 0x127   : > { %v3676_v6 = vpop.eup %3675  ;;  %v655_v8 = vadd.f32 1.0, %v3674_v5  ;;  %v673_v9 = vmul.f32 0.5, %v654_v58  ;;  %v679_v10 = vmul.f32 0.5, %v660_v4  ;;  %v671_v11 = vmul.f32 0.5, %v652_v63 }
 0x128   : > { %v704_v7 = vpack.c.bf16 %v689_v1, %v688_v0  ;;  %3518 = vmatprep.mubr.bf16.mxu1 %v703_v42  ;;  %v653_v21 = vadd.f32 1.0, %v3676_v6  ;;  %v680_v32 = vmul.f32 0.5, %v661_v57  ;;  %3685 = vtanh.f32 %v624_v53 }
 0x129   : > { %v674_v15 = vmul.f32 0.5, %v655_v8  ;;  %v698_v16 = vmul.f32 %v679_v10, %v3991_v59  ;;  %v692_v47 = vmul.f32 %v673_v9, %v4051_v51  ;;  %v690_v22 = vmul.f32 %v671_v11, %v4059_v2 }
 0x12a   : > { %v3678_v14 = vpop.eup %3677  ;;  %v672_v27 = vmul.f32 0.5, %v653_v21  ;;  %v699_v56 = vmul.f32 %v680_v32, %v4013_v13 }
 0x12b   : > { %v693_v17 = vmul.f32 %v674_v15, %v4067_v12  ;;  %v658_v19 = vadd.f32 1.0, %v3678_v14 }
 0x12c   : > { %v3680_v20 = vpop.eup %3679  ;;  %3519 = vmatmul.mubr.bf16.gmra.mrb[8].mxu1 %v704_v7  ;;  %v691_v23 = vmul.f32 %v672_v27, %v4071_v18  ;;  %v709_v24 = vpack.c.bf16 %v699_v56, %v698_v16 }
 0x12d   : > { %v706_v25 = vpack.c.bf16 %v693_v17, %v692_v47  ;;  %v656_v26 = vadd.f32 1.0, %v3680_v20  ;;  %v677_v33 = vmul.f32 0.5, %v658_v19 }
 0x12e   : > { %v705_v30 = vpack.c.bf16 %v691_v23, %v690_v22 }
 0x12f   : > { %v3682_v28 = vpop.eup %3681  ;;  %v675_v51 = vmul.f32 0.5, %v656_v26  ;;  %v696_v36 = vmul.f32 %v677_v33, %v4079_v29  ;;  %v3647_v29 = vld [vmem:[%s5286_s5 + $0x30] sm:$0xff]  }
 0x130   : > { %v3684_v59 = vpop.eup %3683  ;;  %v659_v31 = vadd.f32 1.0, %v3682_v28  ;;  %3522 = vmatprep.mubr.bf16.mxu1 %v705_v30  ;;  %3546 = vmatprep.subr.bf16.mxu0 %v3647_v29 }
 0x131   : > { %v657_v13 = vadd.f32 1.0, %v3684_v59  ;;  %v694_v18 = vmul.f32 %v675_v51, %v4090_v48  ;;  %3547 = vmatpush3.bf16.msra.mxu0 %v3647_v29  ;;  %v3648_v48 = vld [vmem:[%s5286_s5 + $0x38] sm:$0xff]  }
 0x132   : > { %v678_v34 = vmul.f32 0.5, %v659_v31  ;;  %v3686_v35 = vpop.eup %3685  ;;  %3548 = vmatprep.subr.bf16.mxu0 %v3648_v48 }
 0x133   : > { %v676_v12 = vmul.f32 0.5, %v657_v13  ;;  %v662_v40 = vadd.f32 1.0, %v3686_v35 }
 0x134   : > { %v697_v2 = vmul.f32 %v678_v34, %v4100_v61  ;;  %3523 = vmatmul.mubr.bf16.gmra.mrb[12].mxu1 %v706_v25 }
 0x135   : > { %v695_v37 = vmul.f32 %v676_v12, %v4104_v3  ;;  %v681_v41 = vmul.f32 0.5, %v662_v40  ;;  %3549 = vmatpush3.bf16.msra.mxu0 %v3648_v48  ;;  %v3411_v12 = vld [vmem:[%s5287_s6] ss:$0 sm:$0xff] }
 0x136   : > { %v708_v38 = vpack.c.bf16 %v697_v2, %v696_v36 }
 0x137   : > { %v707_v39 = vpack.c.bf16 %v695_v37, %v694_v18  ;;  %v700_v43 = vmul.f32 %v681_v41, %v3983_v54  ;;  %v4150_v54 = vld [vmem:[%s5285_s4] ss:$0 sm:$0xff] }
 0x139   : > { %3526 = vmatprep.mubr.bf16.mxu1 %v707_v39  ;;  %v710_v45 = vpack.c.bf16 %v700_v43, %v700_v43 }
 0x13c   : > { %3527 = vmatmul.mubr.bf16.gmra.mrb[16].mxu1 %v708_v38 }
 0x13d   : > { %3530 = vmatprep.mubr.bf16.mxu1 %v709_v24 }
 0x144   : > { %3531 = vmatmul.mubr.bf16.gmra.mrb[20].mxu1 %v710_v45 }
 0x1f7   : > { %v3516_v61 = vpop.f32.mrb[4].mxu1 }
 0x1f8   : > { %v825_v3 = vadd.f32 %v3516_v61, %v4150_v54  ;;  %v816_v52 = vpop.f32.mrb[5].mxu1 }
 0x1f9   : > { %v817_v46 = vadd.f32 %v4150_v54, %v816_v52  ;;  %v3517_v44 = vpop.f32.mrb[6].mxu1 }
 0x1fa   : > { %896 = vst [vmem:[%s4154_s13 + $0x10] sm:$0xff] %v825_v3  ;;  %v828_v50 = vadd.f32 %v3517_v44, %v4150_v54  ;;  %v819_v53 = vpop.f32.mrb[7].mxu1 }
 0x1fb   : > { %894 = vst [vmem:[%s4154_s13] sm:$0xff] %v817_v46  ;;  %v820_v62 = vadd.f32 %v4150_v54, %v819_v53 }
 0x1fc   : > { %897 = vst [vmem:[%s4154_s13 + $0x18] sm:$0xff] %v828_v50  ;;  %v914_v55 = vpack.c.bf16 %v828_v50, %v825_v3 }
 0x1fd   : > { %895 = vst [vmem:[%s4154_s13 + $0x8] sm:$0xff] %v820_v62  ;;  %v913_v58 = vpack.c.bf16 %v820_v62, %v817_v46 }
 0x1ff   : > { %v3520_v60 = vpop.f32.mrb[8].mxu1  ;;  %3550 = vmatprep.mubr.bf16.mxu0 %v913_v58 }
 0x200   : > { %v841_v49 = vadd.f32 %v3520_v60, %v4150_v54  ;;  %v832_v63 = vpop.f32.mrb[9].mxu1  ;;  %3551 = vmatmul.mubr.bf16.vlgmr.msra.gmra.mrb[16].mxu0 %v914_v55 }
 0x201   : > { %v833_v0 = vadd.f32 %v4150_v54, %v832_v63  ;;  %v3521_v1 = vpop.f32.mrb[10].mxu1 }
 0x202   : > { %900 = vst [vmem:[%s4154_s13 + $0x30] sm:$0xff] %v841_v49  ;;  %v844_v4 = vadd.f32 %v3521_v1, %v4150_v54  ;;  %v835_v5 = vpop.f32.mrb[11].mxu1 }
 0x203   : > { %898 = vst [vmem:[%s4154_s13 + $0x20] sm:$0xff] %v833_v0  ;;  %v836_v42 = vadd.f32 %v4150_v54, %v835_v5 }
 0x204   : > { %901 = vst [vmem:[%s4154_s13 + $0x38] sm:$0xff] %v844_v4  ;;  %v916_v57 = vpack.c.bf16 %v844_v4, %v841_v49 }
 0x205   : > { %899 = vst [vmem:[%s4154_s13 + $0x28] sm:$0xff] %v836_v42  ;;  %v915_v6 = vpack.c.bf16 %v836_v42, %v833_v0 }
 0x207   : > { %v3524_v7 = vpop.f32.mrb[12].mxu1  ;;  %3554 = vmatprep.mubr.bf16.mxu0 %v915_v6 }
 0x208   : > { %v857_v8 = vadd.f32 %v3524_v7, %v4150_v54  ;;  %v848_v9 = vpop.f32.mrb[13].mxu1  ;;  %3555 = vmatmul.mubr.bf16.gmra.mrb[20].mxu0 %v916_v57 }
 0x209   : > { %v849_v10 = vadd.f32 %v4150_v54, %v848_v9  ;;  %v3525_v21 = vpop.f32.mrb[14].mxu1 }
 0x20a   : > { %904 = vst [vmem:[%s4154_s13 + $0x50] sm:$0xff] %v857_v8  ;;  %v860_v11 = vadd.f32 %v3525_v21, %v4150_v54  ;;  %v851_v32 = vpop.f32.mrb[15].mxu1 }
 0x20b   : > { %902 = vst [vmem:[%s4154_s13 + $0x40] sm:$0xff] %v849_v10  ;;  %v852_v14 = vadd.f32 %v4150_v54, %v851_v32 }
 0x20c   : > { %905 = vst [vmem:[%s4154_s13 + $0x58] sm:$0xff] %v860_v11  ;;  %v918_v15 = vpack.c.bf16 %v860_v11, %v857_v8  ;;  %v5290_v11 = vlaneseq }
 0x20d   : > { %903 = vst [vmem:[%s4154_s13 + $0x48] sm:$0xff] %v852_v14  ;;  %v917_v16 = vpack.c.bf16 %v852_v14, %v849_v10 }
 0x20e   : > { %v4253_v32 = vand.u32 127, %v5290_v11 }
 0x20f   : > { %v3528_v27 = vpop.f32.mrb[16].mxu1  ;;  %3558 = vmatprep.mubr.bf16.mxu0 %v917_v16 }
 0x210   : > { %v873_v56 = vadd.f32 %v3528_v27, %v4150_v54  ;;  %v864_v47 = vpop.f32.mrb[17].mxu1  ;;  %3559 = vmatmul.mubr.bf16.gmra.mrb[24].mxu0 %v918_v15  ;;  %5302 = vst [vmem:[#allocation8_spill] sm:$0xff] %v4253_v32 }
 0x211   : > { %v865_v17 = vadd.f32 %v4150_v54, %v864_v47  ;;  %v3529_v19 = vpop.f32.mrb[18].mxu1 }
 0x212   : > { %908 = vst [vmem:[%s4154_s13 + $0x70] sm:$0xff] %v873_v56  ;;  %v876_v20 = vadd.f32 %v3529_v19, %v4150_v54  ;;  %v867_v22 = vpop.f32.mrb[19].mxu1 }
 0x213   : > { %906 = vst [vmem:[%s4154_s13 + $0x60] sm:$0xff] %v865_v17  ;;  %v868_v23 = vadd.f32 %v4150_v54, %v867_v22 }
 0x214   : > { %909 = vst [vmem:[%s4154_s13 + $0x78] sm:$0xff] %v876_v20  ;;  %v920_v24 = vpack.c.bf16 %v876_v20, %v873_v56 }
 0x215   : > { %907 = vst [vmem:[%s4154_s13 + $0x68] sm:$0xff] %v868_v23  ;;  %v919_v25 = vpack.c.bf16 %v868_v23, %v865_v17 }
 0x217   : > { %v3532_v26 = vpop.f32.mrb[20].mxu1  ;;  %3562 = vmatprep.mubr.bf16.mxu0 %v919_v25 }
 0x218   : > { %v889_v28 = vadd.f32 %v3532_v26, %v4150_v54  ;;  %v880_v30 = vpop.f32.mrb[21].mxu1  ;;  %3563 = vmatmul.mubr.bf16.gmra.mrb[28].mxu0 %v920_v24 }
 0x219   : > { %v881_v59 = vadd.f32 %v4150_v54, %v880_v30  ;;  %v3533_v31 = vpop.f32.mrb[22].mxu1 }
 0x21a   : > { %912 = vst [vmem:[%s4154_s13 + $0x90] sm:$0xff] %v889_v28  ;;  %v883_v33 = vpop.f32.mrb[23].mxu1  ;;  %v922_v34 = vpack.c.bf16 %v889_v28, %v889_v28 }
 0x21b   : > { %910 = vst [vmem:[%s4154_s13 + $0x80] sm:$0xff] %v881_v59  ;;  %v884_v13 = vadd.f32 %v4150_v54, %v883_v33 }
 0x21d   : > { %911 = vst [vmem:[%s4154_s13 + $0x88] sm:$0xff] %v884_v13  ;;  %v921_v51 = vpack.c.bf16 %v884_v13, %v881_v59  ;;  %s3693_s13 = scalar_lea.vmem %s3692_s12, 4864 }
 0x21e   : > { %p3695_p1 = scmp.lt.s32.totalorder %s3693_s13, %s3687_s26 }
 0x21f   : > { %3566 = vmatprep.mubr.bf16.mxu0 %v921_v51 }
 0x220   : > { %3567 = vmatmul.mubr.bf16.gmra.mrb[32].mxu0 %v922_v34  ;;  %p3696_p2 = por %p3695_p1, %p3694_p0 }
 0x222   : > { %p3697_p3 = pnand %p3696_p2, %p3690_p13 }
 0x2d3   : > { %v3552_v35 = vpop.f32.mrb[16].mxu0 }
 0x2d4   : > { %v4195_v36 = vsub.f32 %v3411_v12, %v3552_v35  ;;  %v1021_v2 = vpop.f32.mrb[17].mxu0 }
 0x2d5   : > { %v4197_v18 = vsub.f32 %v3411_v12, %v1021_v2  ;;  %v3553_v37 = vpop.f32.mrb[18].mxu0 }
 0x2d6   : > { %1129 = vmin.xlane.f32.xlu1 %v4195_v36  ;;  %v1024_v38 = vpop.f32.mrb[19].mxu0  ;;  %v4201_v39 = vsub.f32 %v3411_v12, %v3553_v37 }
 0x2d7   : > { %1125 = vmin.xlane.f32.xlu0 %v4197_v18  ;;  %v4203_v40 = vsub.f32 %v3411_v12, %v1024_v38 }
 0x2da   : > { %1131 = vmin.xlane.f32.xlu1 %v4201_v39 }
 0x2db   : > { %1127 = vmin.xlane.f32.xlu0 %v4203_v40  ;;  %v3556_v41 = vpop.f32.mrb[20].mxu0 }
 0x2dc   : > { %v4207_v43 = vsub.f32 %v3411_v12, %v3556_v41  ;;  %v1037_v45 = vpop.f32.mrb[21].mxu0 }
 0x2dd   : > { %v3557_v29 = vpop.f32.mrb[22].mxu0  ;;  %v4213_v61 = vsub.f32 %v3411_v12, %v1037_v45 }
 0x2de   : > { %v4209_v48 = vsub.f32 %v3411_v12, %v3557_v29  ;;  %v1040_v54 = vpop.f32.mrb[23].mxu0 }
 0x2df   : > { %1137 = vmin.xlane.f32.xlu0 %v4207_v43  ;;  %v4215_v3 = vsub.f32 %v3411_v12, %v1040_v54 }
 0x2e0   : > { %1139 = vmin.xlane.f32.xlu1 %v4209_v48 }
 0x2e3   : > { %1133 = vmin.xlane.f32.xlu0 %v4213_v61  ;;  %v3560_v52 = vpop.f32.mrb[24].mxu0 }
 0x2e4   : > { %v4218_v46 = vsub.f32 %v3411_v12, %v3560_v52  ;;  %1135 = vmin.xlane.f32.xlu1 %v4215_v3  ;;  %v1053_v44 = vpop.f32.mrb[25].mxu0 }
 0x2e5   : > { %v3561_v50 = vpop.f32.mrb[26].mxu0  ;;  %v4225_v55 = vsub.f32 %v3411_v12, %v1053_v44 }
 0x2e6   : > { %v4221_v53 = vsub.f32 %v3411_v12, %v3561_v50  ;;  %v1056_v62 = vpop.f32.mrb[27].mxu0 }
 0x2e7   : > { %1145 = vmin.xlane.f32.xlu0 %v4218_v46  ;;  %v4227_v58 = vsub.f32 %v3411_v12, %v1056_v62 }
 0x2e8   : > { %1147 = vmin.xlane.f32.xlu1 %v4221_v53 }
 0x2eb   : > { %1141 = vmin.xlane.f32.xlu0 %v4225_v55  ;;  %v3564_v60 = vpop.f32.mrb[28].mxu0 }
 0x2ec   : > { %v4230_v49 = vsub.f32 %v3411_v12, %v3564_v60  ;;  %1143 = vmin.xlane.f32.xlu1 %v4227_v58  ;;  %v1069_v63 = vpop.f32.mrb[29].mxu0 }
 0x2ed   : > { %v3565_v0 = vpop.f32.mrb[30].mxu0  ;;  %v4236_v5 = vsub.f32 %v3411_v12, %v1069_v63 }
 0x2ee   : > { %v1072_v1 = vpop.f32.mrb[31].mxu0  ;;  %v4245_v10 = vsub.f32 %v3411_v12, %v3565_v0 }
 0x2ef   : > { %v4233_v4 = vsub.f32 %v3411_v12, %v1072_v1  ;;  %1153 = vmin.xlane.f32.xlu0 %v4230_v49 }
 0x2f1   : > { %1151 = vmin.xlane.f32.xlu1 %v4233_v4 }
 0x2f3   : > { %1149 = vmin.xlane.f32.xlu0 %v4236_v5  ;;  %v3568_v42 = vpop.f32.mrb[32].mxu0 }
 0x2f4   : > { %v1085_v57 = vpop.f32.mrb[33].mxu0  ;;  %v4248_v21 = vsub.f32 %v3411_v12, %v3568_v42 }
 0x2f5   : > { %v4240_v6 = vsub.f32 %v3411_v12, %v1085_v57  ;;  %v3569_v7 = vpop.f32.mrb[34].mxu0 }
 0x2f6   : > { %v1088_v8 = vpop.f32.mrb[35].mxu0 }
 0x2f7   : > { %v4242_v9 = vsub.f32 %v3411_v12, %v1088_v8  ;;  %1157 = vmin.xlane.f32.xlu1 %v4240_v6 }
 0x2f9   : > { %1159 = vmin.xlane.f32.xlu0 %v4242_v9 }
 0x2fb   : > { %1155 = vmin.xlane.f32.xlu1 %v4245_v10 }
 0x2fd   : > { %1161 = vmin.xlane.f32.xlu0 %v4248_v21 }
 0x363   : > { %v4255_v14 = vpop.xlane.xlu1 %1129 }
 0x364   : > { %vm1167_vm1 = vcmp.le.f32.partialorder %v4195_v36, %v4255_v14  ;;  %v4259_v15 = vpop.xlane.xlu0 %1125 }
 0x365   : > { %v4262_v16 = vsel %vm1167_vm1, %v4253_v32, 128  ;;  %vm1165_vm2 = vcmp.le.f32.partialorder %v4197_v18, %v4259_v15 }
 0x366   : > { %v4267_v27 = vsel %vm1165_vm2, %v4253_v32, 128  ;;  %v1232_v56 = vshra.s32 %v4262_v16, 16 }
 0x367   : > { %v4270_v47 = vpop.xlane.xlu1 %1131  ;;  %v1204_v20 = vshra.s32 %v4267_v27, 16  ;;  %v1203_v11 = vand.u32 65535, %v4267_v27 }
 0x368   : > { %vm1168_vm3 = vcmp.le.f32.partialorder %v4201_v39, %v4270_v47  ;;  %v4274_v17 = vpop.xlane.xlu0 %1127  ;;  %v4276_v19 = vcvt.s32.f32 %v1232_v56 }
 0x369   : > { %v4280_v22 = vsel %vm1168_vm3, %v4253_v32, 128  ;;  %vm1166_vm4 = vcmp.le.f32.partialorder %v4203_v40, %v4274_v17  ;;  %v4291_v26 = vcvt.s32.f32 %v1204_v20 }
 0x36a   : > { %v4285_v23 = vsel %vm1166_vm4, %v4253_v32, 128  ;;  %1235 = vmin.xlane.f32.xlu1 %v4276_v19  ;;  %v1246_v24 = vshra.s32 %v4280_v22, 16 }
 0x36b   : > { %v1218_v30 = vshra.s32 %v4285_v23, 16 }
 0x36c   : > { %v4289_v25 = vpop.xlane.xlu0 %1137  ;;  %v4293_v28 = vcvt.s32.f32 %v1246_v24 }
 0x36d   : > { %vm1171_vm5 = vcmp.le.f32.partialorder %v4207_v43, %v4289_v25  ;;  %v4298_v59 = vpop.xlane.xlu1 %1139  ;;  %v4313_v34 = vcvt.s32.f32 %v1218_v30 }
 0x36e   : > { %v4301_v31 = vsel %vm1171_vm5, %v4253_v32, 128  ;;  %vm1172_vm6 = vcmp.le.f32.partialorder %v4209_v48, %v4298_v59  ;;  %1207 = vmin.xlane.f32.xlu1 %v4291_v26  ;;  %1249 = vmin.xlane.f32.xlu0 %v4293_v28 }
 0x36f   : > { %v4308_v33 = vsel %vm1172_vm6, %v4253_v32, 128  ;;  %v1288_v13 = vshra.s32 %v4301_v31, 16  ;;  %v1287_v27 = vand.u32 65535, %v4301_v31 }
 0x370   : > { %v4311_v51 = vpop.xlane.xlu0 %1133  ;;  %v1302_v12 = vshra.s32 %v4308_v33, 16 }
 0x371   : > { %vm1169_vm7 = vcmp.le.f32.partialorder %v4213_v61, %v4311_v51  ;;  %v4318_v35 = vpop.xlane.xlu1 %1135  ;;  %v4320_v36 = vcvt.s32.f32 %v1288_v13 }
 0x372   : > { %v4323_v2 = vsel %vm1169_vm7, %v4253_v32, 128  ;;  %vm1170_vm8 = vcmp.le.f32.partialorder %v4215_v3, %v4318_v35  ;;  %1221 = vmin.xlane.f32.xlu0 %v4313_v34  ;;  %v4335_v39 = vcvt.s32.f32 %v1302_v12 }
 0x373   : > { %v4329_v18 = vsel %vm1170_vm8, %v4253_v32, 128  ;;  %1291 = vmin.xlane.f32.xlu1 %v4320_v36  ;;  %v1260_v37 = vshra.s32 %v4323_v2, 16 }
 0x374   : > { %v4333_v38 = vpop.xlane.xlu0 %1145  ;;  %v1274_v40 = vshra.s32 %v4329_v18, 16 }
 0x375   : > { %vm1175_vm9 = vcmp.le.f32.partialorder %v4218_v46, %v4333_v38  ;;  %v4340_v41 = vpop.xlane.xlu1 %1147  ;;  %v4342_v43 = vcvt.s32.f32 %v1260_v37 }
 0x376   : > { %v4345_v45 = vsel %vm1175_vm9, %v4253_v32, 128  ;;  %vm1176_vm10 = vcmp.le.f32.partialorder %v4221_v53, %v4340_v41  ;;  %1305 = vmin.xlane.f32.xlu0 %v4335_v39  ;;  %v4357_v61 = vcvt.s32.f32 %v1274_v40 }
 0x377   : > { %v4351_v29 = vsel %vm1176_vm10, %v4253_v32, 128  ;;  %1263 = vmin.xlane.f32.xlu1 %v4342_v43  ;;  %v1344_v48 = vshra.s32 %v4345_v45, 16 }
 0x378   : > { %v4355_v54 = vpop.xlane.xlu0 %1141  ;;  %v1358_v3 = vshra.s32 %v4351_v29, 16 }
 0x379   : > { %vm1173_vm11 = vcmp.le.f32.partialorder %v4225_v55, %v4355_v54  ;;  %v4362_v52 = vpop.xlane.xlu1 %1143  ;;  %v4364_v46 = vcvt.s32.f32 %v1344_v48 }
 0x37a   : > { %v4367_v44 = vsel %vm1173_vm11, %v4253_v32, 128  ;;  %vm1174_vm12 = vcmp.le.f32.partialorder %v4227_v58, %v4362_v52  ;;  %1277 = vmin.xlane.f32.xlu0 %v4357_v61  ;;  %v4379_v55 = vcvt.s32.f32 %v1358_v3 }
 0x37b   : > { %v4373_v50 = vsel %vm1174_vm12, %v4253_v32, 128  ;;  %1347 = vmin.xlane.f32.xlu1 %v4364_v46  ;;  %v1316_v53 = vshra.s32 %v4367_v44, 16 }
 0x37c   : > { %v4377_v62 = vpop.xlane.xlu0 %1153  ;;  %v1330_v60 = vshra.s32 %v4373_v50, 16 }
 0x37d   : > { %vm1179_vm13 = vcmp.le.f32.partialorder %v4230_v49, %v4377_v62  ;;  %v4384_v63 = vcvt.s32.f32 %v1316_v53 }
 0x37e   : > { %v4387_v58 = vsel %vm1179_vm13, %v4253_v32, 128  ;;  %v4389_v0 = vpop.xlane.xlu1 %1151  ;;  %1361 = vmin.xlane.f32.xlu0 %v4379_v55  ;;  %v4401_v57 = vcvt.s32.f32 %v1330_v60 }
 0x37f   : > { %vm1178_vm14 = vcmp.le.f32.partialorder %v4233_v4, %v4389_v0  ;;  %1319 = vmin.xlane.f32.xlu1 %v4384_v63  ;;  %v1400_v1 = vshra.s32 %v4387_v58, 16 }
 0x380   : > { %v4397_v42 = vsel %vm1178_vm14, %v4253_v32, 128  ;;  %v4399_v49 = vpop.xlane.xlu0 %1149 }
 0x381   : > { %vm1177_vm15 = vcmp.le.f32.partialorder %v4236_v5, %v4399_v49  ;;  %v4405_v7 = vcvt.s32.f32 %v1400_v1  ;;  %v1386_v8 = vshra.s32 %v4397_v42, 16 }
 0x382   : > { %v4409_v4 = vsel %vm1177_vm15, %v4253_v32, 128  ;;  %1333 = vmin.xlane.f32.xlu0 %v4401_v57 }
 0x383   : > { %1403 = vmin.xlane.f32.xlu1 %v4405_v7  ;;  %v4413_v56 = vcvt.s32.f32 %v1386_v8  ;;  %v1372_v20 = vshra.s32 %v4409_v4, 16 }
 0x384   : > { %v4416_v24 = vpop.xlane.xlu1 %1157 }
 0x385   : > { %vm1181_vm0 = vcmp.le.f32.partialorder %v4240_v6, %v4416_v24  ;;  %v4420_v5 = vcvt.s32.f32 %v1372_v20 }
 0x386   : > { %v4423_v30 = vsel %vm1181_vm0, %v4253_v32, 128  ;;  %1389 = vmin.xlane.f32.xlu0 %v4413_v56  ;;  %v4426_v13 = vpop.xlane.xlu0 %1159 }
 0x387   : > { %5303 = vst [vmem:[#allocation9_spill] sm:$0xff] %v4426_v13  ;;  %vm1182_vm1 = vcmp.le.f32.partialorder %v4242_v9, %v4426_v13  ;;  %1375 = vmin.xlane.f32.xlu1 %v4420_v5  ;;  %v1428_v12 = vshra.s32 %v4423_v30, 16 }
 0x388   : > { %v4433_v37 = vsel %vm1182_vm1, %v4253_v32, 128  ;;  %v4435_v6 = vpop.xlane.xlu1 %1155 }
 0x389   : > { %5304 = vst [vmem:[#allocation10_spill] sm:$0xff] %v4435_v6  ;;  %vm1180_vm2 = vcmp.le.f32.partialorder %v4245_v10, %v4435_v6  ;;  %v4439_v40 = vcvt.s32.f32 %v1428_v12  ;;  %v1442_v48 = vshra.s32 %v4433_v37, 16  ;;  %v1205_v6 = vcvt.s32.f32 %v1203_v11 }
 0x38a   : > { %v4443_v3 = vsel %vm1180_vm2, %v4253_v32, 128  ;;  %v4445_v9 = vpop.xlane.xlu0 %1161  ;;  %v1301_v11 = vand.u32 65535, %v4308_v33  ;;  %v1273_v33 = vand.u32 65535, %v4329_v18  ;;  %v1357_v18 = vand.u32 65535, %v4351_v29 }
 0x38b   : > { %5305 = vst [vmem:[#allocation11_spill] sm:$0xff] %v4445_v9  ;;  %vm1183_vm3 = vcmp.le.f32.partialorder %v4248_v21, %v4445_v9  ;;  %1431 = vmin.xlane.f32.xlu0 %v4439_v40  ;;  %v4450_v53 = vcvt.s32.f32 %v1442_v48  ;;  %v1414_v60 = vshra.s32 %v4443_v3, 16  ;;  %v1231_v21 = vand.u32 65535, %v4262_v16 }
 0x38c   : > { %v4454_v10 = vsel %vm1183_vm3, %v4253_v32, 128  ;;  %v1245_v32 = vand.u32 65535, %v4280_v22  ;;  %v1217_v16 = vand.u32 65535, %v4285_v23  ;;  %v1289_v23 = vcvt.s32.f32 %v1287_v27 }
 0x38d   : > { %1445 = vmin.xlane.f32.xlu1 %v4450_v53  ;;  %v4457_v1 = vcvt.s32.f32 %v1414_v60  ;;  %v1456_v8 = vshra.s32 %v4454_v10, 16  ;;  %v1233_v48 = vcvt.s32.f32 %v1231_v21  ;;  %v1329_v29 = vand.u32 65535, %v4373_v50 }
 0x38e   : > { %v1247_v13 = vcvt.s32.f32 %v1245_v32  ;;  %v1385_v50 = vand.u32 65535, %v4397_v42 }
 0x38f   : > { %1417 = vmin.xlane.f32.xlu0 %v4457_v1  ;;  %v4461_v20 = vcvt.s32.f32 %v1456_v8 }
 0x391   : > { %1459 = vmin.xlane.f32.xlu1 %v4461_v20 }
 0x3f7   : > { %v4465_v12 = vpop.xlane.xlu1 %1235 }
 0x3f8   : > { %vm1237_vm4 = vcmp.eq.f32.partialorder %v4276_v19, %v4465_v12 }
 0x3f9   : > { %v1238_v60 = vsel %vm1237_vm4, %v1233_v48, inf  ;;  %v1219_v48 = vcvt.s32.f32 %v1217_v16 }
 0x3fa   : > { %1239 = vmin.xlane.f32.xlu0 %v1238_v60 }
 0x3fb   : > { %v4471_v9 = vpop.xlane.xlu1 %1207  ;;  %v4473_v8 = vpop.xlane.xlu0 %1249 }
 0x3fc   : > { %vm1209_vm5 = vcmp.eq.f32.partialorder %v4291_v26, %v4471_v9  ;;  %vm1251_vm6 = vcmp.eq.f32.partialorder %v4293_v28, %v4473_v8  ;;  %v1259_v26 = vand.u32 65535, %v4323_v2  ;;  %v1343_v2 = vand.u32 65535, %v4345_v45 }
 0x3fd   : > { %v1210_v22 = vsel %vm1209_vm5, %v1205_v6, inf  ;;  %v1252_v19 = vsel %vm1251_vm6, %v1247_v13, inf  ;;  %v1303_v6 = vcvt.s32.f32 %v1301_v11  ;;  %v1315_v45 = vand.u32 65535, %v4367_v44 }
 0x3fe   : > { %1211 = vmin.xlane.f32.xlu0 %v1210_v22  ;;  %1253 = vmin.xlane.f32.xlu1 %v1252_v19  ;;  %v1275_v22 = vcvt.s32.f32 %v1273_v33  ;;  %v1399_v44 = vand.u32 65535, %v4387_v58  ;;  %v1371_v58 = vand.u32 65535, %v4409_v4  ;;  %v1441_v4 = vand.u32 65535, %v4433_v37 }
 0x3ff   : > { %v4481_v21 = vpop.xlane.xlu0 %1221 }
 0x400   : > { %v4484_v32 = vpop.xlane.xlu1 %1291  ;;  %vm1223_vm7 = vcmp.eq.f32.partialorder %v4313_v34, %v4481_v21  ;;  %v1261_v34 = vcvt.s32.f32 %v1259_v26  ;;  %v1373_v42 = vcvt.s32.f32 %v1371_v58  ;;  %v5306_v58 = vlaneseq }
 0x401   : > { %v1224_v28 = vsel %vm1223_vm7, %v1219_v48, inf  ;;  %vm1293_vm8 = vcmp.eq.f32.partialorder %v4320_v36, %v4484_v32  ;;  %vm1471_vm7 = vcmp.lt.f32.partialorder %v4255_v14, inf }
 0x402   : > { %1225 = vmin.xlane.f32.xlu1 %v1224_v28  ;;  %v1294_v31 = vsel %vm1293_vm8, %v1289_v23, inf  ;;  %v1359_v23 = vcvt.s32.f32 %v1357_v18  ;;  %vm1469_vm8 = vcmp.lt.f32.partialorder %v4259_v15, inf }
 0x403   : > { %1295 = vmin.xlane.f32.xlu0 %v1294_v31  ;;  %v4491_v13 = vpop.xlane.xlu0 %1305 }
 0x404   : > { %v4494_v60 = vpop.xlane.xlu1 %1263  ;;  %vm1307_vm9 = vcmp.eq.f32.partialorder %v4335_v39, %v4491_v13  ;;  %v1345_v39 = vcvt.s32.f32 %v1343_v2 }
 0x405   : > { %v1308_v16 = vsel %vm1307_vm9, %v1303_v6, inf  ;;  %vm1265_vm10 = vcmp.eq.f32.partialorder %v4342_v43, %v4494_v60  ;;  %v1331_v6 = vcvt.s32.f32 %v1329_v29  ;;  %vm1472_vm9 = vcmp.lt.f32.partialorder %v4270_v47, inf }
 0x406   : > { %1309 = vmin.xlane.f32.xlu1 %v1308_v16  ;;  %v1266_v36 = vsel %vm1265_vm10, %v1261_v34, inf  ;;  %v1387_v16 = vcvt.s32.f32 %v1385_v50  ;;  %v1270_v50 = vcvt.f32.s32 %v4494_v60  ;;  %vm1470_vm10 = vcmp.lt.f32.partialorder %v4274_v17, inf }
 0x407   : > { %1267 = vmin.xlane.f32.xlu0 %v1266_v36  ;;  %v4501_v27 = vpop.xlane.xlu0 %1277 }
 0x408   : > { %v4504_v19 = vpop.xlane.xlu1 %1347  ;;  %vm1279_vm11 = vcmp.eq.f32.partialorder %v4357_v61, %v4501_v27  ;;  %v1317_v61 = vcvt.s32.f32 %v1315_v45  ;;  %v1413_v45 = vand.u32 65535, %v4443_v3 }
 0x409   : > { %v1280_v48 = vsel %vm1279_vm11, %v1275_v22, inf  ;;  %vm1349_vm12 = vcmp.eq.f32.partialorder %v4364_v46, %v4504_v19  ;;  %vm1475_vm11 = vcmp.lt.f32.partialorder %v4289_v25, inf }
 0x40a   : > { %1281 = vmin.xlane.f32.xlu1 %v1280_v48  ;;  %v1350_v43 = vsel %vm1349_vm12, %v1345_v39, inf  ;;  %v1415_v3 = vcvt.s32.f32 %v1413_v45  ;;  %vm1476_vm12 = vcmp.lt.f32.partialorder %v4298_v59, inf }
 0x40b   : > { %1351 = vmin.xlane.f32.xlu0 %v1350_v43  ;;  %v4511_v11 = vpop.xlane.xlu0 %1361  ;;  %v1455_v43 = vand.u32 65535, %v4454_v10 }
 0x40c   : > { %v4514_v26 = vpop.xlane.xlu1 %1319  ;;  %vm1363_vm13 = vcmp.eq.f32.partialorder %v4379_v55, %v4511_v11  ;;  %v1401_v55 = vcvt.s32.f32 %v1399_v44  ;;  %v1214_v44 = vcvt.f32.s32 %v4471_v9 }
 0x40d   : > { %v1364_v28 = vsel %vm1363_vm13, %v1359_v23, inf  ;;  %vm1321_vm14 = vcmp.eq.f32.partialorder %v4384_v63, %v4514_v26  ;;  %vm1473_vm13 = vcmp.lt.f32.partialorder %v4311_v51, inf }
 0x40e   : > { %1365 = vmin.xlane.f32.xlu1 %v1364_v28  ;;  %v1322_v46 = vsel %vm1321_vm14, %v1317_v61, inf  ;;  %v1457_v61 = vcvt.s32.f32 %v1455_v43  ;;  %v1256_v28 = vcvt.f32.s32 %v4473_v8  ;;  %vm1474_vm14 = vcmp.lt.f32.partialorder %v4318_v35, inf }
 0x40f   : > { %1323 = vmin.xlane.f32.xlu0 %v1322_v46  ;;  %v4521_v31 = vpop.xlane.xlu0 %1333  ;;  %v1228_v46 = vcvt.f32.s32 %v4481_v21 }
 0x410   : > { %v4524_v33 = vpop.xlane.xlu1 %1403  ;;  %vm1335_vm15 = vcmp.eq.f32.partialorder %v4401_v57, %v4521_v31  ;;  %v1427_v57 = vand.u32 65535, %v4423_v30  ;;  %v1257_v8 = vshll.u32 %v1256_v28, 16 }
 0x411   : > { %v1336_v34 = vsel %vm1335_vm15, %v1331_v6, inf  ;;  %vm1405_vm0 = vcmp.eq.f32.partialorder %v4405_v7, %v4524_v33  ;;  %v1312_v6 = vcvt.f32.s32 %v4491_v13  ;;  %v1410_v45 = vcvt.f32.s32 %v4524_v33 }
 0x412   : > { %1337 = vmin.xlane.f32.xlu1 %v1336_v34  ;;  %v1406_v63 = vsel %vm1405_vm0, %v1401_v55, inf  ;;  %v1429_v39 = vcvt.s32.f32 %v1427_v57  ;;  %v1284_v55 = vcvt.f32.s32 %v4501_v27  ;;  %v4569_v34 = vshrl.u32 %v5306_v58, 7 }
 0x413   : > { %1407 = vmin.xlane.f32.xlu0 %v1406_v63  ;;  %v4531_v2 = vpop.xlane.xlu0 %1389  ;;  %v1215_v63 = vshll.u32 %v1214_v44, 16  ;;  %v4577_v60 = vshll.u32 %v1312_v6, 16  ;;  %v4579_v27 = vshll.u32 %v1270_v50, 16  ;;  %vm1479_vm15 = vcmp.lt.f32.partialorder %v4333_v38, inf }
 0x414   : > { %v4533_v36 = vpop.xlane.xlu1 %1375  ;;  %vm1391_vm1 = vcmp.eq.f32.partialorder %v4413_v56, %v4531_v2  ;;  %v3783_v56 = vmov 0   ;;  %v4587_v57 = vsub.s32 0, %v4569_v34  ;;  %vm1480_vm0 = vcmp.lt.f32.partialorder %v4340_v41, inf }
 0x415   : > { %v1392_v22 = vsel %vm1391_vm1, %v1387_v16, inf  ;;  %vm1377_vm2 = vcmp.eq.f32.partialorder %v4420_v5, %v4533_v36  ;;  %3627 = vset.pattern.permute.xlu1 %v3783_v56  ;;  %3628 = vset.pattern.permute.xlu0 %v3783_v56  ;;  %v1443_v5 = vcvt.s32.f32 %v1441_v4  ;;  %v3784_v16 = vmov 1966171168  }
 0x416   : > { %1393 = vmin.xlane.f32.xlu1 %v1392_v22  ;;  %v1378_v7 = vsel %vm1377_vm2, %v1373_v42, inf  ;;  %v2120_v21 = vunpack.c.l.s4 %v3784_v16  ;;  %v4593_v4 = vsub.s32 1, %v4569_v34  ;;  %v1396_v56 = vcvt.f32.s32 %v4531_v2 }
 0x417   : > { %1379 = vmin.xlane.f32.xlu0 %v1378_v7  ;;  %v1340_v7 = vcvt.f32.s32 %v4521_v31  ;;  %v1382_v31 = vcvt.f32.s32 %v4533_v36  ;;  %v4621_v36 = vsub.s32 6, %v4569_v34  ;;  %vm1477_vm1 = vcmp.lt.f32.partialorder %v4355_v54, inf }
 0x418   : > { %v4541_v18 = vpop.xlane.xlu0 %1431  ;;  %vm1478_vm2 = vcmp.lt.f32.partialorder %v4362_v52, inf }
 0x419   : > { %vm1433_vm3 = vcmp.eq.f32.partialorder %v4439_v40, %v4541_v18  ;;  %v4634_v28 = vshll.u32 %v1382_v31, 16 }
 0x41a   : > { %v4546_v30 = vpop.xlane.xlu1 %1445  ;;  %v1434_v48 = vsel %vm1433_vm3, %v1429_v39, inf  ;;  %v4596_v39 = vsub.s32 2, %v4569_v34  ;;  %vm1483_vm3 = vcmp.lt.f32.partialorder %v4377_v62, inf }
 0x41b   : > { %1435 = vmin.xlane.f32.xlu1 %v1434_v48  ;;  %vm1447_vm4 = vcmp.eq.f32.partialorder %v4450_v53, %v4546_v30  ;;  %v1242_v53 = vcvt.f32.s32 %v4465_v12  ;;  %v1368_v12 = vcvt.f32.s32 %v4511_v11  ;;  %v1326_v11 = vcvt.f32.s32 %v4514_v26 }
 0x41c   : > { %v4551_v37 = vpop.xlane.xlu0 %1417  ;;  %v1448_v23 = vsel %vm1447_vm4, %v1443_v5, inf  ;;  %v4601_v48 = vsub.s32 3, %v4569_v34  ;;  %v2121_v26 = vunpack.c.0.s8 %v2120_v21  ;;  %v1438_v5 = vcvt.f32.s32 %v4541_v18 }
 0x41d   : > { %1449 = vmin.xlane.f32.xlu0 %v1448_v23  ;;  %vm1419_vm5 = vcmp.eq.f32.partialorder %v4457_v1, %v4551_v37  ;;  %v1298_v1 = vcvt.f32.s32 %v4484_v32  ;;  %v1243_v9 = vshll.u32 %v1242_v53, 16  ;;  %v4573_v32 = vshll.u32 %v1228_v46, 16 }
 0x41e   : > { %v4555_v40 = vpop.xlane.xlu1 %1459  ;;  %v1420_v29 = vsel %vm1419_vm5, %v1415_v3, inf  ;;  %v4589_v22 = vshll.u32 %v1368_v12, 16  ;;  %v1452_v43 = vcvt.f32.s32 %v4546_v30  ;;  %v1424_v23 = vcvt.f32.s32 %v4551_v37 }
 0x41f   : > { %1421 = vmin.xlane.f32.xlu1 %v1420_v29  ;;  %vm1461_vm6 = vcmp.eq.f32.partialorder %v4461_v20, %v4555_v40  ;;  %v1354_v20 = vcvt.f32.s32 %v4504_v19  ;;  %v4575_v13 = vshll.u32 %v1298_v1, 16  ;;  %v4581_v19 = vshll.u32 %v1284_v55, 16 }
 0x420   : > { %v1462_v10 = vsel %vm1461_vm6, %v1457_v61, inf  ;;  %v4609_v33 = vshll.u32 %v1326_v11, 16  ;;  %v1466_v2 = vcvt.f32.s32 %v4555_v40  ;;  %v4613_v61 = vsub.s32 4, %v4569_v34 }
 0x421   : > { %1463 = vmin.xlane.f32.xlu0 %v1462_v10  ;;  %v4583_v42 = vshll.u32 %v1354_v20, 16  ;;  %v4615_v10 = vshll.u32 %v1340_v7, 16  ;;  %v4618_v53 = vsub.s32 5, %v4569_v34  ;;  %v4624_v18 = vsub.s32 7, %v4569_v34 }
 0x422   : > { %v4626_v30 = vshll.u32 %v1410_v45, 16  ;;  %v4628_v37 = vshll.u32 %v1396_v56, 16  ;;  %v4631_v44 = vsub.s32 %v2121_v26, %v4569_v34  ;;  %v4636_v46 = vshll.u32 %v1438_v5, 16 }
 0x423   : > { %v4638_v1 = vshll.u32 %v1452_v43, 16  ;;  %v4640_v6 = vshll.u32 %v1424_v23, 16  ;;  %v4643_v20 = vshll.u32 %v1466_v2, 16  ;;  %vm1482_vm4 = vcmp.lt.f32.partialorder %v4389_v0, inf }
 0x424   : > { %vm1481_vm5 = vcmp.lt.f32.partialorder %v4399_v49, inf  ;;  %vm1485_vm6 = vcmp.lt.f32.partialorder %v4416_v24, inf }
 0x487   : > { %v1240_v3 = vpop.xlane.xlu0 %1239 }
 0x488   : > { %v1241_v29 = vcvt.f32.s32 %v1240_v3 }
 0x48a   : > { %v1244_v40 = vadd.s32 %v1243_v9, %v1241_v29 }
 0x48b   : > { %v1254_v50 = vpop.xlane.xlu1 %1253  ;;  %v1212_v55 = vpop.xlane.xlu0 %1211 }
 0x48c   : > { %v1490_v12 = vsel %vm1471_vm7, %v1244_v40, 0  ;;  %v1255_v9 = vcvt.f32.s32 %v1254_v50  ;;  %v1213_v16 = vcvt.f32.s32 %v1212_v55 }
 0x48d   : > { %v1574_v21 = vrot.slane %v1490_v12, %v4587_v57  ;;  %v1578_v11 = vrot.slane %v1490_v12, %v4593_v4  ;;  %v1582_v7 = vrot.slane %v1490_v12, %v4596_v39  ;;  %v1586_v45 = vrot.slane %v1490_v12, %v4601_v48 }
 0x48e   : > { %v1258_v56 = vadd.s32 %v1257_v8, %v1255_v9  ;;  %v1216_v26 = vadd.s32 %v1215_v63, %v1213_v16  ;;  %v1590_v31 = vrot.slane %v1490_v12, %v4613_v61  ;;  %v1594_v5 = vrot.slane %v1490_v12, %v4618_v53 }
 0x48f   : > { %v1226_v14 = vpop.xlane.xlu1 %1225  ;;  %v1598_v43 = vrot.slane %v1490_v12, %v4621_v36  ;;  %v1602_v23 = vrot.slane %v1490_v12, %v4624_v18  ;;  %v2213_v3 = vcombine.low %v1574_v21, %v1578_v11  ;;  %v2214_v2 = vcombine.low %v1582_v7, %v1586_v45 }
 0x490   : > { %v4659_v29 = vsel %vm1472_vm9, %v1258_v56, 0  ;;  %v1488_v63 = vsel %vm1469_vm8, %v1216_v26, 0  ;;  %v1227_v8 = vcvt.f32.s32 %v1226_v14  ;;  %v1296_v40 = vpop.xlane.xlu0 %1295  ;;  %v2215_v50 = vcombine.low %v1590_v31, %v1594_v5 }
 0x491   : > { %v1297_v55 = vcvt.f32.s32 %v1296_v40  ;;  %v2216_v9 = vcombine.low %v1598_v43, %v1602_v23  ;;  %v2223_v16 = vrot.slane %v2213_v3, %v4631_v44  ;;  %v2230_v12 = vrot.slane %v2214_v2, %v4631_v44 }
 0x492   : > { %v1230_v21 = vadd.s32 %v4573_v32, %v1227_v8  ;;  %v2237_v11 = vrot.slane %v2215_v50, %v4631_v44  ;;  %v1510_v47 = vrot.slane %v1488_v63, %v4587_v57  ;;  %v1514_v7 = vrot.slane %v1488_v63, %v4593_v4 }
 0x493   : > { %v1300_v15 = vadd.s32 %v4575_v13, %v1297_v55  ;;  %v1310_v45 = vpop.xlane.xlu1 %1309  ;;  %v2244_v56 = vrot.slane %v2216_v9, %v4631_v44  ;;  %v2245_v26 = vcombine.low %v2223_v16, %v2230_v12  ;;  %v1518_v31 = vrot.slane %v1488_v63, %v4596_v39 }
 0x494   : > { %v4676_v32 = vsel %vm1470_vm10, %v1230_v21, 0  ;;  %v1311_v5 = vcvt.f32.s32 %v1310_v45  ;;  %v1268_v14 = vpop.xlane.xlu0 %1267  ;;  %v1522_v43 = vrot.slane %v1488_v63, %v4601_v48  ;;  %v1526_v23 = vrot.slane %v1488_v63, %v4613_v61 }
 0x495   : > { %v4682_v13 = vsel %vm1475_vm11, %v1300_v15, 0  ;;  %v1269_v3 = vcvt.f32.s32 %v1268_v14  ;;  %v2246_v2 = vcombine.low %v2237_v11, %v2244_v56  ;;  %v2253_v8 = vrot.slane %v2245_v26, %v4631_v44 }
 0x496   : > { %v1314_v40 = vadd.s32 %v4577_v60, %v1311_v5  ;;  %v1530_v17 = vrot.slane %v1488_v63, %v4618_v53  ;;  %v1534_v50 = vrot.slane %v1488_v63, %v4621_v36  ;;  %v1538_v55 = vrot.slane %v1488_v63, %v4624_v18 }
 0x497   : > { %v1272_v9 = vadd.s32 %v4579_v27, %v1269_v3  ;;  %v1282_v16 = vpop.xlane.xlu1 %1281  ;;  %v2260_v25 = vrot.slane %v2246_v2, %v4631_v44  ;;  %v2115_v12 = vcombine.low %v1510_v47, %v1514_v7  ;;  %v2116_v21 = vcombine.low %v1518_v31, %v1522_v43 }
 0x498   : > { %v4695_v60 = vsel %vm1476_vm12, %v1314_v40, 0  ;;  %v1283_v11 = vcvt.f32.s32 %v1282_v16  ;;  %v1352_v15 = vpop.xlane.xlu0 %1351  ;;  %v2117_v45 = vcombine.low %v1526_v23, %v1530_v17  ;;  %v2118_v56 = vcombine.low %v1534_v50, %v1538_v55 }
 0x499   : > { %v4699_v63 = vsel %vm1473_vm13, %v1272_v9, 0  ;;  %v1353_v27 = vcvt.f32.s32 %v1352_v15  ;;  %v2261_v26 = vcombine.low %v2253_v8, %v2260_v25  ;;  %v2125_v5 = vrot.slane %v2115_v12, %v4631_v44 }
 0x49a   : > { %v1286_v47 = vadd.s32 %v4581_v19, %v1283_v11  ;;  %v2132_v7 = vrot.slane %v2116_v21, %v4631_v44  ;;  %v2139_v59 = vrot.slane %v2117_v45, %v4631_v44  ;;  %v2146_v31 = vrot.slane %v2118_v56, %v4631_v44 }
 0x49b   : > { %v1356_v14 = vadd.s32 %v4583_v42, %v1353_v27  ;;  %3053 = vperm.xlu1 %3627, %v2261_v26   ;;  %v1366_v51 = vpop.xlane.xlu1 %1365  ;;  %v1542_v43 = vrot.slane %v4676_v32, %v4587_v57  ;;  %v1546_v23 = vrot.slane %v4676_v32, %v4593_v4  ;;  %v1550_v19 = vrot.slane %v4676_v32, %v4596_v39 }
 0x49c   : > { %v4717_v3 = vsel %vm1474_vm14, %v1286_v47, 0  ;;  %v1367_v2 = vcvt.f32.s32 %v1366_v51  ;;  %v1324_v8 = vpop.xlane.xlu0 %1323  ;;  %v2147_v42 = vcombine.low %v2125_v5, %v2132_v7  ;;  %v2148_v40 = vcombine.low %v2139_v59, %v2146_v31 }
 0x49d   : > { %v4721_v17 = vsel %vm1479_vm15, %v1356_v14, 0  ;;  %v1325_v50 = vcvt.f32.s32 %v1324_v8  ;;  %v1554_v55 = vrot.slane %v4676_v32, %v4601_v48  ;;  %v1558_v9 = vrot.slane %v4676_v32, %v4613_v61 }
 0x49e   : > { %v1370_v16 = vadd.s32 %v4589_v22, %v1367_v2  ;;  %v2155_v35 = vrot.slane %v2147_v42, %v4631_v44  ;;  %v2162_v25 = vrot.slane %v2148_v40, %v4631_v44  ;;  %v1562_v12 = vrot.slane %v4676_v32, %v4618_v53 }
 0x49f   : > { %v1328_v38 = vadd.s32 %v4609_v33, %v1325_v50  ;;  %v1338_v21 = vpop.xlane.xlu1 %1337  ;;  %v1566_v11 = vrot.slane %v4676_v32, %v4621_v36  ;;  %v1570_v15 = vrot.slane %v4676_v32, %v4624_v18  ;;  %v2164_v45 = vcombine.low %v1542_v43, %v1546_v23 }
 0x4a0   : > { %v4739_v22 = vsel %vm1480_vm0, %v1370_v16, 0  ;;  %v2163_v56 = vcombine.low %v2155_v35, %v2162_v25  ;;  %v1339_v27 = vcvt.f32.s32 %v1338_v21  ;;  %v1408_v26 = vpop.xlane.xlu0 %1407  ;;  %v2165_v5 = vcombine.low %v1550_v19, %v1554_v55 }
 0x4a1   : > { %v4743_v47 = vsel %vm1477_vm1, %v1328_v38, 0  ;;  %v1409_v33 = vcvt.f32.s32 %v1408_v26  ;;  %v2166_v7 = vcombine.low %v1558_v9, %v1562_v12  ;;  %v2167_v59 = vcombine.low %v1566_v11, %v1570_v15 }
 0x4a2   : > { %3047 = vperm.xlu1 %3627, %v2163_v56   ;;  %v1342_v32 = vadd.s32 %v4615_v10, %v1339_v27  ;;  %v2174_v41 = vrot.slane %v2164_v45, %v4631_v44  ;;  %v2181_v31 = vrot.slane %v2165_v5, %v4631_v44  ;;  %v1606_v14 = vrot.slane %v4659_v29, %v4587_v57 }
 0x4a3   : > { %v1412_v54 = vadd.s32 %v4626_v30, %v1409_v33  ;;  %v2188_v51 = vrot.slane %v2166_v7, %v4631_v44  ;;  %v2195_v43 = vrot.slane %v2167_v59, %v4631_v44  ;;  %v1610_v23 = vrot.slane %v4659_v29, %v4593_v4  ;;  %v1394_v42 = vpop.xlane.xlu1 %1393 }
 0x4a4   : > { %v4759_v10 = vsel %vm1478_vm2, %v1342_v32, 0  ;;  %v2196_v19 = vcombine.low %v2174_v41, %v2181_v31  ;;  %v1614_v2 = vrot.slane %v4659_v29, %v4596_v39  ;;  %v1618_v8 = vrot.slane %v4659_v29, %v4601_v48  ;;  %v1380_v55 = vpop.xlane.xlu0 %1379 }
 0x4a5   : > { %v4767_v30 = vsel %vm1483_vm3, %v1412_v54, 0  ;;  %v2197_v40 = vcombine.low %v2188_v51, %v2195_v43  ;;  %v1622_v50 = vrot.slane %v4659_v29, %v4613_v61  ;;  %v1626_v52 = vrot.slane %v4659_v29, %v4618_v53 }
 0x4a6   : > { %v2204_v9 = vrot.slane %v2196_v19, %v4631_v44  ;;  %v1630_v16 = vrot.slane %v4659_v29, %v4621_v36  ;;  %v1634_v35 = vrot.slane %v4659_v29, %v4624_v18  ;;  %v2262_v25 = vcombine.low %v1606_v14, %v1610_v23 }
 0x4a7   : > { %v2211_v62 = vrot.slane %v2197_v40, %v4631_v44  ;;  %v2263_v12 = vcombine.low %v1614_v2, %v1618_v8  ;;  %v2264_v38 = vcombine.low %v1622_v50, %v1626_v52  ;;  %v1395_v21 = vcvt.f32.s32 %v1394_v42 }
 0x4a8   : > { %v2265_v11 = vcombine.low %v1630_v16, %v1634_v35  ;;  %v2272_v15 = vrot.slane %v2262_v25, %v4631_v44  ;;  %v1381_v45 = vcvt.f32.s32 %v1380_v55  ;;  %v1702_v56 = vrot.slane %v4682_v13, %v4587_v57  ;;  %v1436_v54 = vpop.xlane.xlu1 %1435 }
 0x4a9   : > { %v2212_v27 = vcombine.low %v2204_v9, %v2211_v62  ;;  %v2279_v26 = vrot.slane %v2263_v12, %v4631_v44  ;;  %v2286_v29 = vrot.slane %v2264_v38, %v4631_v44  ;;  %v1398_v5 = vadd.s32 %v4628_v37, %v1395_v21 }
 0x4aa   : > { %v2293_v33 = vrot.slane %v2265_v11, %v4631_v44  ;;  %v1384_v7 = vadd.s32 %v4634_v28, %v1381_v45  ;;  %v1706_v59 = vrot.slane %v4682_v13, %v4593_v4  ;;  %v1710_v32 = vrot.slane %v4682_v13, %v4596_v39 }
 0x4ab   : > { %3050 = vperm.xlu0 %3628, %v2212_v27   ;;  %v2294_v41 = vcombine.low %v2272_v15, %v2279_v26  ;;  %v4794_v31 = vsel %vm1482_vm4, %v1398_v5, 0  ;;  %v1714_v14 = vrot.slane %v4682_v13, %v4601_v48  ;;  %v1718_v37 = vrot.slane %v4682_v13, %v4613_v61 }
 0x4ac   : > { %v2295_v28 = vcombine.low %v2286_v29, %v2293_v33  ;;  %v4802_v51 = vsel %vm1481_vm5, %v1384_v7, 0  ;;  %v1722_v43 = vrot.slane %v4682_v13, %v4618_v53  ;;  %v1726_v0 = vrot.slane %v4682_v13, %v4621_v36  ;;  %v5307_v33 = vld [vmem:[#allocation9_spill] sm:$0xff]  ;;  %v5308_v7 = vld [vmem:[#allocation10_spill] sm:$0xff] }
 0x4ad   : > { %v2302_v23 = vrot.slane %v2294_v41, %v4631_v44  ;;  %v1730_v19 = vrot.slane %v4682_v13, %v4624_v18  ;;  %v2409_v2 = vcombine.low %v1702_v56, %v1706_v59  ;;  %v2410_v8 = vcombine.low %v1710_v32, %v1714_v14 }
 0x4ae   : > { %v2309_v42 = vrot.slane %v2295_v28, %v4631_v44  ;;  %v2411_v40 = vcombine.low %v1718_v37, %v1722_v43  ;;  %v1437_v50 = vcvt.f32.s32 %v1436_v54  ;;  %v1638_v49 = vrot.slane %v4699_v63, %v4587_v57 }
 0x4af   : > { %v2412_v52 = vcombine.low %v1726_v0, %v1730_v19  ;;  %v2419_v55 = vrot.slane %v2409_v2, %v4631_v44  ;;  %v2426_v9 = vrot.slane %v2410_v8, %v4631_v44  ;;  %v1642_v16 = vrot.slane %v4699_v63, %v4593_v4  ;;  %v1450_v19 = vpop.xlane.xlu0 %1449  ;;  %v1422_v2 = vpop.xlane.xlu1 %1421 }
 0x4b0   : > { %v2310_v35 = vcombine.low %v2302_v23, %v2309_v42  ;;  %v2433_v13 = vrot.slane %v2411_v40, %v4631_v44  ;;  %v1440_v25 = vadd.s32 %v4636_v46, %v1437_v50  ;;  %v1646_v62 = vrot.slane %v4699_v63, %v4596_v39 }
 0x4b1   : > { %v2440_v12 = vrot.slane %v2412_v52, %v4631_v44  ;;  %v2441_v38 = vcombine.low %v2419_v55, %v2426_v9  ;;  %v1650_v21 = vrot.slane %v4699_v63, %v4601_v48  ;;  %v1654_v11 = vrot.slane %v4699_v63, %v4613_v61 }
 0x4b2   : > { %3056 = vperm.xlu1 %3627, %v2310_v35   ;;  %v4829_v15 = vsel %vm1485_vm6, %v1440_v25, 0  ;;  %v1658_v46 = vrot.slane %v4699_v63, %v4618_v53  ;;  %v1662_v45 = vrot.slane %v4699_v63, %v4621_v36  ;;  %v1666_v56 = vrot.slane %v4699_v63, %v4624_v18 }
 0x4b3   : > { %v2442_v27 = vcombine.low %v2433_v13, %v2440_v12  ;;  %v2449_v26 = vrot.slane %v2441_v38, %v4631_v44  ;;  %v2311_v29 = vcombine.low %v1638_v49, %v1642_v16  ;;  %v2312_v5 = vcombine.low %v1646_v62, %v1650_v21 }
 0x4b4   : > { %vm1486_vm7 = vcmp.lt.f32.partialorder %v5307_v33, inf  ;;  %vm1484_vm8 = vcmp.lt.f32.partialorder %v5308_v7, inf  ;;  %v2313_v24 = vcombine.low %v1654_v11, %v1658_v46  ;;  %v2314_v59 = vcombine.low %v1662_v45, %v1666_v56  ;;  %v5309_v11 = vld [vmem:[#allocation11_spill] sm:$0xff] }
 0x4b5   : > { %v1830_v32 = vrot.slane %v4721_v17, %v4587_v57  ;;  %v1834_v41 = vrot.slane %v4721_v17, %v4593_v4  ;;  %v2456_v14 = vrot.slane %v2442_v27, %v4631_v44  ;;  %v2321_v63 = vrot.slane %v2311_v29, %v4631_v44 }
 0x4b6   : > { %v2328_v37 = vrot.slane %v2312_v5, %v4631_v44  ;;  %v1838_v54 = vrot.slane %v4721_v17, %v4596_v39  ;;  %v2335_v28 = vrot.slane %v2313_v24, %v4631_v44  ;;  %v2342_v43 = vrot.slane %v2314_v59, %v4631_v44 }
 0x4b7   : > { %v1842_v0 = vrot.slane %v4721_v17, %v4601_v48  ;;  %v1846_v23 = vrot.slane %v4721_v17, %v4613_v61  ;;  %v2457_v8 = vcombine.low %v2449_v26, %v2456_v14  ;;  %v1850_v40 = vrot.slane %v4721_v17, %v4618_v53 }
 0x4b8   : > { %v2343_v42 = vcombine.low %v2321_v63, %v2328_v37  ;;  %v1854_v50 = vrot.slane %v4721_v17, %v4621_v36  ;;  %v2344_v49 = vcombine.low %v2335_v28, %v2342_v43  ;;  %v1858_v52 = vrot.slane %v4721_v17, %v4624_v18 }
 0x4b9   : > { %v2605_v55 = vcombine.low %v1830_v32, %v1834_v41  ;;  %v2606_v9 = vcombine.low %v1838_v54, %v1842_v0  ;;  %3065 = vperm.xlu1 %3627, %v2457_v8   ;;  %v2607_v35 = vcombine.low %v1846_v23, %v1850_v40  ;;  %v1451_v13 = vcvt.f32.s32 %v1450_v19  ;;  %v1464_v32 = vpop.xlane.xlu0 %1463 }
 0x4ba   : > { %v2351_v16 = vrot.slane %v2343_v42, %v4631_v44  ;;  %v1423_v25 = vcvt.f32.s32 %v1422_v2  ;;  %v2358_v62 = vrot.slane %v2344_v49, %v4631_v44  ;;  %v2608_v12 = vcombine.low %v1854_v50, %v1858_v52 }
 0x4bb   : > { %v2615_v38 = vrot.slane %v2605_v55, %v4631_v44  ;;  %v2622_v21 = vrot.slane %v2606_v9, %v4631_v44  ;;  %vm1487_vm9 = vcmp.lt.f32.partialorder %v5309_v11, inf  ;;  %v2629_v46 = vrot.slane %v2607_v35, %v4631_v44 }
 0x4bc   : > { %v1454_v17 = vadd.s32 %v4638_v1, %v1451_v13  ;;  %v1426_v45 = vadd.s32 %v4640_v6, %v1423_v25  ;;  %v1734_v56 = vrot.slane %v4695_v60, %v4587_v57  ;;  %v2359_v27 = vcombine.low %v2351_v16, %v2358_v62 }
 0x4bd   : > { %v2636_v26 = vrot.slane %v2608_v12, %v4631_v44  ;;  %v2637_v29 = vcombine.low %v2615_v38, %v2622_v21  ;;  %v1738_v5 = vrot.slane %v4695_v60, %v4593_v4  ;;  %v1742_v1 = vrot.slane %v4695_v60, %v4596_v39 }
 0x4be   : > { %v4876_v24 = vsel %vm1486_vm7, %v1454_v17, 0  ;;  %v4880_v59 = vsel %vm1484_vm8, %v1426_v45, 0  ;;  %v1746_v6 = vrot.slane %v4695_v60, %v4601_v48  ;;  %3059 = vperm.xlu1 %3627, %v2359_v27   ;;  %v1750_v33 = vrot.slane %v4695_v60, %v4613_v61 }
 0x4bf   : > { %v2638_v41 = vcombine.low %v2629_v46, %v2636_v26  ;;  %v2645_v14 = vrot.slane %v2637_v29, %v4631_v44  ;;  %v1754_v63 = vrot.slane %v4695_v60, %v4618_v53  ;;  %v1758_v7 = vrot.slane %v4695_v60, %v4621_v36 }
 0x4c0   : > { %v1762_v37 = vrot.slane %v4695_v60, %v4624_v18  ;;  %v2458_v54 = vcombine.low %v1734_v56, %v1738_v5  ;;  %v2459_v28 = vcombine.low %v1742_v1, %v1746_v6  ;;  %v1465_v23 = vcvt.f32.s32 %v1464_v32 }
 0x4c1   : > { %v2652_v43 = vrot.slane %v2638_v41, %v4631_v44  ;;  %v2460_v0 = vcombine.low %v1750_v33, %v1754_v63  ;;  %v1670_v19 = vrot.slane %v4717_v3, %v4587_v57  ;;  %v1674_v40 = vrot.slane %v4717_v3, %v4593_v4 }
 0x4c2   : > { %v2461_v2 = vcombine.low %v1758_v7, %v1762_v37  ;;  %v2468_v8 = vrot.slane %v2458_v54, %v4631_v44  ;;  %v2475_v42 = vrot.slane %v2459_v28, %v4631_v44  ;;  %v1468_v49 = vadd.s32 %v4643_v20, %v1465_v23 }
 0x4c3   : > { %v2653_v50 = vcombine.low %v2645_v14, %v2652_v43  ;;  %v2482_v60 = vrot.slane %v2460_v0, %v4631_v44  ;;  %v1678_v52 = vrot.slane %v4717_v3, %v4596_v39  ;;  %v1682_v16 = vrot.slane %v4717_v3, %v4601_v48 }
 0x4c4   : > { %v2489_v55 = vrot.slane %v2461_v2, %v4631_v44  ;;  %v2490_v9 = vcombine.low %v2468_v8, %v2475_v42  ;;  %v1686_v35 = vrot.slane %v4717_v3, %v4613_v61  ;;  %v4913_v13 = vsel %vm1487_vm9, %v1468_v49, 0 }
 0x4c5   : > { %3077 = vperm.xlu0 %3628, %v2653_v50   ;;  %v1690_v20 = vrot.slane %v4717_v3, %v4618_v53  ;;  %v1694_v25 = vrot.slane %v4717_v3, %v4621_v36  ;;  %v1698_v62 = vrot.slane %v4717_v3, %v4624_v18  ;;  %v2360_v21 = vcombine.low %v1670_v19, %v1674_v40 }
 0x4c6   : > { %v2491_v12 = vcombine.low %v2482_v60, %v2489_v55  ;;  %v2498_v38 = vrot.slane %v2490_v9, %v4631_v44  ;;  %v2361_v46 = vcombine.low %v1678_v52, %v1682_v16  ;;  %v1958_v11 = vrot.slane %v4767_v30, %v4587_v57 }
 0x4c7   : > { %v2362_v17 = vcombine.low %v1686_v35, %v1690_v20  ;;  %v2363_v45 = vcombine.low %v1694_v25, %v1698_v62  ;;  %v1962_v56 = vrot.slane %v4767_v30, %v4593_v4  ;;  %v2370_v26 = vrot.slane %v2360_v21, %v4631_v44 }
 0x4c8   : > { %v2505_v27 = vrot.slane %v2491_v12, %v4631_v44  ;;  %v2377_v29 = vrot.slane %v2361_v46, %v4631_v44  ;;  %v1966_v3 = vrot.slane %v4767_v30, %v4596_v39  ;;  %v1970_v6 = vrot.slane %v4767_v30, %v4601_v48 }
 0x4c9   : > { %v2384_v5 = vrot.slane %v2362_v17, %v4631_v44  ;;  %v2391_v1 = vrot.slane %v2363_v45, %v4631_v44  ;;  %v1974_v32 = vrot.slane %v4767_v30, %v4613_v61  ;;  %v1978_v33 = vrot.slane %v4767_v30, %v4618_v53 }
 0x4ca   : > { %v2506_v41 = vcombine.low %v2498_v38, %v2505_v27  ;;  %v2392_v14 = vcombine.low %v2370_v26, %v2377_v29  ;;  %v1982_v63 = vrot.slane %v4767_v30, %v4621_v36  ;;  %v1986_v37 = vrot.slane %v4767_v30, %v4624_v18 }
 0x4cb   : > { %v2393_v7 = vcombine.low %v2384_v5, %v2391_v1  ;;  %v2801_v54 = vcombine.low %v1958_v11, %v1962_v56  ;;  %v2802_v28 = vcombine.low %v1966_v3, %v1970_v6  ;;  %v2803_v0 = vcombine.low %v1974_v32, %v1978_v33 }
 0x4cc   : > { %3068 = vperm.xlu1 %3627, %v2506_v41   ;;  %v2400_v43 = vrot.slane %v2392_v14, %v4631_v44  ;;  %v1766_v23 = vrot.slane %v4743_v47, %v4587_v57  ;;  %v1770_v19 = vrot.slane %v4743_v47, %v4593_v4  ;;  %v2804_v8 = vcombine.low %v1982_v63, %v1986_v37 }
 0x4cd   : > { %v2407_v2 = vrot.slane %v2393_v7, %v4631_v44  ;;  %v2811_v42 = vrot.slane %v2801_v54, %v4631_v44  ;;  %v2818_v40 = vrot.slane %v2802_v28, %v4631_v44  ;;  %v2825_v30 = vrot.slane %v2803_v0, %v4631_v44 }
 0x4ce   : > { %v1774_v50 = vrot.slane %v4743_v47, %v4596_v39  ;;  %v1778_v60 = vrot.slane %v4743_v47, %v4601_v48  ;;  %v1782_v49 = vrot.slane %v4743_v47, %v4613_v61  ;;  %v2832_v55 = vrot.slane %v2804_v8, %v4631_v44 }
 0x4cf   : > { %v2408_v52 = vcombine.low %v2400_v43, %v2407_v2  ;;  %v2833_v9 = vcombine.low %v2811_v42, %v2818_v40  ;;  %v1786_v16 = vrot.slane %v4743_v47, %v4618_v53  ;;  %v1790_v35 = vrot.slane %v4743_v47, %v4621_v36 }
 0x4d0   : > { %v1794_v20 = vrot.slane %v4743_v47, %v4624_v18  ;;  %v2507_v25 = vcombine.low %v1766_v23, %v1770_v19  ;;  %v2508_v62 = vcombine.low %v1774_v50, %v1778_v60  ;;  %v2834_v12 = vcombine.low %v2825_v30, %v2832_v55 }
 0x4d1   : > { %3062 = vperm.xlu1 %3627, %v2408_v52   ;;  %v2841_v38 = vrot.slane %v2833_v9, %v4631_v44  ;;  %v2509_v21 = vcombine.low %v1782_v49, %v1786_v16  ;;  %v1894_v46 = vrot.slane %v4802_v51, %v4587_v57  ;;  %v1898_v56 = vrot.slane %v4802_v51, %v4593_v4 }
 0x4d2   : > { %v2510_v17 = vcombine.low %v1790_v35, %v1794_v20  ;;  %v2517_v45 = vrot.slane %v2507_v25, %v4631_v44  ;;  %v2524_v11 = vrot.slane %v2508_v62, %v4631_v44  ;;  %v2848_v47 = vrot.slane %v2834_v12, %v4631_v44 }
 0x4d3   : > { %v2531_v27 = vrot.slane %v2509_v21, %v4631_v44  ;;  %v1902_v26 = vrot.slane %v4802_v51, %v4596_v39  ;;  %v1906_v29 = vrot.slane %v4802_v51, %v4601_v48  ;;  %v1910_v1 = vrot.slane %v4802_v51, %v4613_v61 }
 0x4d4   : > { %v2538_v3 = vrot.slane %v2510_v17, %v4631_v44  ;;  %v2539_v5 = vcombine.low %v2517_v45, %v2524_v11  ;;  %v1914_v6 = vrot.slane %v4802_v51, %v4618_v53  ;;  %v2849_v32 = vcombine.low %v2841_v38, %v2848_v47 }
 0x4d5   : > { %v1918_v41 = vrot.slane %v4802_v51, %v4621_v36  ;;  %v1922_v14 = vrot.slane %v4802_v51, %v4624_v18  ;;  %v2703_v33 = vcombine.low %v1894_v46, %v1898_v56  ;;  %v2704_v37 = vcombine.low %v1902_v26, %v1906_v29 }
 0x4d6   : > { %v2540_v63 = vcombine.low %v2531_v27, %v2538_v3  ;;  %v2547_v7 = vrot.slane %v2539_v5, %v4631_v44  ;;  %v2705_v54 = vcombine.low %v1910_v1, %v1914_v6  ;;  %3089 = vperm.xlu0 %3628, %v2849_v32   ;;  %v1862_v0 = vrot.slane %v4739_v22, %v4587_v57 }
 0x4d7   : > { %v2706_v28 = vcombine.low %v1918_v41, %v1922_v14  ;;  %v2713_v43 = vrot.slane %v2703_v33, %v4631_v44  ;;  %v1866_v23 = vrot.slane %v4739_v22, %v4593_v4  ;;  %v2720_v51 = vrot.slane %v2704_v37, %v4631_v44 }
 0x4d8   : > { %v2554_v19 = vrot.slane %v2540_v63, %v4631_v44  ;;  %v2727_v2 = vrot.slane %v2705_v54, %v4631_v44  ;;  %v1870_v8 = vrot.slane %v4739_v22, %v4596_v39  ;;  %v1874_v40 = vrot.slane %v4739_v22, %v4601_v48 }
 0x4d9   : > { %v2734_v42 = vrot.slane %v2706_v28, %v4631_v44  ;;  %v1878_v30 = vrot.slane %v4739_v22, %v4613_v61  ;;  %v1882_v50 = vrot.slane %v4739_v22, %v4618_v53  ;;  %v2735_v49 = vcombine.low %v2713_v43, %v2720_v51 }
 0x4da   : > { %v2555_v60 = vcombine.low %v2547_v7, %v2554_v19  ;;  %v1886_v52 = vrot.slane %v4739_v22, %v4621_v36  ;;  %v1890_v55 = vrot.slane %v4739_v22, %v4624_v18  ;;  %v2654_v16 = vcombine.low %v1862_v0, %v1866_v23 }
 0x4db   : > { %v2736_v9 = vcombine.low %v2727_v2, %v2734_v42  ;;  %v2655_v35 = vcombine.low %v1870_v8, %v1874_v40  ;;  %v2656_v20 = vcombine.low %v1878_v30, %v1882_v50  ;;  %v2743_v25 = vrot.slane %v2735_v49, %v4631_v44 }
 0x4dc   : > { %3071 = vperm.xlu1 %3627, %v2555_v60   ;;  %v2657_v62 = vcombine.low %v1886_v52, %v1890_v55  ;;  %v2054_v12 = vrot.slane %v4876_v24, %v4587_v57  ;;  %v2058_v38 = vrot.slane %v4876_v24, %v4593_v4  ;;  %v2664_v46 = vrot.slane %v2654_v16, %v4631_v44 }
 0x4dd   : > { %v2750_v21 = vrot.slane %v2736_v9, %v4631_v44  ;;  %v2671_v22 = vrot.slane %v2655_v35, %v4631_v44  ;;  %v2678_v17 = vrot.slane %v2656_v20, %v4631_v44  ;;  %v2062_v11 = vrot.slane %v4876_v24, %v4596_v39 }
 0x4de   : > { %v2685_v45 = vrot.slane %v2657_v62, %v4631_v44  ;;  %v2066_v56 = vrot.slane %v4876_v24, %v4601_v48  ;;  %v2070_v47 = vrot.slane %v4876_v24, %v4613_v61  ;;  %v2074_v29 = vrot.slane %v4876_v24, %v4618_v53 }
 0x4df   : > { %v2751_v27 = vcombine.low %v2743_v25, %v2750_v21  ;;  %v2686_v26 = vcombine.low %v2664_v46, %v2671_v22  ;;  %v2078_v3 = vrot.slane %v4876_v24, %v4621_v36  ;;  %v2082_v1 = vrot.slane %v4876_v24, %v4624_v18 }
 0x4e0   : > { %v2687_v5 = vcombine.low %v2678_v17, %v2685_v45  ;;  %v2948_v6 = vcombine.low %v2054_v12, %v2058_v38  ;;  %v2949_v32 = vcombine.low %v2062_v11, %v2066_v56  ;;  %v2950_v14 = vcombine.low %v2070_v47, %v2074_v29 }
 0x4e1   : > { %3083 = vperm.xlu0 %3628, %v2751_v27   ;;  %v2694_v41 = vrot.slane %v2686_v26, %v4631_v44  ;;  %v1798_v33 = vrot.slane %v4759_v10, %v4587_v57  ;;  %v1802_v63 = vrot.slane %v4759_v10, %v4593_v4  ;;  %v2951_v37 = vcombine.low %v2078_v3, %v2082_v1 }
 0x4e2   : > { %v2701_v7 = vrot.slane %v2687_v5, %v4631_v44  ;;  %v2958_v54 = vrot.slane %v2948_v6, %v4631_v44  ;;  %v2965_v28 = vrot.slane %v2949_v32, %v4631_v44  ;;  %v2972_v24 = vrot.slane %v2950_v14, %v4631_v44 }
 0x4e3   : > { %v1806_v43 = vrot.slane %v4759_v10, %v4596_v39  ;;  %v1810_v0 = vrot.slane %v4759_v10, %v4601_v48  ;;  %v1814_v23 = vrot.slane %v4759_v10, %v4613_v61  ;;  %v2979_v51 = vrot.slane %v2951_v37, %v4631_v44 }
 0x4e4   : > { %v2702_v19 = vcombine.low %v2694_v41, %v2701_v7  ;;  %v2980_v2 = vcombine.low %v2958_v54, %v2965_v28  ;;  %v1818_v8 = vrot.slane %v4759_v10, %v4618_v53  ;;  %v1822_v42 = vrot.slane %v4759_v10, %v4621_v36 }
 0x4e5   : > { %v1826_v40 = vrot.slane %v4759_v10, %v4624_v18  ;;  %v2556_v30 = vcombine.low %v1798_v33, %v1802_v63  ;;  %v2557_v50 = vcombine.low %v1806_v43, %v1810_v0  ;;  %v2981_v60 = vcombine.low %v2972_v24, %v2979_v51 }
 0x4e6   : > { %3080 = vperm.xlu1 %3627, %v2702_v19   ;;  %v2988_v49 = vrot.slane %v2980_v2, %v4631_v44  ;;  %v2558_v52 = vcombine.low %v1814_v23, %v1818_v8  ;;  %v2086_v55 = vrot.slane %v4913_v13, %v4587_v57  ;;  %v2090_v20 = vrot.slane %v4913_v13, %v4593_v4 }
 0x4e7   : > { %v2559_v9 = vcombine.low %v1822_v42, %v1826_v40  ;;  %v2566_v16 = vrot.slane %v2556_v30, %v4631_v44  ;;  %v2573_v35 = vrot.slane %v2557_v50, %v4631_v44  ;;  %v2995_v10 = vrot.slane %v2981_v60, %v4631_v44 }
 0x4e8   : > { %v2580_v25 = vrot.slane %v2558_v52, %v4631_v44  ;;  %v2094_v62 = vrot.slane %v4913_v13, %v4596_v39  ;;  %v2098_v12 = vrot.slane %v4913_v13, %v4601_v48  ;;  %v2102_v46 = vrot.slane %v4913_v13, %v4613_v61 }
 0x4e9   : > { %v2587_v38 = vrot.slane %v2559_v9, %v4631_v44  ;;  %v2588_v21 = vcombine.low %v2566_v16, %v2573_v35  ;;  %v2106_v22 = vrot.slane %v4913_v13, %v4618_v53  ;;  %v2996_v17 = vcombine.low %v2988_v49, %v2995_v10 }
 0x4ea   : > { %v2110_v45 = vrot.slane %v4913_v13, %v4621_v36  ;;  %v2114_v11 = vrot.slane %v4913_v13, %v4624_v18  ;;  %v2997_v56 = vcombine.low %v2086_v55, %v2090_v20  ;;  %v2998_v26 = vcombine.low %v2094_v62, %v2098_v12 }
 0x4eb   : > { %v2589_v47 = vcombine.low %v2580_v25, %v2587_v38  ;;  %v2596_v27 = vrot.slane %v2588_v21, %v4631_v44  ;;  %v2999_v29 = vcombine.low %v2102_v46, %v2106_v22  ;;  %3098 = vperm.xlu0 %3628, %v2996_v17   ;;  %v1926_v1 = vrot.slane %v4794_v31, %v4587_v57 }
 0x4ec   : > { %v3000_v3 = vcombine.low %v2110_v45, %v2114_v11  ;;  %v3007_v5 = vrot.slane %v2997_v56, %v4631_v44  ;;  %v1930_v6 = vrot.slane %v4794_v31, %v4593_v4  ;;  %v3014_v13 = vrot.slane %v2998_v26, %v4631_v44 }
 0x4ed   : > { %v2603_v32 = vrot.slane %v2589_v47, %v4631_v44  ;;  %v3021_v41 = vrot.slane %v2999_v29, %v4631_v44  ;;  %v1934_v14 = vrot.slane %v4794_v31, %v4596_v39  ;;  %v1938_v63 = vrot.slane %v4794_v31, %v4601_v48 }
 0x4ee   : > { %v3028_v33 = vrot.slane %v3000_v3, %v4631_v44  ;;  %v1942_v7 = vrot.slane %v4794_v31, %v4613_v61  ;;  %v1946_v37 = vrot.slane %v4794_v31, %v4618_v53  ;;  %v3029_v28 = vcombine.low %v3007_v5, %v3014_v13 }
 0x4ef   : > { %v2604_v54 = vcombine.low %v2596_v27, %v2603_v32  ;;  %v1950_v24 = vrot.slane %v4794_v31, %v4621_v36  ;;  %v1954_v43 = vrot.slane %v4794_v31, %v4624_v18  ;;  %v2752_v23 = vcombine.low %v1926_v1, %v1930_v6 }
 0x4f0   : > { %v3030_v0 = vcombine.low %v3021_v41, %v3028_v33  ;;  %v2753_v19 = vcombine.low %v1934_v14, %v1938_v63  ;;  %v2754_v51 = vcombine.low %v1942_v7, %v1946_v37  ;;  %v3037_v2 = vrot.slane %v3029_v28, %v4631_v44 }
 0x4f1   : > { %3074 = vperm.xlu1 %3627, %v2604_v54   ;;  %v2755_v8 = vcombine.low %v1950_v24, %v1954_v43  ;;  %v2022_v42 = vrot.slane %v4829_v15, %v4587_v57  ;;  %v2026_v40 = vrot.slane %v4829_v15, %v4593_v4  ;;  %v2762_v50 = vrot.slane %v2752_v23, %v4631_v44 }
 0x4f2   : > { %v3044_v30 = vrot.slane %v3030_v0, %v4631_v44  ;;  %v2769_v31 = vrot.slane %v2753_v19, %v4631_v44  ;;  %v2776_v60 = vrot.slane %v2754_v51, %v4631_v44  ;;  %v2030_v52 = vrot.slane %v4829_v15, %v4596_v39 }
 0x4f3   : > { %v2783_v49 = vrot.slane %v2755_v8, %v4631_v44  ;;  %v2034_v55 = vrot.slane %v4829_v15, %v4601_v48  ;;  %v2038_v9 = vrot.slane %v4829_v15, %v4613_v61  ;;  %v2042_v20 = vrot.slane %v4829_v15, %v4618_v53 }
 0x4f4   : > { %v3045_v16 = vcombine.low %v3037_v2, %v3044_v30  ;;  %v2784_v35 = vcombine.low %v2762_v50, %v2769_v31  ;;  %v2046_v10 = vrot.slane %v4829_v15, %v4621_v36  ;;  %v2050_v62 = vrot.slane %v4829_v15, %v4624_v18 }
 0x4f5   : > { %v2785_v25 = vcombine.low %v2776_v60, %v2783_v49  ;;  %v2899_v12 = vcombine.low %v2022_v42, %v2026_v40  ;;  %v2900_v38 = vcombine.low %v2030_v52, %v2034_v55  ;;  %v2901_v46 = vcombine.low %v2038_v9, %v2042_v20 }
 0x4f6   : > { %3101 = vperm.xlu0 %3628, %v3045_v16   ;;  %v2792_v21 = vrot.slane %v2784_v35, %v4631_v44  ;;  %v1990_v22 = vrot.slane %v4880_v59, %v4587_v57  ;;  %v1994_v17 = vrot.slane %v4880_v59, %v4593_v4  ;;  %v2902_v11 = vcombine.low %v2046_v10, %v2050_v62 }
 0x4f7   : > { %v2799_v45 = vrot.slane %v2785_v25, %v4631_v44  ;;  %v2909_v56 = vrot.slane %v2899_v12, %v4631_v44  ;;  %v2916_v47 = vrot.slane %v2900_v38, %v4631_v44  ;;  %v2923_v15 = vrot.slane %v2901_v46, %v4631_v44 }
 0x4f8   : > { %v1998_v27 = vrot.slane %v4880_v59, %v4596_v39  ;;  %v2002_v26 = vrot.slane %v4880_v59, %v4601_v48  ;;  %v2006_v57 = vrot.slane %v4880_v59, %v4613_v61  ;;  %v2930_v4 = vrot.slane %v2902_v11, %v4631_v44 }
 0x4f9   : > { %v2800_v29 = vcombine.low %v2792_v21, %v2799_v45  ;;  %v2931_v3 = vcombine.low %v2909_v56, %v2916_v47  ;;  %v2010_v5 = vrot.slane %v4880_v59, %v4618_v53  ;;  %v2014_v1 = vrot.slane %v4880_v59, %v4621_v36 }
 0x4fa   : > { %v2018_v6 = vrot.slane %v4880_v59, %v4624_v18  ;;  %v2850_v39 = vcombine.low %v1990_v22, %v1994_v17  ;;  %v2851_v32 = vcombine.low %v1998_v27, %v2002_v26  ;;  %v2932_v48 = vcombine.low %v2923_v15, %v2930_v4 }
 0x4fb   : > { %3086 = vperm.xlu1 %3627, %v2800_v29   ;;  %v2939_v13 = vrot.slane %v2931_v3, %v4631_v44  ;;  %v2852_v61 = vcombine.low %v2006_v57, %v2010_v5 }
 0x4fc   : > { %v2853_v41 = vcombine.low %v2014_v1, %v2018_v6  ;;  %v2860_v14 = vrot.slane %v2850_v39, %v4631_v44  ;;  %v2867_v53 = vrot.slane %v2851_v32, %v4631_v44  ;;  %v2946_v36 = vrot.slane %v2932_v48, %v4631_v44 }
 0x4fd   : > { %v2874_v33 = vrot.slane %v2852_v61, %v4631_v44 }
 0x4fe   : > { %v2881_v18 = vrot.slane %v2853_v41, %v4631_v44  ;;  %v2882_v59 = vcombine.low %v2860_v14, %v2867_v53  ;;  %v2947_v63 = vcombine.low %v2939_v13, %v2946_v36 }
 0x500   : > { %v2883_v7 = vcombine.low %v2874_v33, %v2881_v18  ;;  %v2890_v37 = vrot.slane %v2882_v59, %v4631_v44  ;;  %3095 = vperm.xlu1 %3627, %v2947_v63  }
 0x502   : > { %v2897_v54 = vrot.slane %v2883_v7, %v4631_v44 }
 0x504   : > { %v2898_v28 = vcombine.low %v2890_v37, %v2897_v54 }
 0x506   : > { %3092 = vperm.xlu1 %3627, %v2898_v28  }
 0x507   : > { %3700 = shalt.err (!%p3697_p3)
}
 0x508   : > { %s3701_s17 = scalar_lea.hbm %s5156_s23, 2432  ;;  %s3705_s21 = scalar_lea.hbm %s5288_s7, 4864 }
 0x509   : > { %p3702_p4 = scmp.ne.s32.totalorder %s5156_s23, %s3701_s17  ;;  %p3706_p9 = scmp.lt.u32.totalorder %s5156_s23, %s5288_s7 }
 0x50a   : > { %p3707_p10 = scmp.lt.u32.totalorder %s3705_s21, %s3701_s17  ;;  %p3709_p12 = scmp.lt.u32.totalorder %s3701_s17, %s5156_s23 }
 0x50b   : > { %p3703_p7 = pnand %p3702_p4, %p3872_p5 }
 0x50c   : > { %p3708_p11 = por %p3707_p10, %p3706_p9 }
 0x50d   : > { %p3704_p8 = pneg %p3703_p7 }
 0x50e   : > { %p3710_p13 = por %p3709_p12, %p3708_p11 }
 0x510   : > { %p3711_p0 = pnand %p3710_p13, %p3704_p8 }
 0x512   : > { %3714 = shalt.err (!%p3711_p0)
}
 0x513   : > { %s3786_s26 = smov 128   ;;  %s3787_s12 = smov 8   ;;  %v5310_v2 = vld [vmem:[#allocation8_spill] sm:$0xff]  ;;  %vm3112_vm10 = vcmask 130112   ;;  %vm3119_vm11 = vcmask 195712   ;;  %vm3126_vm12 = vcmask 261312  }
 0x514   : > { %3579 = dma.vmem_to_hbm [thread:$0]  (%p3872_p5), %s5151_s20, 2432, %s5156_s23, %s3247_s24, %s3786_s26, %s3786_s26, %s3787_s12   ;;  %v3107_v8 = vadd.s32 4294967288, %v5310_v2  ;;  %v3114_v40 = vadd.s32 4294967280, %v5310_v2  ;;  %v5189_v31 = vsub.s32 %v5310_v2, %v4569_v34  ;;  %v3128_v60 = vadd.s32 4294967264, %v5310_v2 }
 0x515   : > { %v3121_v49 = vadd.s32 4294967272, %v5310_v2  ;;  %v3135_v55 = vadd.s32 4294967256, %v5310_v2  ;;  %v3142_v38 = vadd.s32 4294967248, %v5310_v2  ;;  %vm3133_vm13 = vcmask 326912   ;;  %s3377_s20 = sshll.u32 %s4144_s25, 1  ;;  %s3419_s23 = sshll.u32 %s3855_s9, 5 }
 0x516   : > { %v5184_v42 = vsub.s32 %v3107_v8, %v4569_v34  ;;  %v5196_v9 = vsub.s32 %v3114_v40, %v4569_v34  ;;  %v3131_v35 = vsub.s32 %v3128_v60, %v4569_v34  ;;  %v3149_v17 = vadd.s32 4294967240, %v5310_v2  ;;  %s310_s24 = scalar_lea.vmem [#allocation4], %s3377_s20  ;;  %s5238_s19 = scalar_lea.hbm %s5289_s8, %s3419_s23 }
 0x517   : > { %v3124_v10 = vsub.s32 %v3121_v49, %v4569_v34  ;;  %v3138_v62 = vsub.s32 %v3135_v55, %v4569_v34  ;;  %v3145_v11 = vsub.s32 %v3142_v38, %v4569_v34  ;;  %vm3140_vm14 = vcmask 392512   ;;  %s3282_s13 = sshll.u32 %s310_s24, 4  ;;  %s3252_s9 = scalar_lea.sflag [#allocation5], %s4144_s25  ;;  %s5240_s13 = int_to_ptr.vmem [resolvable:$true] %s3282_s13 }
 0x518   : > { %v3156_v56 = vadd.s32 4294967232, %v5310_v2  ;;  %v3163_v27 = vadd.s32 4294967224, %v5310_v2  ;;  %v3152_v57 = vsub.s32 %v3149_v17, %v4569_v34  ;;  %vm3147_vm15 = vcmask 458112   ;;  %s3715_s21 = scalar_lea.vmem %s5240_s13, 32  ;;  %s3788_s22 = smov [#allocation4]  }
 0x519   : > { %v3170_v6 = vadd.s32 4294967216, %v5310_v2  ;;  %vm3154_vm0 = vcmask 523712   ;;  %vm3161_vm1 = vcmask 589312   ;;  %v3177_v14 = vadd.s32 4294967208, %v5310_v2  ;;  %p3716_p1 = scmp.ne.s32.totalorder %s5240_s13, %s3715_s21  ;;  %s3719_s10 = sshll.u32 %s3788_s22, 4  ;;  %s3720_s10 = int_to_ptr.vmem [resolvable:$false] %s3719_s10 }
 0x51a   : > { %v3054_v24 = vpop.permute.xlu1 %3053  ;;  %v3159_v5 = vsub.s32 %v3156_v56, %v4569_v34  ;;  %v3166_v1 = vsub.s32 %v3163_v27, %v4569_v34  ;;  %vm3168_vm2 = vcmask 654912   ;;  %v3184_v18 = vadd.s32 4294967200, %v5310_v2  ;;  %s3721_s26 = scalar_lea.vmem %s3720_s10, 64  ;;  %p3722_p4 = scmp.lt.s32.totalorder %s5240_s13, %s3720_s10 }
 0x51b   : > { %v3118_v12 = vrot.slane %v3054_v24, %v5196_v9  ;;  %v3173_v36 = vsub.s32 %v3170_v6, %v4569_v34  ;;  %v3180_v59 = vsub.s32 %v3177_v14, %v4569_v34  ;;  %vm3175_vm3 = vcmask 720512   ;;  %p3717_p2 = pnand %p3716_p1, %p3872_p5  ;;  %p3723_p7 = scmp.lt.s32.totalorder %s3721_s26, %s3715_s21 }
 0x51c   : > { %v3191_v7 = vadd.s32 4294967192, %v5310_v2  ;;  %v3187_v24 = vsub.s32 %v3184_v18, %v4569_v34  ;;  %vm3182_vm4 = vcmask 786112   ;;  %vm3189_vm5 = vcmask 851712  }
 0x51d   : > { %v3205_v40 = vadd.s32 4294967176, %v5310_v2  ;;  %vm3196_vm6 = vcmask 917312   ;;  %vm3203_vm7 = vcmask 982912   ;;  %vm3210_vm8 = vcmask 1048512   ;;  %p3718_p3 = pneg %p3717_p2  ;;  %p3724_p8 = por %p3723_p7, %p3722_p4 }
 0x51e   : > { %vm3243_vm9 = vcmp.lt.s32.totalorder %v5306_v58, 152 }
 0x51f   : > { %p3725_p9 = pnand %p3724_p8, %p3718_p3 }
 0x521   : > { %v3048_v43 = vpop.permute.xlu1 %3047 }
 0x522   : > { %v3106_v16 = vrot.slane %v3048_v43, %v5189_v31 }
 0x52a   : > { %v3051_v30 = vpop.permute.xlu0 %3050 }
 0x52b   : > { %v3111_v52 = vrot.slane %v3051_v30, %v5184_v42 }
 0x52d   : > { %v3113_v25 = vsel %vm3112_vm10, %v3111_v52, %v3106_v16  ;;  %v3208_v16 = vsub.s32 %v3205_v40, %v4569_v34 }
 0x52e   : > { %v3120_v21 = vsel %vm3119_vm11, %v3118_v12, %v3113_v25 }
 0x531   : > { %v3057_v0 = vpop.permute.xlu1 %3056 }
 0x532   : > { %v3125_v22 = vrot.slane %v3057_v0, %v3124_v10 }
 0x534   : > { %v3127_v15 = vsel %vm3126_vm12, %v3125_v22, %v3120_v21 }
 0x538   : > { %v3066_v23 = vpop.permute.xlu1 %3065 }
 0x539   : > { %v3146_v4 = vrot.slane %v3066_v23, %v3145_v11  ;;  %v3194_v23 = vsub.s32 %v3191_v7, %v4569_v34 }
 0x53d   : > { %v3060_v19 = vpop.permute.xlu1 %3059 }
 0x53e   : > { %v3132_v46 = vrot.slane %v3060_v19, %v3131_v35  ;;  %v3198_v19 = vadd.s32 4294967184, %v5310_v2 }
 0x540   : > { %v3134_v26 = vsel %vm3133_vm13, %v3132_v46, %v3127_v15  ;;  %v3201_v49 = vsub.s32 %v3198_v19, %v4569_v34 }
 0x544   : > { %v3078_v3 = vpop.permute.xlu0 %3077 }
 0x545   : > { %v3174_v37 = vrot.slane %v3078_v3, %v3173_v36 }
 0x54b   : > { %v3069_v51 = vpop.permute.xlu1 %3068 }
 0x54c   : > { %v3153_v48 = vrot.slane %v3069_v51, %v3152_v57 }
 0x550   : > { %v3063_v50 = vpop.permute.xlu1 %3062 }
 0x551   : > { %v3139_v45 = vrot.slane %v3063_v50, %v3138_v62 }
 0x553   : > { %v3141_v29 = vsel %vm3140_vm14, %v3139_v45, %v3134_v26 }
 0x554   : > { %v3148_v39 = vsel %vm3147_vm15, %v3146_v4, %v3141_v29 }
 0x555   : > { %v3090_v13 = vpop.permute.xlu0 %3089  ;;  %v3155_v41 = vsel %vm3154_vm0, %v3153_v48, %v3148_v39 }
 0x556   : > { %v3202_v25 = vrot.slane %v3090_v13, %v3201_v49 }
 0x55b   : > { %v3072_v20 = vpop.permute.xlu1 %3071 }
 0x55c   : > { %v3160_v61 = vrot.slane %v3072_v20, %v3159_v5 }
 0x55e   : > { %v3162_v33 = vsel %vm3161_vm1, %v3160_v61, %v3155_v41 }
 0x560   : > { %v3084_v54 = vpop.permute.xlu0 %3083 }
 0x561   : > { %v3188_v30 = vrot.slane %v3084_v54, %v3187_v24 }
 0x565   : > { %v3081_v47 = vpop.permute.xlu1 %3080 }
 0x566   : > { %v3181_v0 = vrot.slane %v3081_v47, %v3180_v59 }
 0x56a   : > { %v3099_v51 = vpop.permute.xlu0 %3098 }
 0x56b   : > { %v3219_v35 = vrot.slane %v3099_v51, %v5184_v42 }
 0x570   : > { %v3075_v32 = vpop.permute.xlu1 %3074 }
 0x571   : > { %v3167_v53 = vrot.slane %v3075_v32, %v3166_v1 }
 0x573   : > { %v3169_v63 = vsel %vm3168_vm2, %v3167_v53, %v3162_v33 }
 0x574   : > { %v3176_v43 = vsel %vm3175_vm3, %v3174_v37, %v3169_v63 }
 0x575   : > { %v3183_v8 = vsel %vm3182_vm4, %v3181_v0, %v3176_v43  ;;  %v3102_v20 = vpop.permute.xlu0 %3101 }
 0x576   : > { %v3190_v52 = vsel %vm3189_vm5, %v3188_v30, %v3183_v8  ;;  %v3224_v12 = vrot.slane %v3102_v20, %v5196_v9 }
 0x57a   : > { %v3087_v28 = vpop.permute.xlu1 %3086 }
 0x57b   : > { %v3195_v50 = vrot.slane %v3087_v28, %v3194_v23 }
 0x57d   : > { %v3197_v10 = vsel %vm3196_vm6, %v3195_v50, %v3190_v52 }
 0x57e   : > { %v3204_v21 = vsel %vm3203_vm7, %v3202_v25, %v3197_v10 }
 0x57f   : > { %v3096_v60 = vpop.permute.xlu1 %3095 }
 0x580   : > { %v3215_v55 = vrot.slane %v3096_v60, %v5189_v31 }
 0x582   : > { %v3220_v2 = vsel %vm3112_vm10, %v3219_v35, %v3215_v55 }
 0x583   : > { %v3225_v34 = vsel %vm3119_vm11, %v3224_v12, %v3220_v2 }
 0x585   : > { %v3093_v62 = vpop.permute.xlu1 %3092 }
 0x586   : > { %v3209_v38 = vrot.slane %v3093_v62, %v3208_v16 }
 0x588   : > { %v3211_v31 = vsel %vm3210_vm8, %v3209_v38, %v3204_v21 }
 0x589   : > { %v3226_v46 = vcombine.low %v3211_v31, %v3225_v34 }
 0x58b   : > { %v3233_v42 = vrot.slane %v3226_v46, %v4631_v44 }
 0x58d   : > { %v3240_v22 = vrot.slane %v3233_v42, %v4631_v44 }
 0x58f   : > { %3245 = vst.msk [vmem:[%s310_s24] sm:$0x3] %vm3243_vm9, %v3240_v22 }
 0x590   : > { %3728 = shalt.err (!%p3725_p9)
}
 0x591   : > { %s3729_s25 = scalar_lea.hbm %s5238_s19, 32  ;;  %s3733_s23 = scalar_lea.hbm %s5289_s8, 64 }
 0x592   : > { %p3730_p10 = scmp.ne.s32.totalorder %s5238_s19, %s3729_s25  ;;  %p3734_p13 = scmp.lt.u32.totalorder %s5238_s19, %s5289_s8 }
 0x593   : > { %p3735_p0 = scmp.lt.u32.totalorder %s3733_s23, %s3729_s25  ;;  %p3737_p2 = scmp.lt.u32.totalorder %s3729_s25, %s5238_s19 }
 0x594   : > { %p3731_p11 = pnand %p3730_p10, %p3872_p5 }
 0x595   : > { %p3736_p1 = por %p3735_p0, %p3734_p13 }
 0x596   : > { %p3732_p12 = pneg %p3731_p11 }
 0x597   : > { %p3738_p3 = por %p3737_p2, %p3736_p1 }
 0x599   : > { %p3739_p4 = pnand %p3738_p3, %p3732_p12 }
 0x59b   : > { %3742 = shalt.err (!%p3739_p4)
}
 0x59c   : > { %3580 = dma.vmem_to_hbm [thread:$0]  (%p3872_p5), %s5240_s13, 32, %s5238_s19, %s3252_s9  }
 0x59d PF: > { %p3590_p7 = scmp.ge.s32.totalorder %s3781_s30, 2  ;;  %s3294_s18 = sand.u32 1, %s3769_s27  }
 0x59e   : > { %s3295_s21 = scalar_lea.sflag [#allocation3], %s3294_s18 }
 0x59f   : > { %p3584_p8 = pnand %p3590_p7, %p3876_p6 }
 0x5a1   : > { %3760 = dma.done.wait (!%p3584_p8), %s3295_s21, 2432  }
 0x5a2   : > { %3762 = vsyncadd (!%p3584_p8), %s3295_s21, 4294964864  ;;  %s3304_s22 = scalar_lea.sflag [#allocation5], %s3294_s18 }
 0x5a3   : > { %3764 = dma.done.wait (!%p3584_p8), %s3304_s22, 32  }
 0x5a4   : > { %3766 = vsyncadd (!%p3584_p8), %s3304_s22, 4294967264  ;;  %p22_p5 = scmp.ge.s32.totalorder %s3859_s11, 4   ;;  %s5311_s27 = smov %s3773_s28 }
 0x5a5   : > { %s5312_s28 = smov %s3777_s29  ;;  %s5313_s29 = smov %s3870_s14 }
 0x5a6   : > { %s5314_s30 = smov %s3859_s11  ;;  %24 = sbr.rel (!%p22_p5) target bundleno = 5 (0x5), region = 100 }
 0x5ad   :  { %3309 = vsyncpa [#allocation3], 1 }
 0x5ae   :  { %3311 = vsyncpa [#allocation3 + $0x1], 1 }
 0x5af   :  { %3312 = vsyncpa [#allocation5], 1 }
 0x5b0   :  { %3314 = vsyncpa [#allocation5 + $0x1], 1 }

// kernel: tpu_custom_call.1
= control target key start
LH: loop header
LB: loop body
LE: loop exit
PB: predicated region body
PF: predicated region fallthrough
CT: control target
= control target key end

     0   :  { %14 = vsyncpa [#allocation3], 0  ;;  %s5281_s0 = inlined_call_operand.vmem [shape: f32[300,64], index: 0, kind: input, shape index: {}]   ;;  %s5282_s1 = inlined_call_operand.vmem [shape: bf16[64,128], index: 1, kind: input, shape index: {}]   ;;  %s5283_s2 = inlined_call_operand.vmem [shape: f32[1,128], index: 2, kind: input, shape index: {}]   ;;  %s5284_s3 = inlined_call_operand.vmem [shape: bf16[128,128], index: 3, kind: input, shape index: {}]   ;;  %s5285_s4 = inlined_call_operand.vmem [shape: f32[1,128], index: 4, kind: input, shape index: {}]   ;;  %s5286_s5 = inlined_call_operand.vmem [shape: bf16[128,128], index: 5, kind: input, shape index: {}]   ;;  %s5287_s6 = inlined_call_operand.vmem [shape: f32[1,128], index: 6, kind: input, shape index: {}]   ;;  %s5288_s7 = inlined_call_operand.hbm [shape: f32[300,128], index: 7, kind: output, shape index: {0}]   ;;  %s5289_s8 = inlined_call_operand.hbm [shape: s32[2,1,152], index: 8, kind: output, shape index: {1}]  }
   0x1   :  { %16 = vsyncpa [#allocation3 + $0x1], 0 }
   0x2   :  { %17 = vsyncpa [#allocation5], 0 }
   0x3   :  { %19 = vsyncpa [#allocation5 + $0x1], 0  ;;  %s3834_s27 = smov 0   ;;  %s3836_s28 = smov 0  }
   0x4   :  { %s3838_s29 = smov 0   ;;  %s3840_s30 = smov 0  }
   0x5 LB: > { %s3855_s9 = sadd.s32 4294967295, %s3781_s30   ;;  %s3373_s10 = sadd.s32 4294967294, %s3781_s30   ;;  %s3781_s30 = sphi %s3840_s30, %s5314_s30   ;;  %s3777_s29 = sphi %s3838_s29, %s5313_s29   ;;  %s3773_s28 = sphi %s3836_s28, %s5312_s28   ;;  %s3769_s27 = sphi %s3834_s27, %s5311_s27  }
   0x6   : > { %s3859_s11 = sadd.s32 1, %s3781_s30   ;;  %s184_s12 = sadd.s32 1, %s3777_s29 }
   0x7   : > { %s181_s13 = ssub.s32 %s3781_s30, %s3859_s11  ;;  %p194_p0 = scmp.ne.s32.totalorder %s3777_s29, %s3773_s28 }
   0x8   : > { %p182_p1 = scmp.eq.s32.totalorder %s181_s13, 0  ;;  %p195_p2 = scmp.eq.s32.totalorder %s3855_s9, 1 }
   0x9   : > { %p200_p3 = scmp.ne.s32.totalorder %s3773_s28, %s3769_s27  ;;  %p201_p4 = scmp.eq.s32.totalorder %s3373_s10, 1 }
   0xa   : > { %s3870_s14 = scalar_select %p182_p1, %s3777_s29, %s184_s12  }
   0xb   : > { %p3872_p5 = por %p195_p2, %p194_p0  ;;  %p3876_p6 = por %p201_p4, %p200_p3 }
   0xc   : > { %p3376_p7 = scmp.ge.s32.totalorder %s3781_s30, 1  ;;  %p272_p8 = scmp.lt.s32.totalorder %s3781_s30, 3 }
   0xe   : > { %p273_p9 = pnand %p3376_p7, %p272_p8 }
  0x10   : > { %276 = sbr.rel (%p273_p9) target bundleno = 1437 (0x59d), region = 48 }
  0x17   : > { %v3629_v0 = vld [vmem:[%s5282_s1] sm:$0xff]   ;;  %s311_s19 = smul.u32 19, %s3855_s9  ;;  %v3630_v1 = vld [vmem:[%s5282_s1 + $0x8] sm:$0xff]   ;;  %v3631_v2 = vld [vmem:[%s5282_s1 + $0x10] sm:$0xff]   ;;  %vm387_vm0 = vcmask 523264   ;;  %s4144_s25 = sand.u32 1, %s3773_s28  }
  0x18   : > { %3470 = vmatprep.subr.bf16.mxu0 %v3629_v0  ;;  %3570 = vmatprep.subr.bf16.mxu1 %v3629_v0  ;;  %v3632_v3 = vld [vmem:[%s5282_s1 + $0x18] sm:$0xff]   ;;  %v3633_v33 = vld [vmem:[%s5284_s3] sm:$0xff]   ;;  %v3634_v34 = vld [vmem:[%s5284_s3 + $0x8] sm:$0xff]   ;;  %s3578_s26 = smul.u32 152, %s4144_s25 }
  0x19   : > { %p312_p10 = scmp.lt.s32.totalorder %s311_s19, 37  ;;  %3471 = vmatpush3.bf16.msra.mxu0 %v3629_v0  ;;  %3574 = vmatpush3.bf16.msra.mxu1 %v3629_v0  ;;  %v3635_v35 = vld [vmem:[%s5284_s3 + $0x10] sm:$0xff]   ;;  %v3636_v36 = vld [vmem:[%s5284_s3 + $0x18] sm:$0xff]   ;;  %v3637_v37 = vld [vmem:[%s5284_s3 + $0x20] sm:$0xff]  }
  0x1a   : > { %3472 = vmatprep.subr.bf16.mxu0 %v3630_v1  ;;  %3571 = vmatprep.subr.bf16.mxu1 %v3630_v1  ;;  %v3638_v38 = vld [vmem:[%s5284_s3 + $0x28] sm:$0xff]   ;;  %v3639_v39 = vld [vmem:[%s5284_s3 + $0x30] sm:$0xff]   ;;  %v3640_v40 = vld [vmem:[%s5284_s3 + $0x38] sm:$0xff]   ;;  %s4154_s13 = scalar_lea.vmem [#allocation2], %s3578_s26 }
  0x1b   : > { %s5316_s19 = smov (!%p312_p10, %s311_s19), 37  ;;  %v3641_v41 = vld [vmem:[%s5286_s5] sm:$0xff]   ;;  %v3642_v42 = vld [vmem:[%s5286_s5 + $0x8] sm:$0xff]   ;;  %v3643_v43 = vld [vmem:[%s5286_s5 + $0x10] sm:$0xff]   ;;  %s3265_s20 = sshll.u32 %s4154_s13, 4  ;;  %s5151_s20 = int_to_ptr.vmem [resolvable:$true] %s3265_s20 }
  0x1c   : > { %s3378_s24 = sshll.u32 %s5316_s19, 3  ;;  %v3644_v44 = vld [vmem:[%s5286_s5 + $0x18] sm:$0xff]   ;;  %v3645_v45 = vld [vmem:[%s5286_s5 + $0x20] sm:$0xff]   ;;  %v3646_v46 = vld [vmem:[%s5286_s5 + $0x28] sm:$0xff]   ;;  %s3418_s19 = smul.u32 2432, %s3855_s9 }
  0x1d   : > { %3473 = vmatpush3.bf16.msra.mxu0 %v3630_v1  ;;  %s3895_s10 = scalar_lea.vmem %s5281_s0, %s3378_s24  ;;  %3575 = vmatpush3.bf16.msra.mxu1 %v3630_v1  ;;  %v3974_v47 = vld [vmem:[%s5283_s2] ss:$0 sm:$0xff]  ;;  %s3247_s24 = scalar_lea.sflag [#allocation3], %s4144_s25 }
  0x1e   : > { %3474 = vmatprep.subr.bf16.mxu0 %v3631_v2  ;;  %v319_v4 = vld [vmem:[%s3895_s10] sm:$0xff]  ;;  %v320_v5 = vld [vmem:[%s3895_s10 + $0x8] sm:$0xff]  ;;  %3572 = vmatprep.subr.bf16.mxu1 %v3631_v2  ;;  %v321_v8 = vld [vmem:[%s3895_s10 + $0x10] sm:$0xff]  ;;  %s5156_s23 = scalar_lea.hbm %s5288_s7, %s3418_s19  ;;  %s3687_s26 = scalar_lea.vmem %s5151_s20, 2432 }
  0x1f   : > { %v338_v6 = vpack.c.bf16 %v320_v5, %v319_v4  ;;  %v335_v7 = vld [vmem:[%s3895_s10 + $0x80] sm:$0xff]  ;;  %v322_v9 = vld [vmem:[%s3895_s10 + $0x18] sm:$0xff]  ;;  %v336_v10 = vld [vmem:[%s3895_s10 + $0x88] sm:$0xff]  ;;  %p3688_p11 = scmp.ne.s32.totalorder %s5151_s20, %s3687_s26 }
  0x20   : > { %v323_v11 = vld [vmem:[%s3895_s10 + $0x20] sm:$0xff]  ;;  %v324_v12 = vld [vmem:[%s3895_s10 + $0x28] sm:$0xff]  ;;  %v346_v13 = vpack.c.bf16 %v336_v10, %v335_v7  ;;  %v337_v14 = vld [vmem:[%s3895_s10 + $0x90] sm:$0xff]  ;;  %v339_v15 = vpack.c.bf16 %v322_v9, %v321_v8 }
  0x21   : > { %3475 = vmatpush3.bf16.msra.mxu0 %v3631_v2  ;;  %3478 = vmatprep.mubr.msk.bf16.mxu0 %vm387_vm0, %v338_v6  ;;  %v340_v16 = vpack.c.bf16 %v324_v12, %v323_v11  ;;  %v347_v17 = vpack.c.bf16 %v337_v14, %v337_v14  ;;  %v325_v18 = vld [vmem:[%s3895_s10 + $0x30] sm:$0xff]  ;;  %v326_v19 = vld [vmem:[%s3895_s10 + $0x38] sm:$0xff]  ;;  %v327_v20 = vld [vmem:[%s3895_s10 + $0x40] sm:$0xff]  ;;  %p3689_p12 = pnand %p3688_p11, %p3872_p5 }
  0x22   : > { %3476 = vmatprep.subr.bf16.mxu0 %v3632_v3  ;;  %3576 = vmatpush3.bf16.msra.mxu1 %v3631_v2  ;;  %v328_v21 = vld [vmem:[%s3895_s10 + $0x48] sm:$0xff]  ;;  %v341_v22 = vpack.c.bf16 %v326_v19, %v325_v18  ;;  %v329_v24 = vld [vmem:[%s3895_s10 + $0x50] sm:$0xff]  ;;  %v330_v25 = vld [vmem:[%s3895_s10 + $0x58] sm:$0xff] }
  0x23   : > { %3573 = vmatprep.subr.bf16.mxu1 %v3632_v3  ;;  %3494 = vmatprep.mubr.msk.bf16.mxu1 %vm387_vm0, %v346_v13  ;;  %v342_v23 = vpack.c.bf16 %v328_v21, %v327_v20  ;;  %v331_v26 = vld [vmem:[%s3895_s10 + $0x60] sm:$0xff]  ;;  %v332_v27 = vld [vmem:[%s3895_s10 + $0x68] sm:$0xff]  ;;  %v343_v28 = vpack.c.bf16 %v330_v25, %v329_v24  ;;  %v333_v30 = vld [vmem:[%s3895_s10 + $0x70] sm:$0xff]  ;;  %p3690_p13 = pneg %p3689_p12 }
  0x24   : > { %v344_v29 = vpack.c.bf16 %v332_v27, %v331_v26  ;;  %v334_v31 = vld [vmem:[%s3895_s10 + $0x78] sm:$0xff]  ;;  %s3785_s10 = smov [#allocation2]  }
  0x25   : > { %3477 = vmatpush3.bf16.msra.mxu0 %v3632_v3  ;;  %v345_v32 = vpack.c.bf16 %v334_v31, %v333_v30  ;;  %s3691_s12 = sshll.u32 %s3785_s10, 4  ;;  %s3692_s12 = int_to_ptr.vmem [resolvable:$false] %s3691_s12 }
  0x26   : > { %3577 = vmatpush3.bf16.msra.mxu1 %v3632_v3  ;;  %3534 = vmatprep.subr.bf16.mxu0 %v3641_v41  ;;  %p3694_p0 = scmp.lt.s32.totalorder %s5151_s20, %s3692_s12 }
  0x27   : > { %3498 = vmatprep.subr.bf16.mxu1 %v3633_v33 }
  0x28   : > { %3479 = vmatmul.mubr.msk.bf16.vlgmr.msra.gmra.mrb[0].mxu0 %vm387_vm0, %v339_v15 }
  0x29   : > { %3482 = vmatprep.mubr.msk.bf16.mxu0 %vm387_vm0, %v340_v16  ;;  %3495 = vmatmul.mubr.msk.bf16.vlgmr.msra.gmra.mrb[0].mxu1 %vm387_vm0, %v347_v17 }
  0x2a   : > { %3499 = vmatpush3.bf16.msra.mxu1 %v3633_v33  ;;  %3535 = vmatpush3.bf16.msra.mxu0 %v3641_v41 }
  0x2b   : > { %3500 = vmatprep.subr.bf16.mxu1 %v3634_v34  ;;  %3536 = vmatprep.subr.bf16.mxu0 %v3642_v42 }
  0x2e   : > { %3501 = vmatpush3.bf16.msra.mxu1 %v3634_v34  ;;  %3537 = vmatpush3.bf16.msra.mxu0 %v3642_v42 }
  0x2f   : > { %3502 = vmatprep.subr.bf16.mxu1 %v3635_v35  ;;  %3538 = vmatprep.subr.bf16.mxu0 %v3643_v43 }
  0x30   : > { %3483 = vmatmul.mubr.msk.bf16.gmra.mrb[4].mxu0 %vm387_vm0, %v341_v22 }
  0x31   : > { %3486 = vmatprep.mubr.msk.bf16.mxu0 %vm387_vm0, %v342_v23 }
  0x32   : > { %3503 = vmatpush3.bf16.msra.mxu1 %v3635_v35  ;;  %3539 = vmatpush3.bf16.msra.mxu0 %v3643_v43 }
  0x33   : > { %3504 = vmatprep.subr.bf16.mxu1 %v3636_v36  ;;  %3540 = vmatprep.subr.bf16.mxu0 %v3644_v44 }
  0x36   : > { %3505 = vmatpush3.bf16.msra.mxu1 %v3636_v36  ;;  %3541 = vmatpush3.bf16.msra.mxu0 %v3644_v44 }
  0x37   : > { %3506 = vmatprep.subr.bf16.mxu1 %v3637_v37  ;;  %3542 = vmatprep.subr.bf16.mxu0 %v3645_v45 }
  0x38   : > { %3487 = vmatmul.mubr.msk.bf16.gmra.mrb[8].mxu0 %vm387_vm0, %v343_v28 }
  0x39   : > { %3490 = vmatprep.mubr.msk.bf16.mxu0 %vm387_vm0, %v344_v29 }
  0x3a   : > { %3507 = vmatpush3.bf16.msra.mxu1 %v3637_v37  ;;  %3543 = vmatpush3.bf16.msra.mxu0 %v3645_v45 }
  0x3b   : > { %3508 = vmatprep.subr.bf16.mxu1 %v3638_v38  ;;  %3544 = vmatprep.subr.bf16.mxu0 %v3646_v46 }
  0x3e   : > { %3509 = vmatpush3.bf16.msra.mxu1 %v3638_v38  ;;  %3545 = vmatpush3.bf16.msra.mxu0 %v3646_v46 }
  0x3f   : > { %3510 = vmatprep.subr.bf16.mxu1 %v3639_v39 }
  0x40   : > { %3491 = vmatmul.mubr.msk.bf16.gmra.mrb[12].mxu0 %vm387_vm0, %v345_v32 }
  0x42   : > { %3511 = vmatpush3.bf16.msra.mxu1 %v3639_v39 }
  0x43   : > { %3512 = vmatprep.subr.bf16.mxu1 %v3640_v40 }
  0x46   : > { %3513 = vmatpush3.bf16.msra.mxu1 %v3640_v40 }
  0xfb   : > { %v3480_v48 = vpop.f32.mrb[0].mxu0 }
  0xfc   : > { %v3977_v49 = vadd.f32 %v3480_v48, %v3974_v47  ;;  %v452_v50 = vpop.f32.mrb[1].mxu0  ;;  %v3496_v51 = vpop.f32.mrb[0].mxu1 }
  0xfd   : > { %v3980_v52 = vadd.f32 %v3974_v47, %v452_v50  ;;  %v3481_v53 = vpop.f32.mrb[2].mxu0  ;;  %v3983_v54 = vadd.f32 %v3496_v51, %v3974_v47  ;;  %v516_v55 = vpop.f32.mrb[1].mxu1 }
  0xfe   : > { %v532_v56 = vmul.f32 %v3977_v49, %v3977_v49  ;;  %v3988_v57 = vadd.f32 %v3481_v53, %v3974_v47  ;;  %v455_v58 = vpop.f32.mrb[3].mxu0  ;;  %v3991_v59 = vadd.f32 %v3974_v47, %v516_v55  ;;  %v3497_v60 = vpop.f32.mrb[2].mxu1 }
  0xff   : > { %v530_v61 = vmul.f32 %v3980_v52, %v3980_v52  ;;  %v3996_v62 = vadd.f32 %v3974_v47, %v455_v58  ;;  %v548_v63 = vmul.f32 %v3983_v54, %v3983_v54  ;;  %v519_v0 = vpop.f32.mrb[3].mxu1 }
 0x100   : > { %v551_v1 = vmul.f32 %v532_v56, %v3977_v49  ;;  %v533_v2 = vmul.f32 %v3988_v57, %v3988_v57  ;;  %v546_v3 = vmul.f32 %v3991_v59, %v3991_v59  ;;  %v4013_v13 = vadd.f32 %v3974_v47, %v519_v0 }
 0x101   : > { %v549_v4 = vmul.f32 %v530_v61, %v3980_v52  ;;  %v531_v5 = vmul.f32 %v3996_v62, %v3996_v62  ;;  %v567_v6 = vmul.f32 %v548_v63, %v3983_v54 }
 0x102   : > { %v570_v7 = vmul.f32 0.044715, %v551_v1  ;;  %v552_v8 = vmul.f32 %v533_v2, %v3988_v57  ;;  %v565_v9 = vmul.f32 %v546_v3, %v3991_v59  ;;  %v547_v39 = vmul.f32 %v4013_v13, %v4013_v13 }
 0x103   : > { %v568_v10 = vmul.f32 0.044715, %v549_v4  ;;  %v550_v11 = vmul.f32 %v531_v5, %v3996_v62  ;;  %v3484_v12 = vpop.f32.mrb[4].mxu0  ;;  %v586_v18 = vmul.f32 0.044715, %v567_v6 }
 0x104   : > { %v589_v14 = vadd.f32 %v570_v7, %v3977_v49  ;;  %v571_v15 = vmul.f32 0.044715, %v552_v8  ;;  %v4017_v16 = vadd.f32 %v3484_v12, %v3974_v47  ;;  %v468_v17 = vpop.f32.mrb[5].mxu0  ;;  %v584_v23 = vmul.f32 0.044715, %v565_v9 }
 0x105   : > { %v587_v19 = vadd.f32 %v568_v10, %v3980_v52  ;;  %v569_v20 = vmul.f32 0.044715, %v550_v11  ;;  %v4021_v21 = vadd.f32 %v3974_v47, %v468_v17  ;;  %v3485_v22 = vpop.f32.mrb[6].mxu0  ;;  %v4045_v42 = vadd.f32 %v586_v18, %v3983_v54 }
 0x106   : > { %v608_v24 = vmul.f32 0.7978846, %v589_v14  ;;  %v590_v25 = vadd.f32 %v571_v15, %v3988_v57  ;;  %v536_v26 = vmul.f32 %v4017_v16, %v4017_v16  ;;  %v4027_v27 = vadd.f32 %v3485_v22, %v3974_v47  ;;  %v471_v28 = vpop.f32.mrb[7].mxu0 }
 0x107   : > { %v606_v29 = vmul.f32 0.7978846, %v587_v19  ;;  %v588_v30 = vadd.f32 %v569_v20, %v3996_v62  ;;  %v534_v31 = vmul.f32 %v4021_v21, %v4021_v21  ;;  %v4033_v32 = vadd.f32 %v3974_v47, %v471_v28 }
 0x108   : > { %3649 = vtanh.f32 %v608_v24  ;;  %v609_v33 = vmul.f32 0.7978846, %v590_v25  ;;  %v555_v34 = vmul.f32 %v536_v26, %v4017_v16  ;;  %v537_v35 = vmul.f32 %v4027_v27, %v4027_v27 }
 0x109   : > { %v607_v36 = vmul.f32 0.7978846, %v588_v30  ;;  %v553_v37 = vmul.f32 %v534_v31, %v4021_v21  ;;  %v535_v38 = vmul.f32 %v4033_v32, %v4033_v32  ;;  %v603_v45 = vadd.f32 %v584_v23, %v3991_v59 }
 0x10a   : > { %3651 = vtanh.f32 %v609_v33  ;;  %v574_v40 = vmul.f32 0.044715, %v555_v34  ;;  %v556_v41 = vmul.f32 %v537_v35, %v4027_v27  ;;  %v566_v60 = vmul.f32 %v547_v39, %v4013_v13 }
 0x10b   : > { %3653 = vtanh.f32 %v606_v29  ;;  %v572_v43 = vmul.f32 0.044715, %v553_v37  ;;  %v554_v44 = vmul.f32 %v535_v38, %v4033_v32  ;;  %v3488_v46 = vpop.f32.mrb[8].mxu0  ;;  %v622_v58 = vmul.f32 0.7978846, %v603_v45 }
 0x10c   : > { %3655 = vtanh.f32 %v607_v36  ;;  %v593_v48 = vadd.f32 %v574_v40, %v4017_v16  ;;  %v575_v50 = vmul.f32 0.044715, %v556_v41  ;;  %v4051_v51 = vadd.f32 %v3488_v46, %v3974_v47  ;;  %v484_v53 = vpop.f32.mrb[9].mxu0 }
 0x10d   : > { %v591_v55 = vadd.f32 %v572_v43, %v4021_v21  ;;  %v573_v56 = vmul.f32 0.044715, %v554_v44  ;;  %v3489_v61 = vpop.f32.mrb[10].mxu0  ;;  %v4059_v2 = vadd.f32 %v3974_v47, %v484_v53  ;;  %3657 = vtanh.f32 %v622_v58 }
 0x10e   : > { %v612_v63 = vmul.f32 0.7978846, %v593_v48  ;;  %v594_v0 = vadd.f32 %v575_v50, %v4027_v27  ;;  %v540_v1 = vmul.f32 %v4051_v51, %v4051_v51  ;;  %v487_v3 = vpop.f32.mrb[11].mxu0  ;;  %v585_v6 = vmul.f32 0.044715, %v566_v60 }
 0x10f   : > { %v610_v4 = vmul.f32 0.7978846, %v591_v55  ;;  %v592_v5 = vadd.f32 %v573_v56, %v4033_v32  ;;  %v538_v9 = vmul.f32 %v4059_v2, %v4059_v2  ;;  %v4067_v12 = vadd.f32 %v3489_v61, %v3974_v47 }
 0x110   : > { %3659 = vtanh.f32 %v612_v63  ;;  %v613_v7 = vmul.f32 0.7978846, %v594_v0  ;;  %v559_v8 = vmul.f32 %v540_v1, %v4051_v51  ;;  %v604_v11 = vadd.f32 %v585_v6, %v4013_v13 }
 0x111   : > { %3661 = vtanh.f32 %v610_v4  ;;  %v611_v10 = vmul.f32 0.7978846, %v592_v5  ;;  %v557_v17 = vmul.f32 %v538_v9, %v4059_v2  ;;  %v4071_v18 = vadd.f32 %v3974_v47, %v487_v3 }
 0x112   : > { %v3650_v14 = vpop.eup %3649  ;;  %3663 = vtanh.f32 %v613_v7  ;;  %v578_v15 = vmul.f32 0.044715, %v559_v8  ;;  %v623_v20 = vmul.f32 0.7978846, %v604_v11  ;;  %v541_v22 = vmul.f32 %v4067_v12, %v4067_v12 }
 0x113   : > { %v646_v19 = vadd.f32 1.0, %v3650_v14  ;;  %3665 = vtanh.f32 %v611_v10  ;;  %v3492_v23 = vpop.f32.mrb[12].mxu0  ;;  %v576_v26 = vmul.f32 0.044715, %v557_v17  ;;  %v539_v28 = vmul.f32 %v4071_v18, %v4071_v18 }
 0x114   : > { %v3652_v24 = vpop.eup %3651  ;;  %v597_v25 = vadd.f32 %v578_v15, %v4051_v51  ;;  %v4079_v29 = vadd.f32 %v3492_v23, %v3974_v47  ;;  %v500_v30 = vpop.f32.mrb[13].mxu0  ;;  %3667 = vtanh.f32 %v623_v20  ;;  %v560_v35 = vmul.f32 %v541_v22, %v4067_v12 }
 0x115   : > { %v3654_v31 = vpop.eup %3653  ;;  %v665_v33 = vmul.f32 0.5, %v646_v19  ;;  %v647_v34 = vadd.f32 1.0, %v3652_v24  ;;  %v3493_v36 = vpop.f32.mrb[14].mxu0  ;;  %v595_v39 = vadd.f32 %v576_v26, %v4059_v2  ;;  %v558_v40 = vmul.f32 %v539_v28, %v4071_v18 }
 0x116   : > { %v3656_v37 = vpop.eup %3655  ;;  %v616_v38 = vmul.f32 0.7978846, %v597_v25  ;;  %v544_v41 = vmul.f32 %v4079_v29, %v4079_v29  ;;  %v503_v43 = vpop.f32.mrb[15].mxu0  ;;  %v579_v46 = vmul.f32 0.044715, %v560_v35  ;;  %v4090_v48 = vadd.f32 %v3974_v47, %v500_v30 }
 0x117   : > { %v4087_v44 = vmul.f32 %v665_v33, %v3977_v49  ;;  %v666_v45 = vmul.f32 0.5, %v647_v34  ;;  %v614_v50 = vmul.f32 0.7978846, %v595_v39  ;;  %v577_v53 = vmul.f32 0.044715, %v558_v40  ;;  %v4093_v56 = vpop.eup %3657 }
 0x118   : > { %3669 = vtanh.f32 %v616_v38  ;;  %v563_v55 = vmul.f32 %v544_v41, %v4079_v29  ;;  %v598_v60 = vadd.f32 %v579_v46, %v4067_v12  ;;  %v542_v49 = vmul.f32 %v4090_v48, %v4090_v48 }
 0x119   : > { %v685_v58 = vmul.f32 %v666_v45, %v3988_v57  ;;  %v4100_v61 = vadd.f32 %v3493_v36, %v3974_v47  ;;  %3671 = vtanh.f32 %v614_v50  ;;  %v596_v0 = vadd.f32 %v577_v53, %v4071_v18 }
 0x11a   : > { %v3660_v63 = vpop.eup %3659  ;;  %v582_v1 = vmul.f32 0.044715, %v563_v55  ;;  %v4104_v3 = vadd.f32 %v3974_v47, %v503_v43  ;;  %v617_v5 = vmul.f32 0.7978846, %v598_v60  ;;  %v561_v57 = vmul.f32 %v542_v49, %v4090_v48 }
 0x11b   : > { %v3662_v4 = vpop.eup %3661  ;;  %v545_v6 = vmul.f32 %v4100_v61, %v4100_v61  ;;  %v644_v7 = vadd.f32 1.0, %v3654_v31  ;;  %v615_v9 = vmul.f32 0.7978846, %v596_v0  ;;  %v645_v14 = vadd.f32 1.0, %v3656_v37 }
 0x11c   : > { %v3664_v8 = vpop.eup %3663  ;;  %v601_v10 = vadd.f32 %v582_v1, %v4079_v29  ;;  %v543_v11 = vmul.f32 %v4104_v3, %v4104_v3  ;;  %3673 = vtanh.f32 %v617_v5  ;;  %v580_v47 = vmul.f32 0.044715, %v561_v57 }
 0x11d   : > { %v3666_v15 = vpop.eup %3665  ;;  %v564_v17 = vmul.f32 %v545_v6, %v4100_v61  ;;  %v663_v19 = vmul.f32 0.5, %v644_v7  ;;  %3675 = vtanh.f32 %v615_v9  ;;  %v664_v23 = vmul.f32 0.5, %v645_v14 }
 0x11e   : > { %v620_v20 = vmul.f32 0.7978846, %v601_v10  ;;  %v562_v22 = vmul.f32 %v543_v11, %v4104_v3  ;;  %v3668_v24 = vpop.eup %3667  ;;  %v599_v25 = vadd.f32 %v580_v47, %v4090_v48  ;;  %v702_v30 = vpack.c.bf16 %v685_v58, %v4087_v44 }
 0x11f   : > { %v583_v26 = vmul.f32 0.044715, %v564_v17  ;;  %v682_v28 = vmul.f32 %v663_v19, %v3980_v52  ;;  %v683_v33 = vmul.f32 %v664_v23, %v3996_v62  ;;  %v648_v34 = vadd.f32 1.0, %v3662_v4 }
 0x120   : > { %3677 = vtanh.f32 %v620_v20  ;;  %v581_v31 = vmul.f32 0.044715, %v562_v22  ;;  %v618_v35 = vmul.f32 0.7978846, %v599_v25  ;;  %v649_v37 = vadd.f32 1.0, %v3666_v15 }
 0x121   : > { %v602_v36 = vadd.f32 %v583_v26, %v4100_v61  ;;  %v650_v38 = vadd.f32 1.0, %v3660_v63  ;;  %v701_v41 = vpack.c.bf16 %v683_v33, %v682_v28  ;;  %v667_v43 = vmul.f32 0.5, %v648_v34 }
 0x122   : > { %v3670_v39 = vpop.eup %3669  ;;  %v600_v40 = vadd.f32 %v581_v31, %v4104_v3  ;;  %v651_v45 = vadd.f32 1.0, %v3664_v8  ;;  %3679 = vtanh.f32 %v618_v35  ;;  %v668_v46 = vmul.f32 0.5, %v649_v37 }
 0x123   : > { %v621_v52 = vmul.f32 0.7978846, %v602_v36  ;;  %v669_v44 = vmul.f32 0.5, %v650_v38  ;;  %v3672_v50 = vpop.eup %3671  ;;  %v624_v53 = vmul.f32 0.7978846, %v4045_v42  ;;  %3514 = vmatprep.mubr.bf16.mxu1 %v701_v41  ;;  %v654_v58 = vadd.f32 1.0, %v3670_v39 }
 0x124   : > { %v619_v62 = vmul.f32 0.7978846, %v600_v40  ;;  %v670_v55 = vmul.f32 0.5, %v651_v45  ;;  %3515 = vmatmul.mubr.bf16.vlgmr.msra.gmra.mrb[4].mxu1 %v702_v30  ;;  %v686_v60 = vmul.f32 %v667_v43, %v4021_v21  ;;  %v687_v49 = vmul.f32 %v668_v46, %v4033_v32 }
 0x125   : > { %3681 = vtanh.f32 %v621_v52  ;;  %v652_v63 = vadd.f32 1.0, %v3672_v50  ;;  %v688_v0 = vmul.f32 %v669_v44, %v4017_v16  ;;  %v660_v4 = vadd.f32 1.0, %v4093_v56 }
 0x126   : > { %3683 = vtanh.f32 %v619_v62  ;;  %v689_v1 = vmul.f32 %v670_v55, %v4027_v27  ;;  %v3674_v5 = vpop.eup %3673  ;;  %v703_v42 = vpack.c.bf16 %v687_v49, %v686_v60  ;;  %v661_v57 = vadd.f32 1.0, %v3668_v24 }
 0x127   : > { %v3676_v6 = vpop.eup %3675  ;;  %v655_v8 = vadd.f32 1.0, %v3674_v5  ;;  %v673_v9 = vmul.f32 0.5, %v654_v58  ;;  %v679_v10 = vmul.f32 0.5, %v660_v4  ;;  %v671_v11 = vmul.f32 0.5, %v652_v63 }
 0x128   : > { %v704_v7 = vpack.c.bf16 %v689_v1, %v688_v0  ;;  %3518 = vmatprep.mubr.bf16.mxu1 %v703_v42  ;;  %v653_v21 = vadd.f32 1.0, %v3676_v6  ;;  %v680_v32 = vmul.f32 0.5, %v661_v57  ;;  %3685 = vtanh.f32 %v624_v53 }
 0x129   : > { %v674_v15 = vmul.f32 0.5, %v655_v8  ;;  %v698_v16 = vmul.f32 %v679_v10, %v3991_v59  ;;  %v692_v47 = vmul.f32 %v673_v9, %v4051_v51  ;;  %v690_v22 = vmul.f32 %v671_v11, %v4059_v2 }
 0x12a   : > { %v3678_v14 = vpop.eup %3677  ;;  %v672_v27 = vmul.f32 0.5, %v653_v21  ;;  %v699_v56 = vmul.f32 %v680_v32, %v4013_v13 }
 0x12b   : > { %v693_v17 = vmul.f32 %v674_v15, %v4067_v12  ;;  %v658_v19 = vadd.f32 1.0, %v3678_v14 }
 0x12c   : > { %v3680_v20 = vpop.eup %3679  ;;  %3519 = vmatmul.mubr.bf16.gmra.mrb[8].mxu1 %v704_v7  ;;  %v691_v23 = vmul.f32 %v672_v27, %v4071_v18  ;;  %v709_v24 = vpack.c.bf16 %v699_v56, %v698_v16 }
 0x12d   : > { %v706_v25 = vpack.c.bf16 %v693_v17, %v692_v47  ;;  %v656_v26 = vadd.f32 1.0, %v3680_v20  ;;  %v677_v33 = vmul.f32 0.5, %v658_v19 }
 0x12e   : > { %v705_v30 = vpack.c.bf16 %v691_v23, %v690_v22 }
 0x12f   : > { %v3682_v28 = vpop.eup %3681  ;;  %v675_v51 = vmul.f32 0.5, %v656_v26  ;;  %v696_v36 = vmul.f32 %v677_v33, %v4079_v29  ;;  %v3647_v29 = vld [vmem:[%s5286_s5 + $0x30] sm:$0xff]  }
 0x130   : > { %v3684_v59 = vpop.eup %3683  ;;  %v659_v31 = vadd.f32 1.0, %v3682_v28  ;;  %3522 = vmatprep.mubr.bf16.mxu1 %v705_v30  ;;  %3546 = vmatprep.subr.bf16.mxu0 %v3647_v29 }
 0x131   : > { %v657_v13 = vadd.f32 1.0, %v3684_v59  ;;  %v694_v18 = vmul.f32 %v675_v51, %v4090_v48  ;;  %3547 = vmatpush3.bf16.msra.mxu0 %v3647_v29  ;;  %v3648_v48 = vld [vmem:[%s5286_s5 + $0x38] sm:$0xff]  }
 0x132   : > { %v678_v34 = vmul.f32 0.5, %v659_v31  ;;  %v3686_v35 = vpop.eup %3685  ;;  %3548 = vmatprep.subr.bf16.mxu0 %v3648_v48 }
 0x133   : > { %v676_v12 = vmul.f32 0.5, %v657_v13  ;;  %v662_v40 = vadd.f32 1.0, %v3686_v35 }
 0x134   : > { %v697_v2 = vmul.f32 %v678_v34, %v4100_v61  ;;  %3523 = vmatmul.mubr.bf16.gmra.mrb[12].mxu1 %v706_v25 }
 0x135   : > { %v695_v37 = vmul.f32 %v676_v12, %v4104_v3  ;;  %v681_v41 = vmul.f32 0.5, %v662_v40  ;;  %3549 = vmatpush3.bf16.msra.mxu0 %v3648_v48  ;;  %v3411_v12 = vld [vmem:[%s5287_s6] ss:$0 sm:$0xff] }
 0x136   : > { %v708_v38 = vpack.c.bf16 %v697_v2, %v696_v36 }
 0x137   : > { %v707_v39 = vpack.c.bf16 %v695_v37, %v694_v18  ;;  %v700_v43 = vmul.f32 %v681_v41, %v3983_v54  ;;  %v4150_v54 = vld [vmem:[%s5285_s4] ss:$0 sm:$0xff] }
 0x139   : > { %3526 = vmatprep.mubr.bf16.mxu1 %v707_v39  ;;  %v710_v45 = vpack.c.bf16 %v700_v43, %v700_v43 }
 0x13c   : > { %3527 = vmatmul.mubr.bf16.gmra.mrb[16].mxu1 %v708_v38 }
 0x13d   : > { %3530 = vmatprep.mubr.bf16.mxu1 %v709_v24 }
 0x144   : > { %3531 = vmatmul.mubr.bf16.gmra.mrb[20].mxu1 %v710_v45 }
 0x1f7   : > { %v3516_v61 = vpop.f32.mrb[4].mxu1 }
 0x1f8   : > { %v825_v3 = vadd.f32 %v3516_v61, %v4150_v54  ;;  %v816_v52 = vpop.f32.mrb[5].mxu1 }
 0x1f9   : > { %v817_v46 = vadd.f32 %v4150_v54, %v816_v52  ;;  %v3517_v44 = vpop.f32.mrb[6].mxu1 }
 0x1fa   : > { %896 = vst [vmem:[%s4154_s13 + $0x10] sm:$0xff] %v825_v3  ;;  %v828_v50 = vadd.f32 %v3517_v44, %v4150_v54  ;;  %v819_v53 = vpop.f32.mrb[7].mxu1 }
 0x1fb   : > { %894 = vst [vmem:[%s4154_s13] sm:$0xff] %v817_v46  ;;  %v820_v62 = vadd.f32 %v4150_v54, %v819_v53 }
 0x1fc   : > { %897 = vst [vmem:[%s4154_s13 + $0x18] sm:$0xff] %v828_v50  ;;  %v914_v55 = vpack.c.bf16 %v828_v50, %v825_v3 }
 0x1fd   : > { %895 = vst [vmem:[%s4154_s13 + $0x8] sm:$0xff] %v820_v62  ;;  %v913_v58 = vpack.c.bf16 %v820_v62, %v817_v46 }
 0x1ff   : > { %v3520_v60 = vpop.f32.mrb[8].mxu1  ;;  %3550 = vmatprep.mubr.bf16.mxu0 %v913_v58 }
 0x200   : > { %v841_v49 = vadd.f32 %v3520_v60, %v4150_v54  ;;  %v832_v63 = vpop.f32.mrb[9].mxu1  ;;  %3551 = vmatmul.mubr.bf16.vlgmr.msra.gmra.mrb[16].mxu0 %v914_v55 }
 0x201   : > { %v833_v0 = vadd.f32 %v4150_v54, %v832_v63  ;;  %v3521_v1 = vpop.f32.mrb[10].mxu1 }
 0x202   : > { %900 = vst [vmem:[%s4154_s13 + $0x30] sm:$0xff] %v841_v49  ;;  %v844_v4 = vadd.f32 %v3521_v1, %v4150_v54  ;;  %v835_v5 = vpop.f32.mrb[11].mxu1 }
 0x203   : > { %898 = vst [vmem:[%s4154_s13 + $0x20] sm:$0xff] %v833_v0  ;;  %v836_v42 = vadd.f32 %v4150_v54, %v835_v5 }
 0x204   : > { %901 = vst [vmem:[%s4154_s13 + $0x38] sm:$0xff] %v844_v4  ;;  %v916_v57 = vpack.c.bf16 %v844_v4, %v841_v49 }
 0x205   : > { %899 = vst [vmem:[%s4154_s13 + $0x28] sm:$0xff] %v836_v42  ;;  %v915_v6 = vpack.c.bf16 %v836_v42, %v833_v0 }
 0x207   : > { %v3524_v7 = vpop.f32.mrb[12].mxu1  ;;  %3554 = vmatprep.mubr.bf16.mxu0 %v915_v6 }
 0x208   : > { %v857_v8 = vadd.f32 %v3524_v7, %v4150_v54  ;;  %v848_v9 = vpop.f32.mrb[13].mxu1  ;;  %3555 = vmatmul.mubr.bf16.gmra.mrb[20].mxu0 %v916_v57 }
 0x209   : > { %v849_v10 = vadd.f32 %v4150_v54, %v848_v9  ;;  %v3525_v21 = vpop.f32.mrb[14].mxu1 }
 0x20a   : > { %904 = vst [vmem:[%s4154_s13 + $0x50] sm:$0xff] %v857_v8  ;;  %v860_v11 = vadd.f32 %v3525_v21, %v4150_v54  ;;  %v851_v32 = vpop.f32.mrb[15].mxu1 }
 0x20b   : > { %902 = vst [vmem:[%s4154_s13 + $0x40] sm:$0xff] %v849_v10  ;;  %v852_v14 = vadd.f32 %v4150_v54, %v851_v32 }
 0x20c   : > { %905 = vst [vmem:[%s4154_s13 + $0x58] sm:$0xff] %v860_v11  ;;  %v918_v15 = vpack.c.bf16 %v860_v11, %v857_v8  ;;  %v5290_v11 = vlaneseq }
 0x20d   : > { %903 = vst [vmem:[%s4154_s13 + $0x48] sm:$0xff] %v852_v14  ;;  %v917_v16 = vpack.c.bf16 %v852_v14, %v849_v10 }
 0x20e   : > { %v4253_v32 = vand.u32 127, %v5290_v11 }
 0x20f   : > { %v3528_v27 = vpop.f32.mrb[16].mxu1  ;;  %3558 = vmatprep.mubr.bf16.mxu0 %v917_v16 }
 0x210   : > { %v873_v56 = vadd.f32 %v3528_v27, %v4150_v54  ;;  %v864_v47 = vpop.f32.mrb[17].mxu1  ;;  %3559 = vmatmul.mubr.bf16.gmra.mrb[24].mxu0 %v918_v15  ;;  %5302 = vst [vmem:[#allocation8_spill] sm:$0xff] %v4253_v32 }
 0x211   : > { %v865_v17 = vadd.f32 %v4150_v54, %v864_v47  ;;  %v3529_v19 = vpop.f32.mrb[18].mxu1 }
 0x212   : > { %908 = vst [vmem:[%s4154_s13 + $0x70] sm:$0xff] %v873_v56  ;;  %v876_v20 = vadd.f32 %v3529_v19, %v4150_v54  ;;  %v867_v22 = vpop.f32.mrb[19].mxu1 }
 0x213   : > { %906 = vst [vmem:[%s4154_s13 + $0x60] sm:$0xff] %v865_v17  ;;  %v868_v23 = vadd.f32 %v4150_v54, %v867_v22 }
 0x214   : > { %909 = vst [vmem:[%s4154_s13 + $0x78] sm:$0xff] %v876_v20  ;;  %v920_v24 = vpack.c.bf16 %v876_v20, %v873_v56 }
 0x215   : > { %907 = vst [vmem:[%s4154_s13 + $0x68] sm:$0xff] %v868_v23  ;;  %v919_v25 = vpack.c.bf16 %v868_v23, %v865_v17 }
 0x217   : > { %v3532_v26 = vpop.f32.mrb[20].mxu1  ;;  %3562 = vmatprep.mubr.bf16.mxu0 %v919_v25 }
 0x218   : > { %v889_v28 = vadd.f32 %v3532_v26, %v4150_v54  ;;  %v880_v30 = vpop.f32.mrb[21].mxu1  ;;  %3563 = vmatmul.mubr.bf16.gmra.mrb[28].mxu0 %v920_v24 }
 0x219   : > { %v881_v59 = vadd.f32 %v4150_v54, %v880_v30  ;;  %v3533_v31 = vpop.f32.mrb[22].mxu1 }
 0x21a   : > { %912 = vst [vmem:[%s4154_s13 + $0x90] sm:$0xff] %v889_v28  ;;  %v883_v33 = vpop.f32.mrb[23].mxu1  ;;  %v922_v34 = vpack.c.bf16 %v889_v28, %v889_v28 }
 0x21b   : > { %910 = vst [vmem:[%s4154_s13 + $0x80] sm:$0xff] %v881_v59  ;;  %v884_v13 = vadd.f32 %v4150_v54, %v883_v33 }
 0x21d   : > { %911 = vst [vmem:[%s4154_s13 + $0x88] sm:$0xff] %v884_v13  ;;  %v921_v51 = vpack.c.bf16 %v884_v13, %v881_v59  ;;  %s3693_s13 = scalar_lea.vmem %s3692_s12, 4864 }
 0x21e   : > { %p3695_p1 = scmp.lt.s32.totalorder %s3693_s13, %s3687_s26 }
 0x21f   : > { %3566 = vmatprep.mubr.bf16.mxu0 %v921_v51 }
 0x220   : > { %3567 = vmatmul.mubr.bf16.gmra.mrb[32].mxu0 %v922_v34  ;;  %p3696_p2 = por %p3695_p1, %p3694_p0 }
 0x222   : > { %p3697_p3 = pnand %p3696_p2, %p3690_p13 }
 0x2d3   : > { %v3552_v35 = vpop.f32.mrb[16].mxu0 }
 0x2d4   : > { %v4195_v36 = vsub.f32 %v3411_v12, %v3552_v35  ;;  %v1021_v2 = vpop.f32.mrb[17].mxu0 }
 0x2d5   : > { %v4197_v18 = vsub.f32 %v3411_v12, %v1021_v2  ;;  %v3553_v37 = vpop.f32.mrb[18].mxu0 }
 0x2d6   : > { %1129 = vmin.xlane.f32.xlu1 %v4195_v36  ;;  %v1024_v38 = vpop.f32.mrb[19].mxu0  ;;  %v4201_v39 = vsub.f32 %v3411_v12, %v3553_v37 }
 0x2d7   : > { %1125 = vmin.xlane.f32.xlu0 %v4197_v18  ;;  %v4203_v40 = vsub.f32 %v3411_v12, %v1024_v38 }
 0x2da   : > { %1131 = vmin.xlane.f32.xlu1 %v4201_v39 }
 0x2db   : > { %1127 = vmin.xlane.f32.xlu0 %v4203_v40  ;;  %v3556_v41 = vpop.f32.mrb[20].mxu0 }
 0x2dc   : > { %v4207_v43 = vsub.f32 %v3411_v12, %v3556_v41  ;;  %v1037_v45 = vpop.f32.mrb[21].mxu0 }
 0x2dd   : > { %v3557_v29 = vpop.f32.mrb[22].mxu0  ;;  %v4213_v61 = vsub.f32 %v3411_v12, %v1037_v45 }
 0x2de   : > { %v4209_v48 = vsub.f32 %v3411_v12, %v3557_v29  ;;  %v1040_v54 = vpop.f32.mrb[23].mxu0 }
 0x2df   : > { %1137 = vmin.xlane.f32.xlu0 %v4207_v43  ;;  %v4215_v3 = vsub.f32 %v3411_v12, %v1040_v54 }
 0x2e0   : > { %1139 = vmin.xlane.f32.xlu1 %v4209_v48 }
 0x2e3   : > { %1133 = vmin.xlane.f32.xlu0 %v4213_v61  ;;  %v3560_v52 = vpop.f32.mrb[24].mxu0 }
 0x2e4   : > { %v4218_v46 = vsub.f32 %v3411_v12, %v3560_v52  ;;  %1135 = vmin.xlane.f32.xlu1 %v4215_v3  ;;  %v1053_v44 = vpop.f32.mrb[25].mxu0 }
 0x2e5   : > { %v3561_v50 = vpop.f32.mrb[26].mxu0  ;;  %v4225_v55 = vsub.f32 %v3411_v12, %v1053_v44 }
 0x2e6   : > { %v4221_v53 = vsub.f32 %v3411_v12, %v3561_v50  ;;  %v1056_v62 = vpop.f32.mrb[27].mxu0 }
 0x2e7   : > { %1145 = vmin.xlane.f32.xlu0 %v4218_v46  ;;  %v4227_v58 = vsub.f32 %v3411_v12, %v1056_v62 }
 0x2e8   : > { %1147 = vmin.xlane.f32.xlu1 %v4221_v53 }
 0x2eb   : > { %1141 = vmin.xlane.f32.xlu0 %v4225_v55  ;;  %v3564_v60 = vpop.f32.mrb[28].mxu0 }
 0x2ec   : > { %v4230_v49 = vsub.f32 %v3411_v12, %v3564_v60  ;;  %1143 = vmin.xlane.f32.xlu1 %v4227_v58  ;;  %v1069_v63 = vpop.f32.mrb[29].mxu0 }
 0x2ed   : > { %v3565_v0 = vpop.f32.mrb[30].mxu0  ;;  %v4236_v5 = vsub.f32 %v3411_v12, %v1069_v63 }
 0x2ee   : > { %v1072_v1 = vpop.f32.mrb[31].mxu0  ;;  %v4245_v10 = vsub.f32 %v3411_v12, %v3565_v0 }
 0x2ef   : > { %v4233_v4 = vsub.f32 %v3411_v12, %v1072_v1  ;;  %1153 = vmin.xlane.f32.xlu0 %v4230_v49 }
 0x2f1   : > { %1151 = vmin.xlane.f32.xlu1 %v4233_v4 }
 0x2f3   : > { %1149 = vmin.xlane.f32.xlu0 %v4236_v5  ;;  %v3568_v42 = vpop.f32.mrb[32].mxu0 }
 0x2f4   : > { %v1085_v57 = vpop.f32.mrb[33].mxu0  ;;  %v4248_v21 = vsub.f32 %v3411_v12, %v3568_v42 }
 0x2f5   : > { %v4240_v6 = vsub.f32 %v3411_v12, %v1085_v57  ;;  %v3569_v7 = vpop.f32.mrb[34].mxu0 }
 0x2f6   : > { %v1088_v8 = vpop.f32.mrb[35].mxu0 }
 0x2f7   : > { %v4242_v9 = vsub.f32 %v3411_v12, %v1088_v8  ;;  %1157 = vmin.xlane.f32.xlu1 %v4240_v6 }
 0x2f9   : > { %1159 = vmin.xlane.f32.xlu0 %v4242_v9 }
 0x2fb   : > { %1155 = vmin.xlane.f32.xlu1 %v4245_v10 }
 0x2fd   : > { %1161 = vmin.xlane.f32.xlu0 %v4248_v21 }
 0x363   : > { %v4255_v14 = vpop.xlane.xlu1 %1129 }
 0x364   : > { %vm1167_vm1 = vcmp.le.f32.partialorder %v4195_v36, %v4255_v14  ;;  %v4259_v15 = vpop.xlane.xlu0 %1125 }
 0x365   : > { %v4262_v16 = vsel %vm1167_vm1, %v4253_v32, 128  ;;  %vm1165_vm2 = vcmp.le.f32.partialorder %v4197_v18, %v4259_v15 }
 0x366   : > { %v4267_v27 = vsel %vm1165_vm2, %v4253_v32, 128  ;;  %v1232_v56 = vshra.s32 %v4262_v16, 16 }
 0x367   : > { %v4270_v47 = vpop.xlane.xlu1 %1131  ;;  %v1204_v20 = vshra.s32 %v4267_v27, 16  ;;  %v1203_v11 = vand.u32 65535, %v4267_v27 }
 0x368   : > { %vm1168_vm3 = vcmp.le.f32.partialorder %v4201_v39, %v4270_v47  ;;  %v4274_v17 = vpop.xlane.xlu0 %1127  ;;  %v4276_v19 = vcvt.s32.f32 %v1232_v56 }
 0x369   : > { %v4280_v22 = vsel %vm1168_vm3, %v4253_v32, 128  ;;  %vm1166_vm4 = vcmp.le.f32.partialorder %v4203_v40, %v4274_v17  ;;  %v4291_v26 = vcvt.s32.f32 %v1204_v20 }
 0x36a   : > { %v4285_v23 = vsel %vm1166_vm4, %v4253_v32, 128  ;;  %1235 = vmin.xlane.f32.xlu1 %v4276_v19  ;;  %v1246_v24 = vshra.s32 %v4280_v22, 16 }
 0x36b   : > { %v1218_v30 = vshra.s32 %v4285_v23, 16 }
 0x36c   : > { %v4289_v25 = vpop.xlane.xlu0 %1137  ;;  %v4293_v28 = vcvt.s32.f32 %v1246_v24 }
 0x36d   : > { %vm1171_vm5 = vcmp.le.f32.partialorder %v4207_v43, %v4289_v25  ;;  %v4298_v59 = vpop.xlane.xlu1 %1139  ;;  %v4313_v34 = vcvt.s32.f32 %v1218_v30 }
 0x36e   : > { %v4301_v31 = vsel %vm1171_vm5, %v4253_v32, 128  ;;  %vm1172_vm6 = vcmp.le.f32.partialorder %v4209_v48, %v4298_v59  ;;  %1207 = vmin.xlane.f32.xlu1 %v4291_v26  ;;  %1249 = vmin.xlane.f32.xlu0 %v4293_v28 }
 0x36f   : > { %v4308_v33 = vsel %vm1172_vm6, %v4253_v32, 128  ;;  %v1288_v13 = vshra.s32 %v4301_v31, 16  ;;  %v1287_v27 = vand.u32 65535, %v4301_v31 }
 0x370   : > { %v4311_v51 = vpop.xlane.xlu0 %1133  ;;  %v1302_v12 = vshra.s32 %v4308_v33, 16 }
 0x371   : > { %vm1169_vm7 = vcmp.le.f32.partialorder %v4213_v61, %v4311_v51  ;;  %v4318_v35 = vpop.xlane.xlu1 %1135  ;;  %v4320_v36 = vcvt.s32.f32 %v1288_v13 }
 0x372   : > { %v4323_v2 = vsel %vm1169_vm7, %v4253_v32, 128  ;;  %vm1170_vm8 = vcmp.le.f32.partialorder %v4215_v3, %v4318_v35  ;;  %1221 = vmin.xlane.f32.xlu0 %v4313_v34  ;;  %v4335_v39 = vcvt.s32.f32 %v1302_v12 }
 0x373   : > { %v4329_v18 = vsel %vm1170_vm8, %v4253_v32, 128  ;;  %1291 = vmin.xlane.f32.xlu1 %v4320_v36  ;;  %v1260_v37 = vshra.s32 %v4323_v2, 16 }
 0x374   : > { %v4333_v38 = vpop.xlane.xlu0 %1145  ;;  %v1274_v40 = vshra.s32 %v4329_v18, 16 }
 0x375   : > { %vm1175_vm9 = vcmp.le.f32.partialorder %v4218_v46, %v4333_v38  ;;  %v4340_v41 = vpop.xlane.xlu1 %1147  ;;  %v4342_v43 = vcvt.s32.f32 %v1260_v37 }
 0x376   : > { %v4345_v45 = vsel %vm1175_vm9, %v4253_v32, 128  ;;  %vm1176_vm10 = vcmp.le.f32.partialorder %v4221_v53, %v4340_v41  ;;  %1305 = vmin.xlane.f32.xlu0 %v4335_v39  ;;  %v4357_v61 = vcvt.s32.f32 %v1274_v40 }
 0x377   : > { %v4351_v29 = vsel %vm1176_vm10, %v4253_v32, 128  ;;  %1263 = vmin.xlane.f32.xlu1 %v4342_v43  ;;  %v1344_v48 = vshra.s32 %v4345_v45, 16 }
 0x378   : > { %v4355_v54 = vpop.xlane.xlu0 %1141  ;;  %v1358_v3 = vshra.s32 %v4351_v29, 16 }
 0x379   : > { %vm1173_vm11 = vcmp.le.f32.partialorder %v4225_v55, %v4355_v54  ;;  %v4362_v52 = vpop.xlane.xlu1 %1143  ;;  %v4364_v46 = vcvt.s32.f32 %v1344_v48 }
 0x37a   : > { %v4367_v44 = vsel %vm1173_vm11, %v4253_v32, 128  ;;  %vm1174_vm12 = vcmp.le.f32.partialorder %v4227_v58, %v4362_v52  ;;  %1277 = vmin.xlane.f32.xlu0 %v4357_v61  ;;  %v4379_v55 = vcvt.s32.f32 %v1358_v3 }
 0x37b   : > { %v4373_v50 = vsel %vm1174_vm12, %v4253_v32, 128  ;;  %1347 = vmin.xlane.f32.xlu1 %v4364_v46  ;;  %v1316_v53 = vshra.s32 %v4367_v44, 16 }
 0x37c   : > { %v4377_v62 = vpop.xlane.xlu0 %1153  ;;  %v1330_v60 = vshra.s32 %v4373_v50, 16 }
 0x37d   : > { %vm1179_vm13 = vcmp.le.f32.partialorder %v4230_v49, %v4377_v62  ;;  %v4384_v63 = vcvt.s32.f32 %v1316_v53 }
 0x37e   : > { %v4387_v58 = vsel %vm1179_vm13, %v4253_v32, 128  ;;  %v4389_v0 = vpop.xlane.xlu1 %1151  ;;  %1361 = vmin.xlane.f32.xlu0 %v4379_v55  ;;  %v4401_v57 = vcvt.s32.f32 %v1330_v60 }
 0x37f   : > { %vm1178_vm14 = vcmp.le.f32.partialorder %v4233_v4, %v4389_v0  ;;  %1319 = vmin.xlane.f32.xlu1 %v4384_v63  ;;  %v1400_v1 = vshra.s32 %v4387_v58, 16 }
 0x380   : > { %v4397_v42 = vsel %vm1178_vm14, %v4253_v32, 128  ;;  %v4399_v49 = vpop.xlane.xlu0 %1149 }
 0x381   : > { %vm1177_vm15 = vcmp.le.f32.partialorder %v4236_v5, %v4399_v49  ;;  %v4405_v7 = vcvt.s32.f32 %v1400_v1  ;;  %v1386_v8 = vshra.s32 %v4397_v42, 16 }
 0x382   : > { %v4409_v4 = vsel %vm1177_vm15, %v4253_v32, 128  ;;  %1333 = vmin.xlane.f32.xlu0 %v4401_v57 }
 0x383   : > { %1403 = vmin.xlane.f32.xlu1 %v4405_v7  ;;  %v4413_v56 = vcvt.s32.f32 %v1386_v8  ;;  %v1372_v20 = vshra.s32 %v4409_v4, 16 }
 0x384   : > { %v4416_v24 = vpop.xlane.xlu1 %1157 }
 0x385   : > { %vm1181_vm0 = vcmp.le.f32.partialorder %v4240_v6, %v4416_v24  ;;  %v4420_v5 = vcvt.s32.f32 %v1372_v20 }
 0x386   : > { %v4423_v30 = vsel %vm1181_vm0, %v4253_v32, 128  ;;  %1389 = vmin.xlane.f32.xlu0 %v4413_v56  ;;  %v4426_v13 = vpop.xlane.xlu0 %1159 }
 0x387   : > { %5303 = vst [vmem:[#allocation9_spill] sm:$0xff] %v4426_v13  ;;  %vm1182_vm1 = vcmp.le.f32.partialorder %v4242_v9, %v4426_v13  ;;  %1375 = vmin.xlane.f32.xlu1 %v4420_v5  ;;  %v1428_v12 = vshra.s32 %v4423_v30, 16 }
 0x388   : > { %v4433_v37 = vsel %vm1182_vm1, %v4253_v32, 128  ;;  %v4435_v6 = vpop.xlane.xlu1 %1155 }
 0x389   : > { %5304 = vst [vmem:[#allocation10_spill] sm:$0xff] %v4435_v6  ;;  %vm1180_vm2 = vcmp.le.f32.partialorder %v4245_v10, %v4435_v6  ;;  %v4439_v40 = vcvt.s32.f32 %v1428_v12  ;;  %v1442_v48 = vshra.s32 %v4433_v37, 16  ;;  %v1205_v6 = vcvt.s32.f32 %v1203_v11 }
 0x38a   : > { %v4443_v3 = vsel %vm1180_vm2, %v4253_v32, 128  ;;  %v4445_v9 = vpop.xlane.xlu0 %1161  ;;  %v1301_v11 = vand.u32 65535, %v4308_v33  ;;  %v1273_v33 = vand.u32 65535, %v4329_v18  ;;  %v1357_v18 = vand.u32 65535, %v4351_v29 }
 0x38b   : > { %5305 = vst [vmem:[#allocation11_spill] sm:$0xff] %v4445_v9  ;;  %vm1183_vm3 = vcmp.le.f32.partialorder %v4248_v21, %v4445_v9  ;;  %1431 = vmin.xlane.f32.xlu0 %v4439_v40  ;;  %v4450_v53 = vcvt.s32.f32 %v1442_v48  ;;  %v1414_v60 = vshra.s32 %v4443_v3, 16  ;;  %v1231_v21 = vand.u32 65535, %v4262_v16 }
 0x38c   : > { %v4454_v10 = vsel %vm1183_vm3, %v4253_v32, 128  ;;  %v1245_v32 = vand.u32 65535, %v4280_v22  ;;  %v1217_v16 = vand.u32 65535, %v4285_v23  ;;  %v1289_v23 = vcvt.s32.f32 %v1287_v27 }
 0x38d   : > { %1445 = vmin.xlane.f32.xlu1 %v4450_v53  ;;  %v4457_v1 = vcvt.s32.f32 %v1414_v60  ;;  %v1456_v8 = vshra.s32 %v4454_v10, 16  ;;  %v1233_v48 = vcvt.s32.f32 %v1231_v21  ;;  %v1329_v29 = vand.u32 65535, %v4373_v50 }
 0x38e   : > { %v1247_v13 = vcvt.s32.f32 %v1245_v32  ;;  %v1385_v50 = vand.u32 65535, %v4397_v42 }
 0x38f   : > { %1417 = vmin.xlane.f32.xlu0 %v4457_v1  ;;  %v4461_v20 = vcvt.s32.f32 %v1456_v8 }
 0x391   : > { %1459 = vmin.xlane.f32.xlu1 %v4461_v20 }
 0x3f7   : > { %v4465_v12 = vpop.xlane.xlu1 %1235 }
 0x3f8   : > { %vm1237_vm4 = vcmp.eq.f32.partialorder %v4276_v19, %v4465_v12 }
 0x3f9   : > { %v1238_v60 = vsel %vm1237_vm4, %v1233_v48, inf  ;;  %v1219_v48 = vcvt.s32.f32 %v1217_v16 }
 0x3fa   : > { %1239 = vmin.xlane.f32.xlu0 %v1238_v60 }
 0x3fb   : > { %v4471_v9 = vpop.xlane.xlu1 %1207  ;;  %v4473_v8 = vpop.xlane.xlu0 %1249 }
 0x3fc   : > { %vm1209_vm5 = vcmp.eq.f32.partialorder %v4291_v26, %v4471_v9  ;;  %vm1251_vm6 = vcmp.eq.f32.partialorder %v4293_v28, %v4473_v8  ;;  %v1259_v26 = vand.u32 65535, %v4323_v2  ;;  %v1343_v2 = vand.u32 65535, %v4345_v45 }
 0x3fd   : > { %v1210_v22 = vsel %vm1209_vm5, %v1205_v6, inf  ;;  %v1252_v19 = vsel %vm1251_vm6, %v1247_v13, inf  ;;  %v1303_v6 = vcvt.s32.f32 %v1301_v11  ;;  %v1315_v45 = vand.u32 65535, %v4367_v44 }
 0x3fe   : > { %1211 = vmin.xlane.f32.xlu0 %v1210_v22  ;;  %1253 = vmin.xlane.f32.xlu1 %v1252_v19  ;;  %v1275_v22 = vcvt.s32.f32 %v1273_v33  ;;  %v1399_v44 = vand.u32 65535, %v4387_v58  ;;  %v1371_v58 = vand.u32 65535, %v4409_v4  ;;  %v1441_v4 = vand.u32 65535, %v4433_v37 }
 0x3ff   : > { %v4481_v21 = vpop.xlane.xlu0 %1221 }
 0x400   : > { %v4484_v32 = vpop.xlane.xlu1 %1291  ;;  %vm1223_vm7 = vcmp.eq.f32.partialorder %v4313_v34, %v4481_v21  ;;  %v1261_v34 = vcvt.s32.f32 %v1259_v26  ;;  %v1373_v42 = vcvt.s32.f32 %v1371_v58  ;;  %v5306_v58 = vlaneseq }
 0x401   : > { %v1224_v28 = vsel %vm1223_vm7, %v1219_v48, inf  ;;  %vm1293_vm8 = vcmp.eq.f32.partialorder %v4320_v36, %v4484_v32  ;;  %vm1471_vm7 = vcmp.lt.f32.partialorder %v4255_v14, inf }
 0x402   : > { %1225 = vmin.xlane.f32.xlu1 %v1224_v28  ;;  %v1294_v31 = vsel %vm1293_vm8, %v1289_v23, inf  ;;  %v1359_v23 = vcvt.s32.f32 %v1357_v18  ;;  %vm1469_vm8 = vcmp.lt.f32.partialorder %v4259_v15, inf }
 0x403   : > { %1295 = vmin.xlane.f32.xlu0 %v1294_v31  ;;  %v4491_v13 = vpop.xlane.xlu0 %1305 }
 0x404   : > { %v4494_v60 = vpop.xlane.xlu1 %1263  ;;  %vm1307_vm9 = vcmp.eq.f32.partialorder %v4335_v39, %v4491_v13  ;;  %v1345_v39 = vcvt.s32.f32 %v1343_v2 }
 0x405   : > { %v1308_v16 = vsel %vm1307_vm9, %v1303_v6, inf  ;;  %vm1265_vm10 = vcmp.eq.f32.partialorder %v4342_v43, %v4494_v60  ;;  %v1331_v6 = vcvt.s32.f32 %v1329_v29  ;;  %vm1472_vm9 = vcmp.lt.f32.partialorder %v4270_v47, inf }
 0x406   : > { %1309 = vmin.xlane.f32.xlu1 %v1308_v16  ;;  %v1266_v36 = vsel %vm1265_vm10, %v1261_v34, inf  ;;  %v1387_v16 = vcvt.s32.f32 %v1385_v50  ;;  %v1270_v50 = vcvt.f32.s32 %v4494_v60  ;;  %vm1470_vm10 = vcmp.lt.f32.partialorder %v4274_v17, inf }
 0x407   : > { %1267 = vmin.xlane.f32.xlu0 %v1266_v36  ;;  %v4501_v27 = vpop.xlane.xlu0 %1277 }
 0x408   : > { %v4504_v19 = vpop.xlane.xlu1 %1347  ;;  %vm1279_vm11 = vcmp.eq.f32.partialorder %v4357_v61, %v4501_v27  ;;  %v1317_v61 = vcvt.s32.f32 %v1315_v45  ;;  %v1413_v45 = vand.u32 65535, %v4443_v3 }
 0x409   : > { %v1280_v48 = vsel %vm1279_vm11, %v1275_v22, inf  ;;  %vm1349_vm12 = vcmp.eq.f32.partialorder %v4364_v46, %v4504_v19  ;;  %vm1475_vm11 = vcmp.lt.f32.partialorder %v4289_v25, inf }
 0x40a   : > { %1281 = vmin.xlane.f32.xlu1 %v1280_v48  ;;  %v1350_v43 = vsel %vm1349_vm12, %v1345_v39, inf  ;;  %v1415_v3 = vcvt.s32.f32 %v1413_v45  ;;  %vm1476_vm12 = vcmp.lt.f32.partialorder %v4298_v59, inf }
 0x40b   : > { %1351 = vmin.xlane.f32.xlu0 %v1350_v43  ;;  %v4511_v11 = vpop.xlane.xlu0 %1361  ;;  %v1455_v43 = vand.u32 65535, %v4454_v10 }
 0x40c   : > { %v4514_v26 = vpop.xlane.xlu1 %1319  ;;  %vm1363_vm13 = vcmp.eq.f32.partialorder %v4379_v55, %v4511_v11  ;;  %v1401_v55 = vcvt.s32.f32 %v1399_v44  ;;  %v1214_v44 = vcvt.f32.s32 %v4471_v9 }
 0x40d   : > { %v1364_v28 = vsel %vm1363_vm13, %v1359_v23, inf  ;;  %vm1321_vm14 = vcmp.eq.f32.partialorder %v4384_v63, %v4514_v26  ;;  %vm1473_vm13 = vcmp.lt.f32.partialorder %v4311_v51, inf }
 0x40e   : > { %1365 = vmin.xlane.f32.xlu1 %v1364_v28  ;;  %v1322_v46 = vsel %vm1321_vm14, %v1317_v61, inf  ;;  %v1457_v61 = vcvt.s32.f32 %v1455_v43  ;;  %v1256_v28 = vcvt.f32.s32 %v4473_v8  ;;  %vm1474_vm14 = vcmp.lt.f32.partialorder %v4318_v35, inf }
 0x40f   : > { %1323 = vmin.xlane.f32.xlu0 %v1322_v46  ;;  %v4521_v31 = vpop.xlane.xlu0 %1333  ;;  %v1228_v46 = vcvt.f32.s32 %v4481_v21 }
 0x410   : > { %v4524_v33 = vpop.xlane.xlu1 %1403  ;;  %vm1335_vm15 = vcmp.eq.f32.partialorder %v4401_v57, %v4521_v31  ;;  %v1427_v57 = vand.u32 65535, %v4423_v30  ;;  %v1257_v8 = vshll.u32 %v1256_v28, 16 }
 0x411   : > { %v1336_v34 = vsel %vm1335_vm15, %v1331_v6, inf  ;;  %vm1405_vm0 = vcmp.eq.f32.partialorder %v4405_v7, %v4524_v33  ;;  %v1312_v6 = vcvt.f32.s32 %v4491_v13  ;;  %v1410_v45 = vcvt.f32.s32 %v4524_v33 }
 0x412   : > { %1337 = vmin.xlane.f32.xlu1 %v1336_v34  ;;  %v1406_v63 = vsel %vm1405_vm0, %v1401_v55, inf  ;;  %v1429_v39 = vcvt.s32.f32 %v1427_v57  ;;  %v1284_v55 = vcvt.f32.s32 %v4501_v27  ;;  %v4569_v34 = vshrl.u32 %v5306_v58, 7 }
 0x413   : > { %1407 = vmin.xlane.f32.xlu0 %v1406_v63  ;;  %v4531_v2 = vpop.xlane.xlu0 %1389  ;;  %v1215_v63 = vshll.u32 %v1214_v44, 16  ;;  %v4577_v60 = vshll.u32 %v1312_v6, 16  ;;  %v4579_v27 = vshll.u32 %v1270_v50, 16  ;;  %vm1479_vm15 = vcmp.lt.f32.partialorder %v4333_v38, inf }
 0x414   : > { %v4533_v36 = vpop.xlane.xlu1 %1375  ;;  %vm1391_vm1 = vcmp.eq.f32.partialorder %v4413_v56, %v4531_v2  ;;  %v3783_v56 = vmov 0   ;;  %v4587_v57 = vsub.s32 0, %v4569_v34  ;;  %vm1480_vm0 = vcmp.lt.f32.partialorder %v4340_v41, inf }
 0x415   : > { %v1392_v22 = vsel %vm1391_vm1, %v1387_v16, inf  ;;  %vm1377_vm2 = vcmp.eq.f32.partialorder %v4420_v5, %v4533_v36  ;;  %3627 = vset.pattern.permute.xlu1 %v3783_v56  ;;  %3628 = vset.pattern.permute.xlu0 %v3783_v56  ;;  %v1443_v5 = vcvt.s32.f32 %v1441_v4  ;;  %v3784_v16 = vmov 1966171168  }
 0x416   : > { %1393 = vmin.xlane.f32.xlu1 %v1392_v22  ;;  %v1378_v7 = vsel %vm1377_vm2, %v1373_v42, inf  ;;  %v2120_v21 = vunpack.c.l.s4 %v3784_v16  ;;  %v4593_v4 = vsub.s32 1, %v4569_v34  ;;  %v1396_v56 = vcvt.f32.s32 %v4531_v2 }
 0x417   : > { %1379 = vmin.xlane.f32.xlu0 %v1378_v7  ;;  %v1340_v7 = vcvt.f32.s32 %v4521_v31  ;;  %v1382_v31 = vcvt.f32.s32 %v4533_v36  ;;  %v4621_v36 = vsub.s32 6, %v4569_v34  ;;  %vm1477_vm1 = vcmp.lt.f32.partialorder %v4355_v54, inf }
 0x418   : > { %v4541_v18 = vpop.xlane.xlu0 %1431  ;;  %vm1478_vm2 = vcmp.lt.f32.partialorder %v4362_v52, inf }
 0x419   : > { %vm1433_vm3 = vcmp.eq.f32.partialorder %v4439_v40, %v4541_v18  ;;  %v4634_v28 = vshll.u32 %v1382_v31, 16 }
 0x41a   : > { %v4546_v30 = vpop.xlane.xlu1 %1445  ;;  %v1434_v48 = vsel %vm1433_vm3, %v1429_v39, inf  ;;  %v4596_v39 = vsub.s32 2, %v4569_v34  ;;  %vm1483_vm3 = vcmp.lt.f32.partialorder %v4377_v62, inf }
 0x41b   : > { %1435 = vmin.xlane.f32.xlu1 %v1434_v48  ;;  %vm1447_vm4 = vcmp.eq.f32.partialorder %v4450_v53, %v4546_v30  ;;  %v1242_v53 = vcvt.f32.s32 %v4465_v12  ;;  %v1368_v12 = vcvt.f32.s32 %v4511_v11  ;;  %v1326_v11 = vcvt.f32.s32 %v4514_v26 }
 0x41c   : > { %v4551_v37 = vpop.xlane.xlu0 %1417  ;;  %v1448_v23 = vsel %vm1447_vm4, %v1443_v5, inf  ;;  %v4601_v48 = vsub.s32 3, %v4569_v34  ;;  %v2121_v26 = vunpack.c.0.s8 %v2120_v21  ;;  %v1438_v5 = vcvt.f32.s32 %v4541_v18 }
 0x41d   : > { %1449 = vmin.xlane.f32.xlu0 %v1448_v23  ;;  %vm1419_vm5 = vcmp.eq.f32.partialorder %v4457_v1, %v4551_v37  ;;  %v1298_v1 = vcvt.f32.s32 %v4484_v32  ;;  %v1243_v9 = vshll.u32 %v1242_v53, 16  ;;  %v4573_v32 = vshll.u32 %v1228_v46, 16 }
 0x41e   : > { %v4555_v40 = vpop.xlane.xlu1 %1459  ;;  %v1420_v29 = vsel %vm1419_vm5, %v1415_v3, inf  ;;  %v4589_v22 = vshll.u32 %v1368_v12, 16  ;;  %v1452_v43 = vcvt.f32.s32 %v4546_v30  ;;  %v1424_v23 = vcvt.f32.s32 %v4551_v37 }
 0x41f   : > { %1421 = vmin.xlane.f32.xlu1 %v1420_v29  ;;  %vm1461_vm6 = vcmp.eq.f32.partialorder %v4461_v20, %v4555_v40  ;;  %v1354_v20 = vcvt.f32.s32 %v4504_v19  ;;  %v4575_v13 = vshll.u32 %v1298_v1, 16  ;;  %v4581_v19 = vshll.u32 %v1284_v55, 16 }
 0x420   : > { %v1462_v10 = vsel %vm1461_vm6, %v1457_v61, inf  ;;  %v4609_v33 = vshll.u32 %v1326_v11, 16  ;;  %v1466_v2 = vcvt.f32.s32 %v4555_v40  ;;  %v4613_v61 = vsub.s32 4, %v4569_v34 }
 0x421   : > { %1463 = vmin.xlane.f32.xlu0 %v1462_v10  ;;  %v4583_v42 = vshll.u32 %v1354_v20, 16  ;;  %v4615_v10 = vshll.u32 %v1340_v7, 16  ;;  %v4618_v53 = vsub.s32 5, %v4569_v34  ;;  %v4624_v18 = vsub.s32 7, %v4569_v34 }
 0x422   : > { %v4626_v30 = vshll.u32 %v1410_v45, 16  ;;  %v4628_v37 = vshll.u32 %v1396_v56, 16  ;;  %v4631_v44 = vsub.s32 %v2121_v26, %v4569_v34  ;;  %v4636_v46 = vshll.u32 %v1438_v5, 16 }
 0x423   : > { %v4638_v1 = vshll.u32 %v1452_v43, 16  ;;  %v4640_v6 = vshll.u32 %v1424_v23, 16  ;;  %v4643_v20 = vshll.u32 %v1466_v2, 16  ;;  %vm1482_vm4 = vcmp.lt.f32.partialorder %v4389_v0, inf }
 0x424   : > { %vm1481_vm5 = vcmp.lt.f32.partialorder %v4399_v49, inf  ;;  %vm1485_vm6 = vcmp.lt.f32.partialorder %v4416_v24, inf }
 0x487   : > { %v1240_v3 = vpop.xlane.xlu0 %1239 }
 0x488   : > { %v1241_v29 = vcvt.f32.s32 %v1240_v3 }
 0x48a   : > { %v1244_v40 = vadd.s32 %v1243_v9, %v1241_v29 }
 0x48b   : > { %v1254_v50 = vpop.xlane.xlu1 %1253  ;;  %v1212_v55 = vpop.xlane.xlu0 %1211 }
 0x48c   : > { %v1490_v12 = vsel %vm1471_vm7, %v1244_v40, 0  ;;  %v1255_v9 = vcvt.f32.s32 %v1254_v50  ;;  %v1213_v16 = vcvt.f32.s32 %v1212_v55 }
 0x48d   : > { %v1574_v21 = vrot.slane %v1490_v12, %v4587_v57  ;;  %v1578_v11 = vrot.slane %v1490_v12, %v4593_v4  ;;  %v1582_v7 = vrot.slane %v1490_v12, %v4596_v39  ;;  %v1586_v45 = vrot.slane %v1490_v12, %v4601_v48 }
 0x48e   : > { %v1258_v56 = vadd.s32 %v1257_v8, %v1255_v9  ;;  %v1216_v26 = vadd.s32 %v1215_v63, %v1213_v16  ;;  %v1590_v31 = vrot.slane %v1490_v12, %v4613_v61  ;;  %v1594_v5 = vrot.slane %v1490_v12, %v4618_v53 }
 0x48f   : > { %v1226_v14 = vpop.xlane.xlu1 %1225  ;;  %v1598_v43 = vrot.slane %v1490_v12, %v4621_v36  ;;  %v1602_v23 = vrot.slane %v1490_v12, %v4624_v18  ;;  %v2213_v3 = vcombine.low %v1574_v21, %v1578_v11  ;;  %v2214_v2 = vcombine.low %v1582_v7, %v1586_v45 }
 0x490   : > { %v4659_v29 = vsel %vm1472_vm9, %v1258_v56, 0  ;;  %v1488_v63 = vsel %vm1469_vm8, %v1216_v26, 0  ;;  %v1227_v8 = vcvt.f32.s32 %v1226_v14  ;;  %v1296_v40 = vpop.xlane.xlu0 %1295  ;;  %v2215_v50 = vcombine.low %v1590_v31, %v1594_v5 }
 0x491   : > { %v1297_v55 = vcvt.f32.s32 %v1296_v40  ;;  %v2216_v9 = vcombine.low %v1598_v43, %v1602_v23  ;;  %v2223_v16 = vrot.slane %v2213_v3, %v4631_v44  ;;  %v2230_v12 = vrot.slane %v2214_v2, %v4631_v44 }
 0x492   : > { %v1230_v21 = vadd.s32 %v4573_v32, %v1227_v8  ;;  %v2237_v11 = vrot.slane %v2215_v50, %v4631_v44  ;;  %v1510_v47 = vrot.slane %v1488_v63, %v4587_v57  ;;  %v1514_v7 = vrot.slane %v1488_v63, %v4593_v4 }
 0x493   : > { %v1300_v15 = vadd.s32 %v4575_v13, %v1297_v55  ;;  %v1310_v45 = vpop.xlane.xlu1 %1309  ;;  %v2244_v56 = vrot.slane %v2216_v9, %v4631_v44  ;;  %v2245_v26 = vcombine.low %v2223_v16, %v2230_v12  ;;  %v1518_v31 = vrot.slane %v1488_v63, %v4596_v39 }
 0x494   : > { %v4676_v32 = vsel %vm1470_vm10, %v1230_v21, 0  ;;  %v1311_v5 = vcvt.f32.s32 %v1310_v45  ;;  %v1268_v14 = vpop.xlane.xlu0 %1267  ;;  %v1522_v43 = vrot.slane %v1488_v63, %v4601_v48  ;;  %v1526_v23 = vrot.slane %v1488_v63, %v4613_v61 }
 0x495   : > { %v4682_v13 = vsel %vm1475_vm11, %v1300_v15, 0  ;;  %v1269_v3 = vcvt.f32.s32 %v1268_v14  ;;  %v2246_v2 = vcombine.low %v2237_v11, %v2244_v56  ;;  %v2253_v8 = vrot.slane %v2245_v26, %v4631_v44 }
 0x496   : > { %v1314_v40 = vadd.s32 %v4577_v60, %v1311_v5  ;;  %v1530_v17 = vrot.slane %v1488_v63, %v4618_v53  ;;  %v1534_v50 = vrot.slane %v1488_v63, %v4621_v36  ;;  %v1538_v55 = vrot.slane %v1488_v63, %v4624_v18 }
 0x497   : > { %v1272_v9 = vadd.s32 %v4579_v27, %v1269_v3  ;;  %v1282_v16 = vpop.xlane.xlu1 %1281  ;;  %v2260_v25 = vrot.slane %v2246_v2, %v4631_v44  ;;  %v2115_v12 = vcombine.low %v1510_v47, %v1514_v7  ;;  %v2116_v21 = vcombine.low %v1518_v31, %v1522_v43 }
 0x498   : > { %v4695_v60 = vsel %vm1476_vm12, %v1314_v40, 0  ;;  %v1283_v11 = vcvt.f32.s32 %v1282_v16  ;;  %v1352_v15 = vpop.xlane.xlu0 %1351  ;;  %v2117_v45 = vcombine.low %v1526_v23, %v1530_v17  ;;  %v2118_v56 = vcombine.low %v1534_v50, %v1538_v55 }
 0x499   : > { %v4699_v63 = vsel %vm1473_vm13, %v1272_v9, 0  ;;  %v1353_v27 = vcvt.f32.s32 %v1352_v15  ;;  %v2261_v26 = vcombine.low %v2253_v8, %v2260_v25  ;;  %v2125_v5 = vrot.slane %v2115_v12, %v4631_v44 }
 0x49a   : > { %v1286_v47 = vadd.s32 %v4581_v19, %v1283_v11  ;;  %v2132_v7 = vrot.slane %v2116_v21, %v4631_v44  ;;  %v2139_v59 = vrot.slane %v2117_v45, %v4631_v44  ;;  %v2146_v31 = vrot.slane %v2118_v56, %v4631_v44 }
 0x49b   : > { %v1356_v14 = vadd.s32 %v4583_v42, %v1353_v27  ;;  %3053 = vperm.xlu1 %3627, %v2261_v26   ;;  %v1366_v51 = vpop.xlane.xlu1 %1365  ;;  %v1542_v43 = vrot.slane %v4676_v32, %v4587_v57  ;;  %v1546_v23 = vrot.slane %v4676_v32, %v4593_v4  ;;  %v1550_v19 = vrot.slane %v4676_v32, %v4596_v39 }
 0x49c   : > { %v4717_v3 = vsel %vm1474_vm14, %v1286_v47, 0  ;;  %v1367_v2 = vcvt.f32.s32 %v1366_v51  ;;  %v1324_v8 = vpop.xlane.xlu0 %1323  ;;  %v2147_v42 = vcombine.low %v2125_v5, %v2132_v7  ;;  %v2148_v40 = vcombine.low %v2139_v59, %v2146_v31 }
 0x49d   : > { %v4721_v17 = vsel %vm1479_vm15, %v1356_v14, 0  ;;  %v1325_v50 = vcvt.f32.s32 %v1324_v8  ;;  %v1554_v55 = vrot.slane %v4676_v32, %v4601_v48  ;;  %v1558_v9 = vrot.slane %v4676_v32, %v4613_v61 }
 0x49e   : > { %v1370_v16 = vadd.s32 %v4589_v22, %v1367_v2  ;;  %v2155_v35 = vrot.slane %v2147_v42, %v4631_v44  ;;  %v2162_v25 = vrot.slane %v2148_v40, %v4631_v44  ;;  %v1562_v12 = vrot.slane %v4676_v32, %v4618_v53 }
 0x49f   : > { %v1328_v38 = vadd.s32 %v4609_v33, %v1325_v50  ;;  %v1338_v21 = vpop.xlane.xlu1 %1337  ;;  %v1566_v11 = vrot.slane %v4676_v32, %v4621_v36  ;;  %v1570_v15 = vrot.slane %v4676_v32, %v4624_v18  ;;  %v2164_v45 = vcombine.low %v1542_v43, %v1546_v23 }
 0x4a0   : > { %v4739_v22 = vsel %vm1480_vm0, %v1370_v16, 0  ;;  %v2163_v56 = vcombine.low %v2155_v35, %v2162_v25  ;;  %v1339_v27 = vcvt.f32.s32 %v1338_v21  ;;  %v1408_v26 = vpop.xlane.xlu0 %1407  ;;  %v2165_v5 = vcombine.low %v1550_v19, %v1554_v55 }
 0x4a1   : > { %v4743_v47 = vsel %vm1477_vm1, %v1328_v38, 0  ;;  %v1409_v33 = vcvt.f32.s32 %v1408_v26  ;;  %v2166_v7 = vcombine.low %v1558_v9, %v1562_v12  ;;  %v2167_v59 = vcombine.low %v1566_v11, %v1570_v15 }
 0x4a2   : > { %3047 = vperm.xlu1 %3627, %v2163_v56   ;;  %v1342_v32 = vadd.s32 %v4615_v10, %v1339_v27  ;;  %v2174_v41 = vrot.slane %v2164_v45, %v4631_v44  ;;  %v2181_v31 = vrot.slane %v2165_v5, %v4631_v44  ;;  %v1606_v14 = vrot.slane %v4659_v29, %v4587_v57 }
 0x4a3   : > { %v1412_v54 = vadd.s32 %v4626_v30, %v1409_v33  ;;  %v2188_v51 = vrot.slane %v2166_v7, %v4631_v44  ;;  %v2195_v43 = vrot.slane %v2167_v59, %v4631_v44  ;;  %v1610_v23 = vrot.slane %v4659_v29, %v4593_v4  ;;  %v1394_v42 = vpop.xlane.xlu1 %1393 }
 0x4a4   : > { %v4759_v10 = vsel %vm1478_vm2, %v1342_v32, 0  ;;  %v2196_v19 = vcombine.low %v2174_v41, %v2181_v31  ;;  %v1614_v2 = vrot.slane %v4659_v29, %v4596_v39  ;;  %v1618_v8 = vrot.slane %v4659_v29, %v4601_v48  ;;  %v1380_v55 = vpop.xlane.xlu0 %1379 }
 0x4a5   : > { %v4767_v30 = vsel %vm1483_vm3, %v1412_v54, 0  ;;  %v2197_v40 = vcombine.low %v2188_v51, %v2195_v43  ;;  %v1622_v50 = vrot.slane %v4659_v29, %v4613_v61  ;;  %v1626_v52 = vrot.slane %v4659_v29, %v4618_v53 }
 0x4a6   : > { %v2204_v9 = vrot.slane %v2196_v19, %v4631_v44  ;;  %v1630_v16 = vrot.slane %v4659_v29, %v4621_v36  ;;  %v1634_v35 = vrot.slane %v4659_v29, %v4624_v18  ;;  %v2262_v25 = vcombine.low %v1606_v14, %v1610_v23 }
 0x4a7   : > { %v2211_v62 = vrot.slane %v2197_v40, %v4631_v44  ;;  %v2263_v12 = vcombine.low %v1614_v2, %v1618_v8  ;;  %v2264_v38 = vcombine.low %v1622_v50, %v1626_v52  ;;  %v1395_v21 = vcvt.f32.s32 %v1394_v42 }
 0x4a8   : > { %v2265_v11 = vcombine.low %v1630_v16, %v1634_v35  ;;  %v2272_v15 = vrot.slane %v2262_v25, %v4631_v44  ;;  %v1381_v45 = vcvt.f32.s32 %v1380_v55  ;;  %v1702_v56 = vrot.slane %v4682_v13, %v4587_v57  ;;  %v1436_v54 = vpop.xlane.xlu1 %1435 }
 0x4a9   : > { %v2212_v27 = vcombine.low %v2204_v9, %v2211_v62  ;;  %v2279_v26 = vrot.slane %v2263_v12, %v4631_v44  ;;  %v2286_v29 = vrot.slane %v2264_v38, %v4631_v44  ;;  %v1398_v5 = vadd.s32 %v4628_v37, %v1395_v21 }
 0x4aa   : > { %v2293_v33 = vrot.slane %v2265_v11, %v4631_v44  ;;  %v1384_v7 = vadd.s32 %v4634_v28, %v1381_v45  ;;  %v1706_v59 = vrot.slane %v4682_v13, %v4593_v4  ;;  %v1710_v32 = vrot.slane %v4682_v13, %v4596_v39 }
 0x4ab   : > { %3050 = vperm.xlu0 %3628, %v2212_v27   ;;  %v2294_v41 = vcombine.low %v2272_v15, %v2279_v26  ;;  %v4794_v31 = vsel %vm1482_vm4, %v1398_v5, 0  ;;  %v1714_v14 = vrot.slane %v4682_v13, %v4601_v48  ;;  %v1718_v37 = vrot.slane %v4682_v13, %v4613_v61 }
 0x4ac   : > { %v2295_v28 = vcombine.low %v2286_v29, %v2293_v33  ;;  %v4802_v51 = vsel %vm1481_vm5, %v1384_v7, 0  ;;  %v1722_v43 = vrot.slane %v4682_v13, %v4618_v53  ;;  %v1726_v0 = vrot.slane %v4682_v13, %v4621_v36  ;;  %v5307_v33 = vld [vmem:[#allocation9_spill] sm:$0xff]  ;;  %v5308_v7 = vld [vmem:[#allocation10_spill] sm:$0xff] }
 0x4ad   : > { %v2302_v23 = vrot.slane %v2294_v41, %v4631_v44  ;;  %v1730_v19 = vrot.slane %v4682_v13, %v4624_v18  ;;  %v2409_v2 = vcombine.low %v1702_v56, %v1706_v59  ;;  %v2410_v8 = vcombine.low %v1710_v32, %v1714_v14 }
 0x4ae   : > { %v2309_v42 = vrot.slane %v2295_v28, %v4631_v44  ;;  %v2411_v40 = vcombine.low %v1718_v37, %v1722_v43  ;;  %v1437_v50 = vcvt.f32.s32 %v1436_v54  ;;  %v1638_v49 = vrot.slane %v4699_v63, %v4587_v57 }
 0x4af   : > { %v2412_v52 = vcombine.low %v1726_v0, %v1730_v19  ;;  %v2419_v55 = vrot.slane %v2409_v2, %v4631_v44  ;;  %v2426_v9 = vrot.slane %v2410_v8, %v4631_v44  ;;  %v1642_v16 = vrot.slane %v4699_v63, %v4593_v4  ;;  %v1450_v19 = vpop.xlane.xlu0 %1449  ;;  %v1422_v2 = vpop.xlane.xlu1 %1421 }
 0x4b0   : > { %v2310_v35 = vcombine.low %v2302_v23, %v2309_v42  ;;  %v2433_v13 = vrot.slane %v2411_v40, %v4631_v44  ;;  %v1440_v25 = vadd.s32 %v4636_v46, %v1437_v50  ;;  %v1646_v62 = vrot.slane %v4699_v63, %v4596_v39 }
 0x4b1   : > { %v2440_v12 = vrot.slane %v2412_v52, %v4631_v44  ;;  %v2441_v38 = vcombine.low %v2419_v55, %v2426_v9  ;;  %v1650_v21 = vrot.slane %v4699_v63, %v4601_v48  ;;  %v1654_v11 = vrot.slane %v4699_v63, %v4613_v61 }
 0x4b2   : > { %3056 = vperm.xlu1 %3627, %v2310_v35   ;;  %v4829_v15 = vsel %vm1485_vm6, %v1440_v25, 0  ;;  %v1658_v46 = vrot.slane %v4699_v63, %v4618_v53  ;;  %v1662_v45 = vrot.slane %v4699_v63, %v4621_v36  ;;  %v1666_v56 = vrot.slane %v4699_v63, %v4624_v18 }
 0x4b3   : > { %v2442_v27 = vcombine.low %v2433_v13, %v2440_v12  ;;  %v2449_v26 = vrot.slane %v2441_v38, %v4631_v44  ;;  %v2311_v29 = vcombine.low %v1638_v49, %v1642_v16  ;;  %v2312_v5 = vcombine.low %v1646_v62, %v1650_v21 }
 0x4b4   : > { %vm1486_vm7 = vcmp.lt.f32.partialorder %v5307_v33, inf  ;;  %vm1484_vm8 = vcmp.lt.f32.partialorder %v5308_v7, inf  ;;  %v2313_v24 = vcombine.low %v1654_v11, %v1658_v46  ;;  %v2314_v59 = vcombine.low %v1662_v45, %v1666_v56  ;;  %v5309_v11 = vld [vmem:[#allocation11_spill] sm:$0xff] }
 0x4b5   : > { %v1830_v32 = vrot.slane %v4721_v17, %v4587_v57  ;;  %v1834_v41 = vrot.slane %v4721_v17, %v4593_v4  ;;  %v2456_v14 = vrot.slane %v2442_v27, %v4631_v44  ;;  %v2321_v63 = vrot.slane %v2311_v29, %v4631_v44 }
 0x4b6   : > { %v2328_v37 = vrot.slane %v2312_v5, %v4631_v44  ;;  %v1838_v54 = vrot.slane %v4721_v17, %v4596_v39  ;;  %v2335_v28 = vrot.slane %v2313_v24, %v4631_v44  ;;  %v2342_v43 = vrot.slane %v2314_v59, %v4631_v44 }
 0x4b7   : > { %v1842_v0 = vrot.slane %v4721_v17, %v4601_v48  ;;  %v1846_v23 = vrot.slane %v4721_v17, %v4613_v61  ;;  %v2457_v8 = vcombine.low %v2449_v26, %v2456_v14  ;;  %v1850_v40 = vrot.slane %v4721_v17, %v4618_v53 }
 0x4b8   : > { %v2343_v42 = vcombine.low %v2321_v63, %v2328_v37  ;;  %v1854_v50 = vrot.slane %v4721_v17, %v4621_v36  ;;  %v2344_v49 = vcombine.low %v2335_v28, %v2342_v43  ;;  %v1858_v52 = vrot.slane %v4721_v17, %v4624_v18 }
 0x4b9   : > { %v2605_v55 = vcombine.low %v1830_v32, %v1834_v41  ;;  %v2606_v9 = vcombine.low %v1838_v54, %v1842_v0  ;;  %3065 = vperm.xlu1 %3627, %v2457_v8   ;;  %v2607_v35 = vcombine.low %v1846_v23, %v1850_v40  ;;  %v1451_v13 = vcvt.f32.s32 %v1450_v19  ;;  %v1464_v32 = vpop.xlane.xlu0 %1463 }
 0x4ba   : > { %v2351_v16 = vrot.slane %v2343_v42, %v4631_v44  ;;  %v1423_v25 = vcvt.f32.s32 %v1422_v2  ;;  %v2358_v62 = vrot.slane %v2344_v49, %v4631_v44  ;;  %v2608_v12 = vcombine.low %v1854_v50, %v1858_v52 }
 0x4bb   : > { %v2615_v38 = vrot.slane %v2605_v55, %v4631_v44  ;;  %v2622_v21 = vrot.slane %v2606_v9, %v4631_v44  ;;  %vm1487_vm9 = vcmp.lt.f32.partialorder %v5309_v11, inf  ;;  %v2629_v46 = vrot.slane %v2607_v35, %v4631_v44 }
 0x4bc   : > { %v1454_v17 = vadd.s32 %v4638_v1, %v1451_v13  ;;  %v1426_v45 = vadd.s32 %v4640_v6, %v1423_v25  ;;  %v1734_v56 = vrot.slane %v4695_v60, %v4587_v57  ;;  %v2359_v27 = vcombine.low %v2351_v16, %v2358_v62 }
 0x4bd   : > { %v2636_v26 = vrot.slane %v2608_v12, %v4631_v44  ;;  %v2637_v29 = vcombine.low %v2615_v38, %v2622_v21  ;;  %v1738_v5 = vrot.slane %v4695_v60, %v4593_v4  ;;  %v1742_v1 = vrot.slane %v4695_v60, %v4596_v39 }
 0x4be   : > { %v4876_v24 = vsel %vm1486_vm7, %v1454_v17, 0  ;;  %v4880_v59 = vsel %vm1484_vm8, %v1426_v45, 0  ;;  %v1746_v6 = vrot.slane %v4695_v60, %v4601_v48  ;;  %3059 = vperm.xlu1 %3627, %v2359_v27   ;;  %v1750_v33 = vrot.slane %v4695_v60, %v4613_v61 }
 0x4bf   : > { %v2638_v41 = vcombine.low %v2629_v46, %v2636_v26  ;;  %v2645_v14 = vrot.slane %v2637_v29, %v4631_v44  ;;  %v1754_v63 = vrot.slane %v4695_v60, %v4618_v53  ;;  %v1758_v7 = vrot.slane %v4695_v60, %v4621_v36 }
 0x4c0   : > { %v1762_v37 = vrot.slane %v4695_v60, %v4624_v18  ;;  %v2458_v54 = vcombine.low %v1734_v56, %v1738_v5  ;;  %v2459_v28 = vcombine.low %v1742_v1, %v1746_v6  ;;  %v1465_v23 = vcvt.f32.s32 %v1464_v32 }
 0x4c1   : > { %v2652_v43 = vrot.slane %v2638_v41, %v4631_v44  ;;  %v2460_v0 = vcombine.low %v1750_v33, %v1754_v63  ;;  %v1670_v19 = vrot.slane %v4717_v3, %v4587_v57  ;;  %v1674_v40 = vrot.slane %v4717_v3, %v4593_v4 }
 0x4c2   : > { %v2461_v2 = vcombine.low %v1758_v7, %v1762_v37  ;;  %v2468_v8 = vrot.slane %v2458_v54, %v4631_v44  ;;  %v2475_v42 = vrot.slane %v2459_v28, %v4631_v44  ;;  %v1468_v49 = vadd.s32 %v4643_v20, %v1465_v23 }
 0x4c3   : > { %v2653_v50 = vcombine.low %v2645_v14, %v2652_v43  ;;  %v2482_v60 = vrot.slane %v2460_v0, %v4631_v44  ;;  %v1678_v52 = vrot.slane %v4717_v3, %v4596_v39  ;;  %v1682_v16 = vrot.slane %v4717_v3, %v4601_v48 }
 0x4c4   : > { %v2489_v55 = vrot.slane %v2461_v2, %v4631_v44  ;;  %v2490_v9 = vcombine.low %v2468_v8, %v2475_v42  ;;  %v1686_v35 = vrot.slane %v4717_v3, %v4613_v61  ;;  %v4913_v13 = vsel %vm1487_vm9, %v1468_v49, 0 }
 0x4c5   : > { %3077 = vperm.xlu0 %3628, %v2653_v50   ;;  %v1690_v20 = vrot.slane %v4717_v3, %v4618_v53  ;;  %v1694_v25 = vrot.slane %v4717_v3, %v4621_v36  ;;  %v1698_v62 = vrot.slane %v4717_v3, %v4624_v18  ;;  %v2360_v21 = vcombine.low %v1670_v19, %v1674_v40 }
 0x4c6   : > { %v2491_v12 = vcombine.low %v2482_v60, %v2489_v55  ;;  %v2498_v38 = vrot.slane %v2490_v9, %v4631_v44  ;;  %v2361_v46 = vcombine.low %v1678_v52, %v1682_v16  ;;  %v1958_v11 = vrot.slane %v4767_v30, %v4587_v57 }
 0x4c7   : > { %v2362_v17 = vcombine.low %v1686_v35, %v1690_v20  ;;  %v2363_v45 = vcombine.low %v1694_v25, %v1698_v62  ;;  %v1962_v56 = vrot.slane %v4767_v30, %v4593_v4  ;;  %v2370_v26 = vrot.slane %v2360_v21, %v4631_v44 }
 0x4c8   : > { %v2505_v27 = vrot.slane %v2491_v12, %v4631_v44  ;;  %v2377_v29 = vrot.slane %v2361_v46, %v4631_v44  ;;  %v1966_v3 = vrot.slane %v4767_v30, %v4596_v39  ;;  %v1970_v6 = vrot.slane %v4767_v30, %v4601_v48 }
 0x4c9   : > { %v2384_v5 = vrot.slane %v2362_v17, %v4631_v44  ;;  %v2391_v1 = vrot.slane %v2363_v45, %v4631_v44  ;;  %v1974_v32 = vrot.slane %v4767_v30, %v4613_v61  ;;  %v1978_v33 = vrot.slane %v4767_v30, %v4618_v53 }
 0x4ca   : > { %v2506_v41 = vcombine.low %v2498_v38, %v2505_v27  ;;  %v2392_v14 = vcombine.low %v2370_v26, %v2377_v29  ;;  %v1982_v63 = vrot.slane %v4767_v30, %v4621_v36  ;;  %v1986_v37 = vrot.slane %v4767_v30, %v4624_v18 }
 0x4cb   : > { %v2393_v7 = vcombine.low %v2384_v5, %v2391_v1  ;;  %v2801_v54 = vcombine.low %v1958_v11, %v1962_v56  ;;  %v2802_v28 = vcombine.low %v1966_v3, %v1970_v6  ;;  %v2803_v0 = vcombine.low %v1974_v32, %v1978_v33 }
 0x4cc   : > { %3068 = vperm.xlu1 %3627, %v2506_v41   ;;  %v2400_v43 = vrot.slane %v2392_v14, %v4631_v44  ;;  %v1766_v23 = vrot.slane %v4743_v47, %v4587_v57  ;;  %v1770_v19 = vrot.slane %v4743_v47, %v4593_v4  ;;  %v2804_v8 = vcombine.low %v1982_v63, %v1986_v37 }
 0x4cd   : > { %v2407_v2 = vrot.slane %v2393_v7, %v4631_v44  ;;  %v2811_v42 = vrot.slane %v2801_v54, %v4631_v44  ;;  %v2818_v40 = vrot.slane %v2802_v28, %v4631_v44  ;;  %v2825_v30 = vrot.slane %v2803_v0, %v4631_v44 }
 0x4ce   : > { %v1774_v50 = vrot.slane %v4743_v47, %v4596_v39  ;;  %v1778_v60 = vrot.slane %v4743_v47, %v4601_v48  ;;  %v1782_v49 = vrot.slane %v4743_v47, %v4613_v61  ;;  %v2832_v55 = vrot.slane %v2804_v8, %v4631_v44 }
 0x4cf   : > { %v2408_v52 = vcombine.low %v2400_v43, %v2407_v2  ;;  %v2833_v9 = vcombine.low %v2811_v42, %v2818_v40  ;;  %v1786_v16 = vrot.slane %v4743_v47, %v4618_v53  ;;  %v1790_v35 = vrot.slane %v4743_v47, %v4621_v36 }
 0x4d0   : > { %v1794_v20 = vrot.slane %v4743_v47, %v4624_v18  ;;  %v2507_v25 = vcombine.low %v1766_v23, %v1770_v19  ;;  %v2508_v62 = vcombine.low %v1774_v50, %v1778_v60  ;;  %v2834_v12 = vcombine.low %v2825_v30, %v2832_v55 }
 0x4d1   : > { %3062 = vperm.xlu1 %3627, %v2408_v52   ;;  %v2841_v38 = vrot.slane %v2833_v9, %v4631_v44  ;;  %v2509_v21 = vcombine.low %v1782_v49, %v1786_v16  ;;  %v1894_v46 = vrot.slane %v4802_v51, %v4587_v57  ;;  %v1898_v56 = vrot.slane %v4802_v51, %v4593_v4 }
 0x4d2   : > { %v2510_v17 = vcombine.low %v1790_v35, %v1794_v20  ;;  %v2517_v45 = vrot.slane %v2507_v25, %v4631_v44  ;;  %v2524_v11 = vrot.slane %v2508_v62, %v4631_v44  ;;  %v2848_v47 = vrot.slane %v2834_v12, %v4631_v44 }
 0x4d3   : > { %v2531_v27 = vrot.slane %v2509_v21, %v4631_v44  ;;  %v1902_v26 = vrot.slane %v4802_v51, %v4596_v39  ;;  %v1906_v29 = vrot.slane %v4802_v51, %v4601_v48  ;;  %v1910_v1 = vrot.slane %v4802_v51, %v4613_v61 }
 0x4d4   : > { %v2538_v3 = vrot.slane %v2510_v17, %v4631_v44  ;;  %v2539_v5 = vcombine.low %v2517_v45, %v2524_v11  ;;  %v1914_v6 = vrot.slane %v4802_v51, %v4618_v53  ;;  %v2849_v32 = vcombine.low %v2841_v38, %v2848_v47 }
 0x4d5   : > { %v1918_v41 = vrot.slane %v4802_v51, %v4621_v36  ;;  %v1922_v14 = vrot.slane %v4802_v51, %v4624_v18  ;;  %v2703_v33 = vcombine.low %v1894_v46, %v1898_v56  ;;  %v2704_v37 = vcombine.low %v1902_v26, %v1906_v29 }
 0x4d6   : > { %v2540_v63 = vcombine.low %v2531_v27, %v2538_v3  ;;  %v2547_v7 = vrot.slane %v2539_v5, %v4631_v44  ;;  %v2705_v54 = vcombine.low %v1910_v1, %v1914_v6  ;;  %3089 = vperm.xlu0 %3628, %v2849_v32   ;;  %v1862_v0 = vrot.slane %v4739_v22, %v4587_v57 }
 0x4d7   : > { %v2706_v28 = vcombine.low %v1918_v41, %v1922_v14  ;;  %v2713_v43 = vrot.slane %v2703_v33, %v4631_v44  ;;  %v1866_v23 = vrot.slane %v4739_v22, %v4593_v4  ;;  %v2720_v51 = vrot.slane %v2704_v37, %v4631_v44 }
 0x4d8   : > { %v2554_v19 = vrot.slane %v2540_v63, %v4631_v44  ;;  %v2727_v2 = vrot.slane %v2705_v54, %v4631_v44  ;;  %v1870_v8 = vrot.slane %v4739_v22, %v4596_v39  ;;  %v1874_v40 = vrot.slane %v4739_v22, %v4601_v48 }
 0x4d9   : > { %v2734_v42 = vrot.slane %v2706_v28, %v4631_v44  ;;  %v1878_v30 = vrot.slane %v4739_v22, %v4613_v61  ;;  %v1882_v50 = vrot.slane %v4739_v22, %v4618_v53  ;;  %v2735_v49 = vcombine.low %v2713_v43, %v2720_v51 }
 0x4da   : > { %v2555_v60 = vcombine.low %v2547_v7, %v2554_v19  ;;  %v1886_v52 = vrot.slane %v4739_v22, %v4621_v36  ;;  %v1890_v55 = vrot.slane %v4739_v22, %v4624_v18  ;;  %v2654_v16 = vcombine.low %v1862_v0, %v1866_v23 }
 0x4db   : > { %v2736_v9 = vcombine.low %v2727_v2, %v2734_v42  ;;  %v2655_v35 = vcombine.low %v1870_v8, %v1874_v40  ;;  %v2656_v20 = vcombine.low %v1878_v30, %v1882_v50  ;;  %v2743_v25 = vrot.slane %v2735_v49, %v4631_v44 }
 0x4dc   : > { %3071 = vperm.xlu1 %3627, %v2555_v60   ;;  %v2657_v62 = vcombine.low %v1886_v52, %v1890_v55  ;;  %v2054_v12 = vrot.slane %v4876_v24, %v4587_v57  ;;  %v2058_v38 = vrot.slane %v4876_v24, %v4593_v4  ;;  %v2664_v46 = vrot.slane %v2654_v16, %v4631_v44 }
 0x4dd   : > { %v2750_v21 = vrot.slane %v2736_v9, %v4631_v44  ;;  %v2671_v22 = vrot.slane %v2655_v35, %v4631_v44  ;;  %v2678_v17 = vrot.slane %v2656_v20, %v4631_v44  ;;  %v2062_v11 = vrot.slane %v4876_v24, %v4596_v39 }
 0x4de   : > { %v2685_v45 = vrot.slane %v2657_v62, %v4631_v44  ;;  %v2066_v56 = vrot.slane %v4876_v24, %v4601_v48  ;;  %v2070_v47 = vrot.slane %v4876_v24, %v4613_v61  ;;  %v2074_v29 = vrot.slane %v4876_v24, %v4618_v53 }
 0x4df   : > { %v2751_v27 = vcombine.low %v2743_v25, %v2750_v21  ;;  %v2686_v26 = vcombine.low %v2664_v46, %v2671_v22  ;;  %v2078_v3 = vrot.slane %v4876_v24, %v4621_v36  ;;  %v2082_v1 = vrot.slane %v4876_v24, %v4624_v18 }
 0x4e0   : > { %v2687_v5 = vcombine.low %v2678_v17, %v2685_v45  ;;  %v2948_v6 = vcombine.low %v2054_v12, %v2058_v38  ;;  %v2949_v32 = vcombine.low %v2062_v11, %v2066_v56  ;;  %v2950_v14 = vcombine.low %v2070_v47, %v2074_v29 }
 0x4e1   : > { %3083 = vperm.xlu0 %3628, %v2751_v27   ;;  %v2694_v41 = vrot.slane %v2686_v26, %v4631_v44  ;;  %v1798_v33 = vrot.slane %v4759_v10, %v4587_v57  ;;  %v1802_v63 = vrot.slane %v4759_v10, %v4593_v4  ;;  %v2951_v37 = vcombine.low %v2078_v3, %v2082_v1 }
 0x4e2   : > { %v2701_v7 = vrot.slane %v2687_v5, %v4631_v44  ;;  %v2958_v54 = vrot.slane %v2948_v6, %v4631_v44  ;;  %v2965_v28 = vrot.slane %v2949_v32, %v4631_v44  ;;  %v2972_v24 = vrot.slane %v2950_v14, %v4631_v44 }
 0x4e3   : > { %v1806_v43 = vrot.slane %v4759_v10, %v4596_v39  ;;  %v1810_v0 = vrot.slane %v4759_v10, %v4601_v48  ;;  %v1814_v23 = vrot.slane %v4759_v10, %v4613_v61  ;;  %v2979_v51 = vrot.slane %v2951_v37, %v4631_v44 }
 0x4e4   : > { %v2702_v19 = vcombine.low %v2694_v41, %v2701_v7  ;;  %v2980_v2 = vcombine.low %v2958_v54, %v2965_v28  ;;  %v1818_v8 = vrot.slane %v4759_v10, %v4618_v53  ;;  %v1822_v42 = vrot.slane %v4759_v10, %v4621_v36 }
 0x4e5   : > { %v1826_v40 = vrot.slane %v4759_v10, %v4624_v18  ;;  %v2556_v30 = vcombine.low %v1798_v33, %v1802_v63  ;;  %v2557_v50 = vcombine.low %v1806_v43, %v1810_v0  ;;  %v2981_v60 = vcombine.low %v2972_v24, %v2979_v51 }
 0x4e6   : > { %3080 = vperm.xlu1 %3627, %v2702_v19   ;;  %v2988_v49 = vrot.slane %v2980_v2, %v4631_v44  ;;  %v2558_v52 = vcombine.low %v1814_v23, %v1818_v8  ;;  %v2086_v55 = vrot.slane %v4913_v13, %v4587_v57  ;;  %v2090_v20 = vrot.slane %v4913_v13, %v4593_v4 }
 0x4e7   : > { %v2559_v9 = vcombine.low %v1822_v42, %v1826_v40  ;;  %v2566_v16 = vrot.slane %v2556_v30, %v4631_v44  ;;  %v2573_v35 = vrot.slane %v2557_v50, %v4631_v44  ;;  %v2995_v10 = vrot.slane %v2981_v60, %v4631_v44 }
 0x4e8   : > { %v2580_v25 = vrot.slane %v2558_v52, %v4631_v44  ;;  %v2094_v62 = vrot.slane %v4913_v13, %v4596_v39  ;;  %v2098_v12 = vrot.slane %v4913_v13, %v4601_v48  ;;  %v2102_v46 = vrot.slane %v4913_v13, %v4613_v61 }
 0x4e9   : > { %v2587_v38 = vrot.slane %v2559_v9, %v4631_v44  ;;  %v2588_v21 = vcombine.low %v2566_v16, %v2573_v35  ;;  %v2106_v22 = vrot.slane %v4913_v13, %v4618_v53  ;;  %v2996_v17 = vcombine.low %v2988_v49, %v2995_v10 }
 0x4ea   : > { %v2110_v45 = vrot.slane %v4913_v13, %v4621_v36  ;;  %v2114_v11 = vrot.slane %v4913_v13, %v4624_v18  ;;  %v2997_v56 = vcombine.low %v2086_v55, %v2090_v20  ;;  %v2998_v26 = vcombine.low %v2094_v62, %v2098_v12 }
 0x4eb   : > { %v2589_v47 = vcombine.low %v2580_v25, %v2587_v38  ;;  %v2596_v27 = vrot.slane %v2588_v21, %v4631_v44  ;;  %v2999_v29 = vcombine.low %v2102_v46, %v2106_v22  ;;  %3098 = vperm.xlu0 %3628, %v2996_v17   ;;  %v1926_v1 = vrot.slane %v4794_v31, %v4587_v57 }
 0x4ec   : > { %v3000_v3 = vcombine.low %v2110_v45, %v2114_v11  ;;  %v3007_v5 = vrot.slane %v2997_v56, %v4631_v44  ;;  %v1930_v6 = vrot.slane %v4794_v31, %v4593_v4  ;;  %v3014_v13 = vrot.slane %v2998_v26, %v4631_v44 }
 0x4ed   : > { %v2603_v32 = vrot.slane %v2589_v47, %v4631_v44  ;;  %v3021_v41 = vrot.slane %v2999_v29, %v4631_v44  ;;  %v1934_v14 = vrot.slane %v4794_v31, %v4596_v39  ;;  %v1938_v63 = vrot.slane %v4794_v31, %v4601_v48 }
 0x4ee   : > { %v3028_v33 = vrot.slane %v3000_v3, %v4631_v44  ;;  %v1942_v7 = vrot.slane %v4794_v31, %v4613_v61  ;;  %v1946_v37 = vrot.slane %v4794_v31, %v4618_v53  ;;  %v3029_v28 = vcombine.low %v3007_v5, %v3014_v13 }
 0x4ef   : > { %v2604_v54 = vcombine.low %v2596_v27, %v2603_v32  ;;  %v1950_v24 = vrot.slane %v4794_v31, %v4621_v36  ;;  %v1954_v43 = vrot.slane %v4794_v31, %v4624_v18  ;;  %v2752_v23 = vcombine.low %v1926_v1, %v1930_v6 }
 0x4f0   : > { %v3030_v0 = vcombine.low %v3021_v41, %v3028_v33  ;;  %v2753_v19 = vcombine.low %v1934_v14, %v1938_v63  ;;  %v2754_v51 = vcombine.low %v1942_v7, %v1946_v37  ;;  %v3037_v2 = vrot.slane %v3029_v28, %v4631_v44 }
 0x4f1   : > { %3074 = vperm.xlu1 %3627, %v2604_v54   ;;  %v2755_v8 = vcombine.low %v1950_v24, %v1954_v43  ;;  %v2022_v42 = vrot.slane %v4829_v15, %v4587_v57  ;;  %v2026_v40 = vrot.slane %v4829_v15, %v4593_v4  ;;  %v2762_v50 = vrot.slane %v2752_v23, %v4631_v44 }
 0x4f2   : > { %v3044_v30 = vrot.slane %v3030_v0, %v4631_v44  ;;  %v2769_v31 = vrot.slane %v2753_v19, %v4631_v44  ;;  %v2776_v60 = vrot.slane %v2754_v51, %v4631_v44  ;;  %v2030_v52 = vrot.slane %v4829_v15, %v4596_v39 }
 0x4f3   : > { %v2783_v49 = vrot.slane %v2755_v8, %v4631_v44  ;;  %v2034_v55 = vrot.slane %v4829_v15, %v4601_v48  ;;  %v2038_v9 = vrot.slane %v4829_v15, %v4613_v61  ;;  %v2042_v20 = vrot.slane %v4829_v15, %v4618_v53 }
 0x4f4   : > { %v3045_v16 = vcombine.low %v3037_v2, %v3044_v30  ;;  %v2784_v35 = vcombine.low %v2762_v50, %v2769_v31  ;;  %v2046_v10 = vrot.slane %v4829_v15, %v4621_v36  ;;  %v2050_v62 = vrot.slane %v4829_v15, %v4624_v18 }
 0x4f5   : > { %v2785_v25 = vcombine.low %v2776_v60, %v2783_v49  ;;  %v2899_v12 = vcombine.low %v2022_v42, %v2026_v40  ;;  %v2900_v38 = vcombine.low %v2030_v52, %v2034_v55  ;;  %v2901_v46 = vcombine.low %v2038_v9, %v2042_v20 }
 0x4f6   : > { %3101 = vperm.xlu0 %3628, %v3045_v16   ;;  %v2792_v21 = vrot.slane %v2784_v35, %v4631_v44  ;;  %v1990_v22 = vrot.slane %v4880_v59, %v4587_v57  ;;  %v1994_v17 = vrot.slane %v4880_v59, %v4593_v4  ;;  %v2902_v11 = vcombine.low %v2046_v10, %v2050_v62 }
 0x4f7   : > { %v2799_v45 = vrot.slane %v2785_v25, %v4631_v44  ;;  %v2909_v56 = vrot.slane %v2899_v12, %v4631_v44  ;;  %v2916_v47 = vrot.slane %v2900_v38, %v4631_v44  ;;  %v2923_v15 = vrot.slane %v2901_v46, %v4631_v44 }
 0x4f8   : > { %v1998_v27 = vrot.slane %v4880_v59, %v4596_v39  ;;  %v2002_v26 = vrot.slane %v4880_v59, %v4601_v48  ;;  %v2006_v57 = vrot.slane %v4880_v59, %v4613_v61  ;;  %v2930_v4 = vrot.slane %v2902_v11, %v4631_v44 }
 0x4f9   : > { %v2800_v29 = vcombine.low %v2792_v21, %v2799_v45  ;;  %v2931_v3 = vcombine.low %v2909_v56, %v2916_v47  ;;  %v2010_v5 = vrot.slane %v4880_v59, %v4618_v53  ;;  %v2014_v1 = vrot.slane %v4880_v59, %v4621_v36 }
 0x4fa   : > { %v2018_v6 = vrot.slane %v4880_v59, %v4624_v18  ;;  %v2850_v39 = vcombine.low %v1990_v22, %v1994_v17  ;;  %v2851_v32 = vcombine.low %v1998_v27, %v2002_v26  ;;  %v2932_v48 = vcombine.low %v2923_v15, %v2930_v4 }
 0x4fb   : > { %3086 = vperm.xlu1 %3627, %v2800_v29   ;;  %v2939_v13 = vrot.slane %v2931_v3, %v4631_v44  ;;  %v2852_v61 = vcombine.low %v2006_v57, %v2010_v5 }
 0x4fc   : > { %v2853_v41 = vcombine.low %v2014_v1, %v2018_v6  ;;  %v2860_v14 = vrot.slane %v2850_v39, %v4631_v44  ;;  %v2867_v53 = vrot.slane %v2851_v32, %v4631_v44  ;;  %v2946_v36 = vrot.slane %v2932_v48, %v4631_v44 }
 0x4fd   : > { %v2874_v33 = vrot.slane %v2852_v61, %v4631_v44 }
 0x4fe   : > { %v2881_v18 = vrot.slane %v2853_v41, %v4631_v44  ;;  %v2882_v59 = vcombine.low %v2860_v14, %v2867_v53  ;;  %v2947_v63 = vcombine.low %v2939_v13, %v2946_v36 }
 0x500   : > { %v2883_v7 = vcombine.low %v2874_v33, %v2881_v18  ;;  %v2890_v37 = vrot.slane %v2882_v59, %v4631_v44  ;;  %3095 = vperm.xlu1 %3627, %v2947_v63  }
 0x502   : > { %v2897_v54 = vrot.slane %v2883_v7, %v4631_v44 }
 0x504   : > { %v2898_v28 = vcombine.low %v2890_v37, %v2897_v54 }
 0x506   : > { %3092 = vperm.xlu1 %3627, %v2898_v28  }
 0x507   : > { %3700 = shalt.err (!%p3697_p3)
}
 0x508   : > { %s3701_s17 = scalar_lea.hbm %s5156_s23, 2432  ;;  %s3705_s21 = scalar_lea.hbm %s5288_s7, 4864 }
 0x509   : > { %p3702_p4 = scmp.ne.s32.totalorder %s5156_s23, %s3701_s17  ;;  %p3706_p9 = scmp.lt.u32.totalorder %s5156_s23, %s5288_s7 }
 0x50a   : > { %p3707_p10 = scmp.lt.u32.totalorder %s3705_s21, %s3701_s17  ;;  %p3709_p12 = scmp.lt.u32.totalorder %s3701_s17, %s5156_s23 }
 0x50b   : > { %p3703_p7 = pnand %p3702_p4, %p3872_p5 }
 0x50c   : > { %p3708_p11 = por %p3707_p10, %p3706_p9 }
 0x50d   : > { %p3704_p8 = pneg %p3703_p7 }
 0x50e   : > { %p3710_p13 = por %p3709_p12, %p3708_p11 }
 0x510   : > { %p3711_p0 = pnand %p3710_p13, %p3704_p8 }
 0x512   : > { %3714 = shalt.err (!%p3711_p0)
}
 0x513   : > { %s3786_s26 = smov 128   ;;  %s3787_s12 = smov 8   ;;  %v5310_v2 = vld [vmem:[#allocation8_spill] sm:$0xff]  ;;  %vm3112_vm10 = vcmask 130112   ;;  %vm3119_vm11 = vcmask 195712   ;;  %vm3126_vm12 = vcmask 261312  }
 0x514   : > { %3579 = dma.vmem_to_hbm [thread:$0]  (%p3872_p5), %s5151_s20, 2432, %s5156_s23, %s3247_s24, %s3786_s26, %s3786_s26, %s3787_s12   ;;  %v3107_v8 = vadd.s32 4294967288, %v5310_v2  ;;  %v3114_v40 = vadd.s32 4294967280, %v5310_v2  ;;  %v5189_v31 = vsub.s32 %v5310_v2, %v4569_v34  ;;  %v3128_v60 = vadd.s32 4294967264, %v5310_v2 }
 0x515   : > { %v3121_v49 = vadd.s32 4294967272, %v5310_v2  ;;  %v3135_v55 = vadd.s32 4294967256, %v5310_v2  ;;  %v3142_v38 = vadd.s32 4294967248, %v5310_v2  ;;  %vm3133_vm13 = vcmask 326912   ;;  %s3377_s20 = sshll.u32 %s4144_s25, 1  ;;  %s3419_s23 = sshll.u32 %s3855_s9, 5 }
 0x516   : > { %v5184_v42 = vsub.s32 %v3107_v8, %v4569_v34  ;;  %v5196_v9 = vsub.s32 %v3114_v40, %v4569_v34  ;;  %v3131_v35 = vsub.s32 %v3128_v60, %v4569_v34  ;;  %v3149_v17 = vadd.s32 4294967240, %v5310_v2  ;;  %s310_s24 = scalar_lea.vmem [#allocation4], %s3377_s20  ;;  %s5238_s19 = scalar_lea.hbm %s5289_s8, %s3419_s23 }
 0x517   : > { %v3124_v10 = vsub.s32 %v3121_v49, %v4569_v34  ;;  %v3138_v62 = vsub.s32 %v3135_v55, %v4569_v34  ;;  %v3145_v11 = vsub.s32 %v3142_v38, %v4569_v34  ;;  %vm3140_vm14 = vcmask 392512   ;;  %s3282_s13 = sshll.u32 %s310_s24, 4  ;;  %s3252_s9 = scalar_lea.sflag [#allocation5], %s4144_s25  ;;  %s5240_s13 = int_to_ptr.vmem [resolvable:$true] %s3282_s13 }
 0x518   : > { %v3156_v56 = vadd.s32 4294967232, %v5310_v2  ;;  %v3163_v27 = vadd.s32 4294967224, %v5310_v2  ;;  %v3152_v57 = vsub.s32 %v3149_v17, %v4569_v34  ;;  %vm3147_vm15 = vcmask 458112   ;;  %s3715_s21 = scalar_lea.vmem %s5240_s13, 32  ;;  %s3788_s22 = smov [#allocation4]  }
 0x519   : > { %v3170_v6 = vadd.s32 4294967216, %v5310_v2  ;;  %vm3154_vm0 = vcmask 523712   ;;  %vm3161_vm1 = vcmask 589312   ;;  %v3177_v14 = vadd.s32 4294967208, %v5310_v2  ;;  %p3716_p1 = scmp.ne.s32.totalorder %s5240_s13, %s3715_s21  ;;  %s3719_s10 = sshll.u32 %s3788_s22, 4  ;;  %s3720_s10 = int_to_ptr.vmem [resolvable:$false] %s3719_s10 }
 0x51a   : > { %v3054_v24 = vpop.permute.xlu1 %3053  ;;  %v3159_v5 = vsub.s32 %v3156_v56, %v4569_v34  ;;  %v3166_v1 = vsub.s32 %v3163_v27, %v4569_v34  ;;  %vm3168_vm2 = vcmask 654912   ;;  %v3184_v18 = vadd.s32 4294967200, %v5310_v2  ;;  %s3721_s26 = scalar_lea.vmem %s3720_s10, 64  ;;  %p3722_p4 = scmp.lt.s32.totalorder %s5240_s13, %s3720_s10 }
 0x51b   : > { %v3118_v12 = vrot.slane %v3054_v24, %v5196_v9  ;;  %v3173_v36 = vsub.s32 %v3170_v6, %v4569_v34  ;;  %v3180_v59 = vsub.s32 %v3177_v14, %v4569_v34  ;;  %vm3175_vm3 = vcmask 720512   ;;  %p3717_p2 = pnand %p3716_p1, %p3872_p5  ;;  %p3723_p7 = scmp.lt.s32.totalorder %s3721_s26, %s3715_s21 }
 0x51c   : > { %v3191_v7 = vadd.s32 4294967192, %v5310_v2  ;;  %v3187_v24 = vsub.s32 %v3184_v18, %v4569_v34  ;;  %vm3182_vm4 = vcmask 786112   ;;  %vm3189_vm5 = vcmask 851712  }
 0x51d   : > { %v3205_v40 = vadd.s32 4294967176, %v5310_v2  ;;  %vm3196_vm6 = vcmask 917312   ;;  %vm3203_vm7 = vcmask 982912   ;;  %vm3210_vm8 = vcmask 1048512   ;;  %p3718_p3 = pneg %p3717_p2  ;;  %p3724_p8 = por %p3723_p7, %p3722_p4 }
 0x51e   : > { %vm3243_vm9 = vcmp.lt.s32.totalorder %v5306_v58, 152 }
 0x51f   : > { %p3725_p9 = pnand %p3724_p8, %p3718_p3 }
 0x521   : > { %v3048_v43 = vpop.permute.xlu1 %3047 }
 0x522   : > { %v3106_v16 = vrot.slane %v3048_v43, %v5189_v31 }
 0x52a   : > { %v3051_v30 = vpop.permute.xlu0 %3050 }
 0x52b   : > { %v3111_v52 = vrot.slane %v3051_v30, %v5184_v42 }
 0x52d   : > { %v3113_v25 = vsel %vm3112_vm10, %v3111_v52, %v3106_v16  ;;  %v3208_v16 = vsub.s32 %v3205_v40, %v4569_v34 }
 0x52e   : > { %v3120_v21 = vsel %vm3119_vm11, %v3118_v12, %v3113_v25 }
 0x531   : > { %v3057_v0 = vpop.permute.xlu1 %3056 }
 0x532   : > { %v3125_v22 = vrot.slane %v3057_v0, %v3124_v10 }
 0x534   : > { %v3127_v15 = vsel %vm3126_vm12, %v3125_v22, %v3120_v21 }
 0x538   : > { %v3066_v23 = vpop.permute.xlu1 %3065 }
 0x539   : > { %v3146_v4 = vrot.slane %v3066_v23, %v3145_v11  ;;  %v3194_v23 = vsub.s32 %v3191_v7, %v4569_v34 }
 0x53d   : > { %v3060_v19 = vpop.permute.xlu1 %3059 }
 0x53e   : > { %v3132_v46 = vrot.slane %v3060_v19, %v3131_v35  ;;  %v3198_v19 = vadd.s32 4294967184, %v5310_v2 }
 0x540   : > { %v3134_v26 = vsel %vm3133_vm13, %v3132_v46, %v3127_v15  ;;  %v3201_v49 = vsub.s32 %v3198_v19, %v4569_v34 }
 0x544   : > { %v3078_v3 = vpop.permute.xlu0 %3077 }
 0x545   : > { %v3174_v37 = vrot.slane %v3078_v3, %v3173_v36 }
 0x54b   : > { %v3069_v51 = vpop.permute.xlu1 %3068 }
 0x54c   : > { %v3153_v48 = vrot.slane %v3069_v51, %v3152_v57 }
 0x550   : > { %v3063_v50 = vpop.permute.xlu1 %3062 }
 0x551   : > { %v3139_v45 = vrot.slane %v3063_v50, %v3138_v62 }
 0x553   : > { %v3141_v29 = vsel %vm3140_vm14, %v3139_v45, %v3134_v26 }
 0x554   : > { %v3148_v39 = vsel %vm3147_vm15, %v3146_v4, %v3141_v29 }
 0x555   : > { %v3090_v13 = vpop.permute.xlu0 %3089  ;;  %v3155_v41 = vsel %vm3154_vm0, %v3153_v48, %v3148_v39 }
 0x556   : > { %v3202_v25 = vrot.slane %v3090_v13, %v3201_v49 }
 0x55b   : > { %v3072_v20 = vpop.permute.xlu1 %3071 }
 0x55c   : > { %v3160_v61 = vrot.slane %v3072_v20, %v3159_v5 }
 0x55e   : > { %v3162_v33 = vsel %vm3161_vm1, %v3160_v61, %v3155_v41 }
 0x560   : > { %v3084_v54 = vpop.permute.xlu0 %3083 }
 0x561   : > { %v3188_v30 = vrot.slane %v3084_v54, %v3187_v24 }
 0x565   : > { %v3081_v47 = vpop.permute.xlu1 %3080 }
 0x566   : > { %v3181_v0 = vrot.slane %v3081_v47, %v3180_v59 }
 0x56a   : > { %v3099_v51 = vpop.permute.xlu0 %3098 }
 0x56b   : > { %v3219_v35 = vrot.slane %v3099_v51, %v5184_v42 }
 0x570   : > { %v3075_v32 = vpop.permute.xlu1 %3074 }
 0x571   : > { %v3167_v53 = vrot.slane %v3075_v32, %v3166_v1 }
 0x573   : > { %v3169_v63 = vsel %vm3168_vm2, %v3167_v53, %v3162_v33 }
 0x574   : > { %v3176_v43 = vsel %vm3175_vm3, %v3174_v37, %v3169_v63 }
 0x575   : > { %v3183_v8 = vsel %vm3182_vm4, %v3181_v0, %v3176_v43  ;;  %v3102_v20 = vpop.permute.xlu0 %3101 }
 0x576   : > { %v3190_v52 = vsel %vm3189_vm5, %v3188_v30, %v3183_v8  ;;  %v3224_v12 = vrot.slane %v3102_v20, %v5196_v9 }
 0x57a   : > { %v3087_v28 = vpop.permute.xlu1 %3086 }
 0x57b   : > { %v3195_v50 = vrot.slane %v3087_v28, %v3194_v23 }
 0x57d   : > { %v3197_v10 = vsel %vm3196_vm6, %v3195_v50, %v3190_v52 }
 0x57e   : > { %v3204_v21 = vsel %vm3203_vm7, %v3202_v25, %v3197_v10 }
 0x57f   : > { %v3096_v60 = vpop.permute.xlu1 %3095 }
 0x580   : > { %v3215_v55 = vrot.slane %v3096_v60, %v5189_v31 }
 0x582   : > { %v3220_v2 = vsel %vm3112_vm10, %v3219_v35, %v3215_v55 }
 0x583   : > { %v3225_v34 = vsel %vm3119_vm11, %v3224_v12, %v3220_v2 }
 0x585   : > { %v3093_v62 = vpop.permute.xlu1 %3092 }
 0x586   : > { %v3209_v38 = vrot.slane %v3093_v62, %v3208_v16 }
 0x588   : > { %v3211_v31 = vsel %vm3210_vm8, %v3209_v38, %v3204_v21 }
 0x589   : > { %v3226_v46 = vcombine.low %v3211_v31, %v3225_v34 }
 0x58b   : > { %v3233_v42 = vrot.slane %v3226_v46, %v4631_v44 }
 0x58d   : > { %v3240_v22 = vrot.slane %v3233_v42, %v4631_v44 }
 0x58f   : > { %3245 = vst.msk [vmem:[%s310_s24] sm:$0x3] %vm3243_vm9, %v3240_v22 }
 0x590   : > { %3728 = shalt.err (!%p3725_p9)
}
 0x591   : > { %s3729_s25 = scalar_lea.hbm %s5238_s19, 32  ;;  %s3733_s23 = scalar_lea.hbm %s5289_s8, 64 }
 0x592   : > { %p3730_p10 = scmp.ne.s32.totalorder %s5238_s19, %s3729_s25  ;;  %p3734_p13 = scmp.lt.u32.totalorder %s5238_s19, %s5289_s8 }
 0x593   : > { %p3735_p0 = scmp.lt.u32.totalorder %s3733_s23, %s3729_s25  ;;  %p3737_p2 = scmp.lt.u32.totalorder %s3729_s25, %s5238_s19 }
 0x594   : > { %p3731_p11 = pnand %p3730_p10, %p3872_p5 }
 0x595   : > { %p3736_p1 = por %p3735_p0, %p3734_p13 }
 0x596   : > { %p3732_p12 = pneg %p3731_p11 }
 0x597   : > { %p3738_p3 = por %p3737_p2, %p3736_p1 }
 0x599   : > { %p3739_p4 = pnand %p3738_p3, %p3732_p12 }
 0x59b   : > { %3742 = shalt.err (!%p3739_p4)
}
 0x59c   : > { %3580 = dma.vmem_to_hbm [thread:$0]  (%p3872_p5), %s5240_s13, 32, %s5238_s19, %s3252_s9  }
 0x59d PF: > { %p3590_p7 = scmp.ge.s32.totalorder %s3781_s30, 2  ;;  %s3294_s18 = sand.u32 1, %s3769_s27  }
 0x59e   : > { %s3295_s21 = scalar_lea.sflag [#allocation3], %s3294_s18 }
 0x59f   : > { %p3584_p8 = pnand %p3590_p7, %p3876_p6 }
 0x5a1   : > { %3760 = dma.done.wait (!%p3584_p8), %s3295_s21, 2432  }
 0x5a2   : > { %3762 = vsyncadd (!%p3584_p8), %s3295_s21, 4294964864  ;;  %s3304_s22 = scalar_lea.sflag [#allocation5], %s3294_s18 }
 0x5a3   : > { %3764 = dma.done.wait (!%p3584_p8), %s3304_s22, 32  }
 0x5a4   : > { %3766 = vsyncadd (!%p3584_p8), %s3304_s22, 4294967264  ;;  %p22_p5 = scmp.ge.s32.totalorder %s3859_s11, 4   ;;  %s5311_s27 = smov %s3773_s28 }
 0x5a5   : > { %s5312_s28 = smov %s3777_s29  ;;  %s5313_s29 = smov %s3870_s14 }
 0x5a6   : > { %s5314_s30 = smov %s3859_s11  ;;  %24 = sbr.rel (!%p22_p5) target bundleno = 5 (0x5), region = 100 }
 0x5ad   :  { %3309 = vsyncpa [#allocation3], 1 }
 0x5ae   :  { %3311 = vsyncpa [#allocation3 + $0x1], 1 }
 0x5af   :  { %3312 = vsyncpa [#allocation5], 1 }
 0x5b0   :  { %3314 = vsyncpa [#allocation5 + $0x1], 1 }

</bundles_post_ra>
